<compile_context>
chip_gen: v6e
topology: v6e:2x2x1
jax: 0.10.0
libtpu: 0.0.40
codegen_flags: <defaults>
</compile_context>

<pallas_src>
import math

import jax
import jax.numpy as jnp
from jax.experimental import pallas as pl
from jax.experimental.pallas import tpu as pltpu

D_MODEL = 64
NHEAD = 4
HEAD_DIM = D_MODEL // NHEAD
FFN = 2048            # PyTorch TransformerEncoderLayer default dim_feedforward
FFN_CHUNK = 512
NUM_LAYERS = 2
LN_EPS = 1e-5


def _layer_norm(x, gamma, beta):
    mu = jnp.mean(x, axis=-1, keepdims=True)
    var = jnp.mean(jnp.square(x - mu), axis=-1, keepdims=True)
    return (x - mu) * jax.lax.rsqrt(var + LN_EPS) * gamma + beta


def transformer_kernel(x_ref, mask_ref,
                       ipw_ref, ipb_ref, ow_ref, ob_ref,
                       l1w_ref, l1b_ref, l2w_ref, l2b_ref,
                       g1_ref, b1_ref, g2_ref, b2_ref,
                       fcw_ref, fcb_ref, o_ref):
    # x_ref block: (S, B, D) -> one tile of B batch columns, fully in VMEM.
    S, B, D = x_ref.shape
    rows = S * B

    # Row r of the flattened tile is token (s = r // B, batch = r % B).
    x = x_ref[...].astype(jnp.float32).reshape(rows, D)            # (rows, D) f32

    # Additive block-diagonal attention mask (0 within a batch element, -1e30 across
    # batch elements); precomputed in the wrapper, hoisted above the layer loop.
    mask = mask_ref[...]                                           # (rows, rows) f32

    for l in range(NUM_LAYERS):                                    # static unrolled
        # ---- multi-head self attention -----------------------------------
        # QKV projection with M = rows (bf16 in, f32 accumulate on the MXU).
        # 1/sqrt(head_dim) is already folded into the q columns of the weight.
        xb = x.astype(jnp.bfloat16)
        qkv = jnp.dot(xb, ipw_ref[l],
                      preferred_element_type=jnp.float32) + ipb_ref[l]   # (rows, 3D)

        attn = jnp.zeros((rows, D), jnp.float32)
        for h in range(NHEAD):                                     # static head loop
            q_h = qkv[:, h * HEAD_DIM:(h + 1) * HEAD_DIM].astype(jnp.bfloat16)
            k_h = qkv[:, D + h * HEAD_DIM:D + (h + 1) * HEAD_DIM].astype(jnp.bfloat16)
            v_h = qkv[:, 2 * D + h * HEAD_DIM:2 * D + (h + 1) * HEAD_DIM].astype(jnp.bfloat16)

            # Whole-tile score matrix: one (rows, rows) MXU matmul per head.
            s = jax.lax.dot_general(q_h, k_h, (((1,), (1,)), ((), ())),
                                    preferred_element_type=jnp.float32)  # (rows, rows)
            s = s + mask                                           # kill cross-batch pairs
            s = s - jnp.max(s, axis=-1, keepdims=True)
            p = jnp.exp(s)
            p = p * (1.0 / jnp.sum(p, axis=-1, keepdims=True))     # exact reciprocal

            ctx = jnp.dot(p.astype(jnp.bfloat16), v_h,
                          preferred_element_type=jnp.float32)      # (rows, HEAD_DIM)
            # Accumulate through this head's slice of the output projection
            # (avoids the 16-lane-wide concatenate).
            attn = attn + jnp.dot(ctx.astype(jnp.bfloat16),
                                  ow_ref[l, h * HEAD_DIM:(h + 1) * HEAD_DIM, :],
                                  preferred_element_type=jnp.float32)
        attn = attn + ob_ref[l]
        x = _layer_norm(x + attn, g1_ref[l], b1_ref[l])

        # ---- feed forward (chunked over the 2048 hidden dim) ---------------
        xb = x.astype(jnp.bfloat16)
        ff = jnp.zeros((rows, D), jnp.float32)
        for c in range(0, FFN, FFN_CHUNK):                         # static chunk loop
            h1 = jnp.maximum(
                jnp.dot(xb, l1w_ref[l, :, c:c + FFN_CHUNK],
                        preferred_element_type=jnp.float32)
                + l1b_ref[l, :, c:c + FFN_CHUNK], 0.0)             # (rows, FFN_CHUNK)
            ff = ff + jnp.dot(h1.astype(jnp.bfloat16),
                              l2w_ref[l, c:c + FFN_CHUNK, :],
                              preferred_element_type=jnp.float32)  # (rows, D)
        ff = ff + l2b_ref[l]
        x = _layer_norm(x + ff, g2_ref[l], b2_ref[l])

    # ---- final fc(d_model -> 1) as a VPU multiply + lane reduce ------------
    y = jnp.sum(x * fcw_ref[...], axis=-1, keepdims=True) + fcb_ref[...]   # (rows, 1)
    o_ref[0, 0] = y[:, 0]                                          # lane-dense (rows,) store


def transformer1d_forward(x_snd, kernel_params, block_rows=256):
    """x_snd: (S, N, D) float32 in PyTorch (seq, batch, d_model) layout. Returns (S, N)."""
    S, N, D = x_snd.shape
    assert D == D_MODEL

    # ~256 token rows per grid step (fills a 256-deep MXU pass on v6e/v7x, one-to-two
    # passes on v5e); clamp to N so tiny batches aren't mostly zero padding.
    bb = block_rows // S
    if bb >= N:
        bb = max(1, N)                       # single tile, no padding
    else:
        bb = max(8, (bb // 8) * 8)           # sublane-aligned batch block
    n_pad = (-N) % bb
    x = x_snd
    if n_pad:
        x = jnp.concatenate([x, jnp.zeros((S, n_pad, D), x.dtype)], axis=1)
    n_total = N + n_pad
    n_tiles = n_total // bb
    rows = S * bb

    # Block-diagonal attention mask for one tile: rows are ordered (s major, b minor),
    # so two rows belong to the same batch element iff (row % bb) matches.
    bid = jnp.arange(rows, dtype=jnp.int32) % bb
    mask = jnp.where(bid[:, None] == bid[None, :], 0.0, -1e30).astype(jnp.float32)

    def rep(a):                              # grid-invariant (weight / mask) spec
        zeros = (0,) * a.ndim
        return pl.BlockSpec(a.shape, lambda b, z=zeros: z)

    out = pl.pallas_call(
        transformer_kernel,
        out_shape=jax.ShapeDtypeStruct((n_tiles, 1, rows), jnp.float32),
        grid=(n_tiles,),
        in_specs=[pl.BlockSpec((S, bb, D), lambda b: (0, b, 0)),
                  rep(mask)]
                 + [rep(a) for a in kernel_params],
        out_specs=pl.BlockSpec((1, 1, rows), lambda b: (b, 0, 0)),
        compiler_params=pltpu.CompilerParams(
            dimension_semantics=("parallel",)),      # shard batch tiles across v7x TCs
    )(x, mask, *kernel_params)

    # (n_tiles, 1, rows) -> (S, N); rows are (s major, local-batch minor).
    out = out.reshape(n_tiles, S, bb).transpose(1, 0, 2).reshape(S, n_total)
    return out[:, :N]


# ---------------------------------------------------------------------------
# Deterministic parameter init (PyTorch-layout shapes) + packing for the kernel
# ---------------------------------------------------------------------------
def init_params(key):
    keys = jax.random.split(key, 16)
    ki = iter(keys)

    def w(shape, scale=0.05):
        return (scale * jax.random.normal(next(ki), shape)).astype(jnp.float32)

    return {
        'in_proj_w': w((NUM_LAYERS, 3 * D_MODEL, D_MODEL)),
        'in_proj_b': w((NUM_LAYERS, 3 * D_MODEL)),
        'out_w':     w((NUM_LAYERS, D_MODEL, D_MODEL)),
        'out_b':     w((NUM_LAYERS, D_MODEL)),
        'l1w':       w((NUM_LAYERS, FFN, D_MODEL)),
        'l1b':       w((NUM_LAYERS, FFN)),
        'l2w':       w((NUM_LAYERS, D_MODEL, FFN)),
        'l2b':       w((NUM_LAYERS, D_MODEL)),
        'g1': jnp.ones((NUM_LAYERS, D_MODEL), jnp.float32),
        'b1': jnp.zeros((NUM_LAYERS, D_MODEL), jnp.float32),
        'g2': jnp.ones((NUM_LAYERS, D_MODEL), jnp.float32),
        'b2': jnp.zeros((NUM_LAYERS, D_MODEL), jnp.float32),
        'fcw': w((1, D_MODEL)),
        'fcb': w((1,)),
    }


def pack_kernel_params(P):
    # Pre-transpose PyTorch (out, in) weights to (in, out) for x @ W, fold the
    # 1/sqrt(head_dim) attention scale into the q columns, and cast matmul
    # weights to bf16 (biases / LN params / fc stay f32).
    qscale = jnp.concatenate([
        jnp.full((D_MODEL,), 1.0 / math.sqrt(HEAD_DIM), jnp.float32),
        jnp.ones((2 * D_MODEL,), jnp.float32)])
    ipw = jnp.transpose(P['in_proj_w'], (0, 2, 1)) * qscale[None, None, :]
    ipb = P['in_proj_b'] * qscale[None, :]
    return (
        ipw.astype(jnp.bfloat16),                                    # (L, D, 3D)
        ipb[:, None, :].astype(jnp.float32),                         # (L, 1, 3D)
        jnp.transpose(P['out_w'], (0, 2, 1)).astype(jnp.bfloat16),   # (L, D, D)
        P['out_b'][:, None, :].astype(jnp.float32),                  # (L, 1, D)
        jnp.transpose(P['l1w'], (0, 2, 1)).astype(jnp.bfloat16),     # (L, D, FFN)
        P['l1b'][:, None, :].astype(jnp.float32),                    # (L, 1, FFN)
        jnp.transpose(P['l2w'], (0, 2, 1)).astype(jnp.bfloat16),     # (L, FFN, D)
        P['l2b'][:, None, :].astype(jnp.float32),                    # (L, 1, D)
        P['g1'][:, None, :], P['b1'][:, None, :],
        P['g2'][:, None, :], P['b2'][:, None, :],
        P['fcw'].astype(jnp.float32),                                # (1, D) row for VPU reduce
        P['fcb'][None, :].astype(jnp.float32),                       # (1, 1)
    )


# ---------------------------------------------------------------------------
# Pure-JAX reference (mirrors PyTorch ops, PyTorch weight layout, f32) for checking
# ---------------------------------------------------------------------------
def reference_forward(x_snd, P):
    x = x_snd                                              # (S, N, D)
    S, N, D = x.shape
    for l in range(NUM_LAYERS):
        qkv = jnp.einsum('snd,ed->sne', x, P['in_proj_w'][l]) + P['in_proj_b'][l]
        q, k, v = jnp.split(qkv, 3, axis=-1)

        def split_heads(t):
            return t.reshape(S, N, NHEAD, HEAD_DIM).transpose(1, 2, 0, 3)  # (N,H,S,Hd)

        qh, kh, vh = map(split_heads, (q, k, v))
        scores = jnp.einsum('nhsd,nhtd->nhst', qh, kh) / math.sqrt(HEAD_DIM)
        probs = jax.nn.softmax(scores, axis=-1)
        ctx = jnp.einsum('nhst,nhtd->nhsd', probs, vh)
        ctx = ctx.transpose(2, 0, 1, 3).reshape(S, N, D)
        attn = jnp.einsum('snd,ed->sne', ctx, P['out_w'][l]) + P['out_b'][l]
        x = _layer_norm(x + attn, P['g1'][l], P['b1'][l])

        h1 = jax.nn.relu(jnp.einsum('snd,fd->snf', x, P['l1w'][l]) + P['l1b'][l])
        ff = jnp.einsum('snf,df->snd', h1, P['l2w'][l]) + P['l2b'][l]
        x = _layer_norm(x + ff, P['g2'][l], P['b2'][l])
    y = jnp.einsum('snd,od->sno', x, P['fcw']) + P['fcb']
    return y[..., 0]                                       # (S, N)


if __name__ == "__main__":
    key = jax.random.PRNGKey(0)
    kx, kp = jax.random.split(key)

    P = init_params(kp)
    kparams = pack_kernel_params(P)

    # Small shape from the module spec: seq=8, batch=2, d_model=64 (single tile,
    # exercises the block-diagonal cross-batch mask within one tile).
    S, N = 8, 2
    x = jax.random.normal(kx, (S, N, D_MODEL), jnp.float32)
    out = jax.block_until_ready(transformer1d_forward(x, kparams))
    ref = reference_forward(x, P)
    err = float(jnp.max(jnp.abs(out - ref)))
    assert out.shape == (S, N), out.shape
    # bf16 matmul inputs (f32 accumulation) introduce ~1% error vs the f32 reference.
    assert err < 6e-2, f"max abs err {err}"

    # Second shape: multiple grid tiles + batch padding (exercises megacore path,
    # padded-row handling, and the per-tile mask at block_batch=16).
    S2, N2 = 8, 40
    x2 = jax.random.normal(jax.random.PRNGKey(1), (S2, N2, D_MODEL), jnp.float32)
    out2 = jax.block_until_ready(transformer1d_forward(x2, kparams, block_rows=128))
    ref2 = reference_forward(x2, P)
    err2 = float(jnp.max(jnp.abs(out2 - ref2)))
    assert out2.shape == (S2, N2), out2.shape
    assert err2 < 6e-2, f"max abs err {err2}"

    print("KERNEL_OK")
</pallas_src>

<mosaic_0001>
module attributes {stable_mosaic.version = 11 : i64} {
  func.func @transformer_kernel(%arg0: i32, %arg1: memref<8x2x64xf32, #tpu.memory_space<vmem>>, %arg2: memref<16x16xf32, #tpu.memory_space<vmem>>, %arg3: memref<2x64x192xbf16, #tpu.memory_space<vmem>>, %arg4: memref<2x1x192xf32, #tpu.memory_space<vmem>>, %arg5: memref<2x64x64xbf16, #tpu.memory_space<vmem>>, %arg6: memref<2x1x64xf32, #tpu.memory_space<vmem>>, %arg7: memref<2x64x2048xbf16, #tpu.memory_space<vmem>>, %arg8: memref<2x1x2048xf32, #tpu.memory_space<vmem>>, %arg9: memref<2x2048x64xbf16, #tpu.memory_space<vmem>>, %arg10: memref<2x1x64xf32, #tpu.memory_space<vmem>>, %arg11: memref<2x1x64xf32, #tpu.memory_space<vmem>>, %arg12: memref<2x1x64xf32, #tpu.memory_space<vmem>>, %arg13: memref<2x1x64xf32, #tpu.memory_space<vmem>>, %arg14: memref<2x1x64xf32, #tpu.memory_space<vmem>>, %arg15: memref<1x64xf32, #tpu.memory_space<vmem>>, %arg16: memref<1x1xf32, #tpu.memory_space<vmem>>, %arg17: memref<1x1x16xf32, #tpu.memory_space<vmem>>) attributes {dimension_semantics = [#tpu.dimension_semantics<parallel>], iteration_bounds = array<i64: 1>, scalar_prefetch = 0 : i64, scratch_operands = 0 : i64, tpu.core_type = #tpu.core_type<tc>, window_params = [{transform_indices = @transform_0, window_bounds = array<i64: 8, 2, 64>}, {pipeline_mode = #tpu.pipeline_mode<synchronous>, transform_indices = @transform_1, window_bounds = array<i64: 16, 16>}, {pipeline_mode = #tpu.pipeline_mode<synchronous>, transform_indices = @transform_2, window_bounds = array<i64: 2, 64, 192>}, {pipeline_mode = #tpu.pipeline_mode<synchronous>, transform_indices = @transform_3, window_bounds = array<i64: 2, 1, 192>}, {pipeline_mode = #tpu.pipeline_mode<synchronous>, transform_indices = @transform_4, window_bounds = array<i64: 2, 64, 64>}, {pipeline_mode = #tpu.pipeline_mode<synchronous>, transform_indices = @transform_5, window_bounds = array<i64: 2, 1, 64>}, {pipeline_mode = #tpu.pipeline_mode<synchronous>, transform_indices = @transform_6, window_bounds = array<i64: 2, 64, 2048>}, {pipeline_mode = #tpu.pipeline_mode<synchronous>, transform_indices = @transform_7, window_bounds = array<i64: 2, 1, 2048>}, {pipeline_mode = #tpu.pipeline_mode<synchronous>, transform_indices = @transform_8, window_bounds = array<i64: 2, 2048, 64>}, {pipeline_mode = #tpu.pipeline_mode<synchronous>, transform_indices = @transform_9, window_bounds = array<i64: 2, 1, 64>}, {pipeline_mode = #tpu.pipeline_mode<synchronous>, transform_indices = @transform_10, window_bounds = array<i64: 2, 1, 64>}, {pipeline_mode = #tpu.pipeline_mode<synchronous>, transform_indices = @transform_11, window_bounds = array<i64: 2, 1, 64>}, {pipeline_mode = #tpu.pipeline_mode<synchronous>, transform_indices = @transform_12, window_bounds = array<i64: 2, 1, 64>}, {pipeline_mode = #tpu.pipeline_mode<synchronous>, transform_indices = @transform_13, window_bounds = array<i64: 2, 1, 64>}, {pipeline_mode = #tpu.pipeline_mode<synchronous>, transform_indices = @transform_14, window_bounds = array<i64: 1, 64>}, {pipeline_mode = #tpu.pipeline_mode<synchronous>, transform_indices = @transform_15, window_bounds = array<i64: 1, 1>}, {transform_indices = @transform_16, window_bounds = array<i64: 1, 1, 16>}]} {
    %c0 = arith.constant 0 : index
    %c0_0 = arith.constant 0 : index
    %c0_1 = arith.constant 0 : index
    %0 = vector.load %arg1[%c0, %c0_0, %c0_1] : memref<8x2x64xf32, #tpu.memory_space<vmem>>, vector<8x2x64xf32>
    %1 = vector.shape_cast %0 : vector<8x2x64xf32> to vector<16x64xf32>
    %c0_2 = arith.constant 0 : index
    %c0_3 = arith.constant 0 : index
    %2 = vector.load %arg2[%c0_2, %c0_3] : memref<16x16xf32, #tpu.memory_space<vmem>>, vector<16x16xf32>
    %3 = arith.truncf %1 : vector<16x64xf32> to vector<16x64xbf16>
    %c0_4 = arith.constant 0 : index
    %c0_5 = arith.constant 0 : index
    %c0_6 = arith.constant 0 : index
    %4 = vector.load %arg3[%c0_4, %c0_5, %c0_6] : memref<2x64x192xbf16, #tpu.memory_space<vmem>>, vector<1x64x192xbf16>
    %5 = vector.shape_cast %4 : vector<1x64x192xbf16> to vector<64x192xbf16>
    %cst = arith.constant dense<0.000000e+00> : vector<16x192xf32>
    %6 = tpu.matmul %3, %5, %cst {dimension_numbers = #tpu.dot_dimension_numbers<[1], [0], [0], [1], [0, 0, 1, 1], [], []>} : vector<16x64xbf16>, vector<64x192xbf16>, vector<16x192xf32> -> vector<16x192xf32>
    %c0_7 = arith.constant 0 : index
    %c0_8 = arith.constant 0 : index
    %c0_9 = arith.constant 0 : index
    %7 = vector.load %arg4[%c0_7, %c0_8, %c0_9] : memref<2x1x192xf32, #tpu.memory_space<vmem>>, vector<1x1x192xf32>
    %8 = vector.shape_cast %7 : vector<1x1x192xf32> to vector<1x192xf32>
    %9 = vector.broadcast %8 : vector<1x192xf32> to vector<16x192xf32>
    %10 = arith.addf %6, %9 : vector<16x192xf32>
    %cst_10 = arith.constant 0.000000e+00 : f32
    %11 = vector.broadcast %cst_10 : f32 to vector<16x64xf32>
    %12 = vector.extract_strided_slice %10 {offsets = [0, 0], sizes = [16, 16], strides = [1, 1]} : vector<16x192xf32> to vector<16x16xf32>
    %13 = arith.truncf %12 : vector<16x16xf32> to vector<16x16xbf16>
    %14 = vector.extract_strided_slice %10 {offsets = [0, 64], sizes = [16, 16], strides = [1, 1]} : vector<16x192xf32> to vector<16x16xf32>
    %15 = arith.truncf %14 : vector<16x16xf32> to vector<16x16xbf16>
    %16 = vector.extract_strided_slice %10 {offsets = [0, 128], sizes = [16, 16], strides = [1, 1]} : vector<16x192xf32> to vector<16x16xf32>
    %17 = arith.truncf %16 : vector<16x16xf32> to vector<16x16xbf16>
    %cst_11 = arith.constant dense<0.000000e+00> : vector<16x16xf32>
    %18 = tpu.matmul %13, %15, %cst_11 {dimension_numbers = #tpu.dot_dimension_numbers<[1], [1], [0], [0], [0, 0, 1, 0], [], []>} : vector<16x16xbf16>, vector<16x16xbf16>, vector<16x16xf32> -> vector<16x16xf32>
    %19 = arith.addf %18, %2 : vector<16x16xf32>
    %cst_12 = arith.constant dense<0xFF800000> : vector<16xf32>
    %20 = vector.multi_reduction <maximumf>, %19, %cst_12 [1] : vector<16x16xf32> to vector<16xf32>
    %21 = vector.shape_cast %20 : vector<16xf32> to vector<16x1xf32>
    %22 = vector.broadcast %21 : vector<16x1xf32> to vector<16x16xf32>
    %23 = arith.subf %19, %22 : vector<16x16xf32>
    %24 = math.exp %23 : vector<16x16xf32>
    %cst_13 = arith.constant dense<0.000000e+00> : vector<16xf32>
    %25 = vector.multi_reduction <add>, %24, %cst_13 [1] : vector<16x16xf32> to vector<16xf32>
    %26 = vector.shape_cast %25 : vector<16xf32> to vector<16x1xf32>
    %cst_14 = arith.constant 1.000000e+00 : f32
    %27 = vector.broadcast %cst_14 : f32 to vector<16x1xf32>
    %28 = arith.divf %27, %26 : vector<16x1xf32>
    %29 = vector.broadcast %28 : vector<16x1xf32> to vector<16x16xf32>
    %30 = arith.mulf %24, %29 : vector<16x16xf32>
    %31 = arith.truncf %30 : vector<16x16xf32> to vector<16x16xbf16>
    %cst_15 = arith.constant dense<0.000000e+00> : vector<16x16xf32>
    %32 = tpu.matmul %31, %17, %cst_15 {dimension_numbers = #tpu.dot_dimension_numbers<[1], [0], [0], [1], [0, 0, 1, 1], [], []>} : vector<16x16xbf16>, vector<16x16xbf16>, vector<16x16xf32> -> vector<16x16xf32>
    %33 = arith.truncf %32 : vector<16x16xf32> to vector<16x16xbf16>
    %c0_16 = arith.constant 0 : index
    %c0_17 = arith.constant 0 : index
    %c0_18 = arith.constant 0 : index
    %34 = vector.load %arg5[%c0_16, %c0_17, %c0_18] : memref<2x64x64xbf16, #tpu.memory_space<vmem>>, vector<1x16x64xbf16>
    %35 = vector.shape_cast %34 : vector<1x16x64xbf16> to vector<16x64xbf16>
    %cst_19 = arith.constant dense<0.000000e+00> : vector<16x64xf32>
    %36 = tpu.matmul %33, %35, %cst_19 {dimension_numbers = #tpu.dot_dimension_numbers<[1], [0], [0], [1], [0, 0, 1, 1], [], []>} : vector<16x16xbf16>, vector<16x64xbf16>, vector<16x64xf32> -> vector<16x64xf32>
    %37 = arith.addf %11, %36 : vector<16x64xf32>
    %38 = vector.extract_strided_slice %10 {offsets = [0, 16], sizes = [16, 16], strides = [1, 1]} : vector<16x192xf32> to vector<16x16xf32>
    %39 = arith.truncf %38 : vector<16x16xf32> to vector<16x16xbf16>
    %40 = vector.extract_strided_slice %10 {offsets = [0, 80], sizes = [16, 16], strides = [1, 1]} : vector<16x192xf32> to vector<16x16xf32>
    %41 = arith.truncf %40 : vector<16x16xf32> to vector<16x16xbf16>
    %42 = vector.extract_strided_slice %10 {offsets = [0, 144], sizes = [16, 16], strides = [1, 1]} : vector<16x192xf32> to vector<16x16xf32>
    %43 = arith.truncf %42 : vector<16x16xf32> to vector<16x16xbf16>
    %cst_20 = arith.constant dense<0.000000e+00> : vector<16x16xf32>
    %44 = tpu.matmul %39, %41, %cst_20 {dimension_numbers = #tpu.dot_dimension_numbers<[1], [1], [0], [0], [0, 0, 1, 0], [], []>} : vector<16x16xbf16>, vector<16x16xbf16>, vector<16x16xf32> -> vector<16x16xf32>
    %45 = arith.addf %44, %2 : vector<16x16xf32>
    %cst_21 = arith.constant dense<0xFF800000> : vector<16xf32>
    %46 = vector.multi_reduction <maximumf>, %45, %cst_21 [1] : vector<16x16xf32> to vector<16xf32>
    %47 = vector.shape_cast %46 : vector<16xf32> to vector<16x1xf32>
    %48 = vector.broadcast %47 : vector<16x1xf32> to vector<16x16xf32>
    %49 = arith.subf %45, %48 : vector<16x16xf32>
    %50 = math.exp %49 : vector<16x16xf32>
    %cst_22 = arith.constant dense<0.000000e+00> : vector<16xf32>
    %51 = vector.multi_reduction <add>, %50, %cst_22 [1] : vector<16x16xf32> to vector<16xf32>
    %52 = vector.shape_cast %51 : vector<16xf32> to vector<16x1xf32>
    %cst_23 = arith.constant 1.000000e+00 : f32
    %53 = vector.broadcast %cst_23 : f32 to vector<16x1xf32>
    %54 = arith.divf %53, %52 : vector<16x1xf32>
    %55 = vector.broadcast %54 : vector<16x1xf32> to vector<16x16xf32>
    %56 = arith.mulf %50, %55 : vector<16x16xf32>
    %57 = arith.truncf %56 : vector<16x16xf32> to vector<16x16xbf16>
    %cst_24 = arith.constant dense<0.000000e+00> : vector<16x16xf32>
    %58 = tpu.matmul %57, %43, %cst_24 {dimension_numbers = #tpu.dot_dimension_numbers<[1], [0], [0], [1], [0, 0, 1, 1], [], []>} : vector<16x16xbf16>, vector<16x16xbf16>, vector<16x16xf32> -> vector<16x16xf32>
    %59 = arith.truncf %58 : vector<16x16xf32> to vector<16x16xbf16>
    %c0_25 = arith.constant 0 : index
    %c16 = arith.constant 16 : index
    %c0_26 = arith.constant 0 : index
    %60 = vector.load %arg5[%c0_25, %c16, %c0_26] : memref<2x64x64xbf16, #tpu.memory_space<vmem>>, vector<1x16x64xbf16>
    %61 = vector.shape_cast %60 : vector<1x16x64xbf16> to vector<16x64xbf16>
    %cst_27 = arith.constant dense<0.000000e+00> : vector<16x64xf32>
    %62 = tpu.matmul %59, %61, %cst_27 {dimension_numbers = #tpu.dot_dimension_numbers<[1], [0], [0], [1], [0, 0, 1, 1], [], []>} : vector<16x16xbf16>, vector<16x64xbf16>, vector<16x64xf32> -> vector<16x64xf32>
    %63 = arith.addf %37, %62 : vector<16x64xf32>
    %64 = vector.extract_strided_slice %10 {offsets = [0, 32], sizes = [16, 16], strides = [1, 1]} : vector<16x192xf32> to vector<16x16xf32>
    %65 = arith.truncf %64 : vector<16x16xf32> to vector<16x16xbf16>
    %66 = vector.extract_strided_slice %10 {offsets = [0, 96], sizes = [16, 16], strides = [1, 1]} : vector<16x192xf32> to vector<16x16xf32>
    %67 = arith.truncf %66 : vector<16x16xf32> to vector<16x16xbf16>
    %68 = vector.extract_strided_slice %10 {offsets = [0, 160], sizes = [16, 16], strides = [1, 1]} : vector<16x192xf32> to vector<16x16xf32>
    %69 = arith.truncf %68 : vector<16x16xf32> to vector<16x16xbf16>
    %cst_28 = arith.constant dense<0.000000e+00> : vector<16x16xf32>
    %70 = tpu.matmul %65, %67, %cst_28 {dimension_numbers = #tpu.dot_dimension_numbers<[1], [1], [0], [0], [0, 0, 1, 0], [], []>} : vector<16x16xbf16>, vector<16x16xbf16>, vector<16x16xf32> -> vector<16x16xf32>
    %71 = arith.addf %70, %2 : vector<16x16xf32>
    %cst_29 = arith.constant dense<0xFF800000> : vector<16xf32>
    %72 = vector.multi_reduction <maximumf>, %71, %cst_29 [1] : vector<16x16xf32> to vector<16xf32>
    %73 = vector.shape_cast %72 : vector<16xf32> to vector<16x1xf32>
    %74 = vector.broadcast %73 : vector<16x1xf32> to vector<16x16xf32>
    %75 = arith.subf %71, %74 : vector<16x16xf32>
    %76 = math.exp %75 : vector<16x16xf32>
    %cst_30 = arith.constant dense<0.000000e+00> : vector<16xf32>
    %77 = vector.multi_reduction <add>, %76, %cst_30 [1] : vector<16x16xf32> to vector<16xf32>
    %78 = vector.shape_cast %77 : vector<16xf32> to vector<16x1xf32>
    %cst_31 = arith.constant 1.000000e+00 : f32
    %79 = vector.broadcast %cst_31 : f32 to vector<16x1xf32>
    %80 = arith.divf %79, %78 : vector<16x1xf32>
    %81 = vector.broadcast %80 : vector<16x1xf32> to vector<16x16xf32>
    %82 = arith.mulf %76, %81 : vector<16x16xf32>
    %83 = arith.truncf %82 : vector<16x16xf32> to vector<16x16xbf16>
    %cst_32 = arith.constant dense<0.000000e+00> : vector<16x16xf32>
    %84 = tpu.matmul %83, %69, %cst_32 {dimension_numbers = #tpu.dot_dimension_numbers<[1], [0], [0], [1], [0, 0, 1, 1], [], []>} : vector<16x16xbf16>, vector<16x16xbf16>, vector<16x16xf32> -> vector<16x16xf32>
    %85 = arith.truncf %84 : vector<16x16xf32> to vector<16x16xbf16>
    %c0_33 = arith.constant 0 : index
    %c32 = arith.constant 32 : index
    %c0_34 = arith.constant 0 : index
    %86 = vector.load %arg5[%c0_33, %c32, %c0_34] : memref<2x64x64xbf16, #tpu.memory_space<vmem>>, vector<1x16x64xbf16>
    %87 = vector.shape_cast %86 : vector<1x16x64xbf16> to vector<16x64xbf16>
    %cst_35 = arith.constant dense<0.000000e+00> : vector<16x64xf32>
    %88 = tpu.matmul %85, %87, %cst_35 {dimension_numbers = #tpu.dot_dimension_numbers<[1], [0], [0], [1], [0, 0, 1, 1], [], []>} : vector<16x16xbf16>, vector<16x64xbf16>, vector<16x64xf32> -> vector<16x64xf32>
    %89 = arith.addf %63, %88 : vector<16x64xf32>
    %90 = vector.extract_strided_slice %10 {offsets = [0, 48], sizes = [16, 16], strides = [1, 1]} : vector<16x192xf32> to vector<16x16xf32>
    %91 = arith.truncf %90 : vector<16x16xf32> to vector<16x16xbf16>
    %92 = vector.extract_strided_slice %10 {offsets = [0, 112], sizes = [16, 16], strides = [1, 1]} : vector<16x192xf32> to vector<16x16xf32>
    %93 = arith.truncf %92 : vector<16x16xf32> to vector<16x16xbf16>
    %94 = vector.extract_strided_slice %10 {offsets = [0, 176], sizes = [16, 16], strides = [1, 1]} : vector<16x192xf32> to vector<16x16xf32>
    %95 = arith.truncf %94 : vector<16x16xf32> to vector<16x16xbf16>
    %cst_36 = arith.constant dense<0.000000e+00> : vector<16x16xf32>
    %96 = tpu.matmul %91, %93, %cst_36 {dimension_numbers = #tpu.dot_dimension_numbers<[1], [1], [0], [0], [0, 0, 1, 0], [], []>} : vector<16x16xbf16>, vector<16x16xbf16>, vector<16x16xf32> -> vector<16x16xf32>
    %97 = arith.addf %96, %2 : vector<16x16xf32>
    %cst_37 = arith.constant dense<0xFF800000> : vector<16xf32>
    %98 = vector.multi_reduction <maximumf>, %97, %cst_37 [1] : vector<16x16xf32> to vector<16xf32>
    %99 = vector.shape_cast %98 : vector<16xf32> to vector<16x1xf32>
    %100 = vector.broadcast %99 : vector<16x1xf32> to vector<16x16xf32>
    %101 = arith.subf %97, %100 : vector<16x16xf32>
    %102 = math.exp %101 : vector<16x16xf32>
    %cst_38 = arith.constant dense<0.000000e+00> : vector<16xf32>
    %103 = vector.multi_reduction <add>, %102, %cst_38 [1] : vector<16x16xf32> to vector<16xf32>
    %104 = vector.shape_cast %103 : vector<16xf32> to vector<16x1xf32>
    %cst_39 = arith.constant 1.000000e+00 : f32
    %105 = vector.broadcast %cst_39 : f32 to vector<16x1xf32>
    %106 = arith.divf %105, %104 : vector<16x1xf32>
    %107 = vector.broadcast %106 : vector<16x1xf32> to vector<16x16xf32>
    %108 = arith.mulf %102, %107 : vector<16x16xf32>
    %109 = arith.truncf %108 : vector<16x16xf32> to vector<16x16xbf16>
    %cst_40 = arith.constant dense<0.000000e+00> : vector<16x16xf32>
    %110 = tpu.matmul %109, %95, %cst_40 {dimension_numbers = #tpu.dot_dimension_numbers<[1], [0], [0], [1], [0, 0, 1, 1], [], []>} : vector<16x16xbf16>, vector<16x16xbf16>, vector<16x16xf32> -> vector<16x16xf32>
    %111 = arith.truncf %110 : vector<16x16xf32> to vector<16x16xbf16>
    %c0_41 = arith.constant 0 : index
    %c48 = arith.constant 48 : index
    %c0_42 = arith.constant 0 : index
    %112 = vector.load %arg5[%c0_41, %c48, %c0_42] : memref<2x64x64xbf16, #tpu.memory_space<vmem>>, vector<1x16x64xbf16>
    %113 = vector.shape_cast %112 : vector<1x16x64xbf16> to vector<16x64xbf16>
    %cst_43 = arith.constant dense<0.000000e+00> : vector<16x64xf32>
    %114 = tpu.matmul %111, %113, %cst_43 {dimension_numbers = #tpu.dot_dimension_numbers<[1], [0], [0], [1], [0, 0, 1, 1], [], []>} : vector<16x16xbf16>, vector<16x64xbf16>, vector<16x64xf32> -> vector<16x64xf32>
    %115 = arith.addf %89, %114 : vector<16x64xf32>
    %c0_44 = arith.constant 0 : index
    %c0_45 = arith.constant 0 : index
    %c0_46 = arith.constant 0 : index
    %116 = vector.load %arg6[%c0_44, %c0_45, %c0_46] : memref<2x1x64xf32, #tpu.memory_space<vmem>>, vector<1x1x64xf32>
    %117 = vector.shape_cast %116 : vector<1x1x64xf32> to vector<1x64xf32>
    %118 = vector.broadcast %117 : vector<1x64xf32> to vector<16x64xf32>
    %119 = arith.addf %115, %118 : vector<16x64xf32>
    %120 = arith.addf %1, %119 : vector<16x64xf32>
    %c0_47 = arith.constant 0 : index
    %c0_48 = arith.constant 0 : index
    %c0_49 = arith.constant 0 : index
    %121 = vector.load %arg11[%c0_47, %c0_48, %c0_49] : memref<2x1x64xf32, #tpu.memory_space<vmem>>, vector<1x1x64xf32>
    %122 = vector.shape_cast %121 : vector<1x1x64xf32> to vector<1x64xf32>
    %c0_50 = arith.constant 0 : index
    %c0_51 = arith.constant 0 : index
    %c0_52 = arith.constant 0 : index
    %123 = vector.load %arg12[%c0_50, %c0_51, %c0_52] : memref<2x1x64xf32, #tpu.memory_space<vmem>>, vector<1x1x64xf32>
    %124 = vector.shape_cast %123 : vector<1x1x64xf32> to vector<1x64xf32>
    %cst_53 = arith.constant dense<0.000000e+00> : vector<16xf32>
    %125 = vector.multi_reduction <add>, %120, %cst_53 [1] : vector<16x64xf32> to vector<16xf32>
    %126 = vector.shape_cast %125 : vector<16xf32> to vector<16x1xf32>
    %cst_54 = arith.constant 6.400000e+01 : f32
    %127 = vector.broadcast %cst_54 : f32 to vector<16x1xf32>
    %128 = arith.divf %126, %127 : vector<16x1xf32>
    %129 = vector.broadcast %128 : vector<16x1xf32> to vector<16x64xf32>
    %130 = arith.subf %120, %129 : vector<16x64xf32>
    %131 = arith.mulf %130, %130 : vector<16x64xf32>
    %cst_55 = arith.constant dense<0.000000e+00> : vector<16xf32>
    %132 = vector.multi_reduction <add>, %131, %cst_55 [1] : vector<16x64xf32> to vector<16xf32>
    %133 = vector.shape_cast %132 : vector<16xf32> to vector<16x1xf32>
    %cst_56 = arith.constant 6.400000e+01 : f32
    %134 = vector.broadcast %cst_56 : f32 to vector<16x1xf32>
    %135 = arith.divf %133, %134 : vector<16x1xf32>
    %136 = vector.broadcast %128 : vector<16x1xf32> to vector<16x64xf32>
    %137 = arith.subf %120, %136 : vector<16x64xf32>
    %cst_57 = arith.constant 9.99999974E-6 : f32
    %138 = vector.broadcast %cst_57 : f32 to vector<16x1xf32>
    %139 = arith.addf %135, %138 : vector<16x1xf32>
    %140 = math.rsqrt %139 : vector<16x1xf32>
    %141 = vector.broadcast %140 : vector<16x1xf32> to vector<16x64xf32>
    %142 = arith.mulf %137, %141 : vector<16x64xf32>
    %143 = vector.broadcast %122 : vector<1x64xf32> to vector<16x64xf32>
    %144 = arith.mulf %142, %143 : vector<16x64xf32>
    %145 = vector.broadcast %124 : vector<1x64xf32> to vector<16x64xf32>
    %146 = arith.addf %144, %145 : vector<16x64xf32>
    %147 = arith.truncf %146 : vector<16x64xf32> to vector<16x64xbf16>
    %cst_58 = arith.constant 0.000000e+00 : f32
    %148 = vector.broadcast %cst_58 : f32 to vector<16x64xf32>
    %c0_59 = arith.constant 0 : index
    %c0_60 = arith.constant 0 : index
    %c0_61 = arith.constant 0 : index
    %149 = vector.load %arg7[%c0_59, %c0_60, %c0_61] : memref<2x64x2048xbf16, #tpu.memory_space<vmem>>, vector<1x64x512xbf16>
    %150 = vector.shape_cast %149 : vector<1x64x512xbf16> to vector<64x512xbf16>
    %cst_62 = arith.constant dense<0.000000e+00> : vector<16x512xf32>
    %151 = tpu.matmul %147, %150, %cst_62 {dimension_numbers = #tpu.dot_dimension_numbers<[1], [0], [0], [1], [0, 0, 1, 1], [], []>} : vector<16x64xbf16>, vector<64x512xbf16>, vector<16x512xf32> -> vector<16x512xf32>
    %c0_63 = arith.constant 0 : index
    %c0_64 = arith.constant 0 : index
    %c0_65 = arith.constant 0 : index
    %152 = vector.load %arg8[%c0_63, %c0_64, %c0_65] : memref<2x1x2048xf32, #tpu.memory_space<vmem>>, vector<1x1x512xf32>
    %153 = vector.shape_cast %152 : vector<1x1x512xf32> to vector<1x512xf32>
    %154 = vector.broadcast %153 : vector<1x512xf32> to vector<16x512xf32>
    %155 = arith.addf %151, %154 : vector<16x512xf32>
    %cst_66 = arith.constant 0.000000e+00 : f32
    %156 = vector.broadcast %cst_66 : f32 to vector<16x512xf32>
    %157 = arith.maximumf %155, %156 : vector<16x512xf32>
    %158 = arith.truncf %157 : vector<16x512xf32> to vector<16x512xbf16>
    %c0_67 = arith.constant 0 : index
    %c0_68 = arith.constant 0 : index
    %c0_69 = arith.constant 0 : index
    %159 = vector.load %arg9[%c0_67, %c0_68, %c0_69] : memref<2x2048x64xbf16, #tpu.memory_space<vmem>>, vector<1x512x64xbf16>
    %160 = vector.shape_cast %159 : vector<1x512x64xbf16> to vector<512x64xbf16>
    %cst_70 = arith.constant dense<0.000000e+00> : vector<16x64xf32>
    %161 = tpu.matmul %158, %160, %cst_70 {dimension_numbers = #tpu.dot_dimension_numbers<[1], [0], [0], [1], [0, 0, 1, 1], [], []>} : vector<16x512xbf16>, vector<512x64xbf16>, vector<16x64xf32> -> vector<16x64xf32>
    %162 = arith.addf %148, %161 : vector<16x64xf32>
    %c0_71 = arith.constant 0 : index
    %c0_72 = arith.constant 0 : index
    %c512 = arith.constant 512 : index
    %163 = vector.load %arg7[%c0_71, %c0_72, %c512] : memref<2x64x2048xbf16, #tpu.memory_space<vmem>>, vector<1x64x512xbf16>
    %164 = vector.shape_cast %163 : vector<1x64x512xbf16> to vector<64x512xbf16>
    %cst_73 = arith.constant dense<0.000000e+00> : vector<16x512xf32>
    %165 = tpu.matmul %147, %164, %cst_73 {dimension_numbers = #tpu.dot_dimension_numbers<[1], [0], [0], [1], [0, 0, 1, 1], [], []>} : vector<16x64xbf16>, vector<64x512xbf16>, vector<16x512xf32> -> vector<16x512xf32>
    %c0_74 = arith.constant 0 : index
    %c0_75 = arith.constant 0 : index
    %c512_76 = arith.constant 512 : index
    %166 = vector.load %arg8[%c0_74, %c0_75, %c512_76] : memref<2x1x2048xf32, #tpu.memory_space<vmem>>, vector<1x1x512xf32>
    %167 = vector.shape_cast %166 : vector<1x1x512xf32> to vector<1x512xf32>
    %168 = vector.broadcast %167 : vector<1x512xf32> to vector<16x512xf32>
    %169 = arith.addf %165, %168 : vector<16x512xf32>
    %cst_77 = arith.constant 0.000000e+00 : f32
    %170 = vector.broadcast %cst_77 : f32 to vector<16x512xf32>
    %171 = arith.maximumf %169, %170 : vector<16x512xf32>
    %172 = arith.truncf %171 : vector<16x512xf32> to vector<16x512xbf16>
    %c0_78 = arith.constant 0 : index
    %c512_79 = arith.constant 512 : index
    %c0_80 = arith.constant 0 : index
    %173 = vector.load %arg9[%c0_78, %c512_79, %c0_80] : memref<2x2048x64xbf16, #tpu.memory_space<vmem>>, vector<1x512x64xbf16>
    %174 = vector.shape_cast %173 : vector<1x512x64xbf16> to vector<512x64xbf16>
    %cst_81 = arith.constant dense<0.000000e+00> : vector<16x64xf32>
    %175 = tpu.matmul %172, %174, %cst_81 {dimension_numbers = #tpu.dot_dimension_numbers<[1], [0], [0], [1], [0, 0, 1, 1], [], []>} : vector<16x512xbf16>, vector<512x64xbf16>, vector<16x64xf32> -> vector<16x64xf32>
    %176 = arith.addf %162, %175 : vector<16x64xf32>
    %c0_82 = arith.constant 0 : index
    %c0_83 = arith.constant 0 : index
    %c1024 = arith.constant 1024 : index
    %177 = vector.load %arg7[%c0_82, %c0_83, %c1024] : memref<2x64x2048xbf16, #tpu.memory_space<vmem>>, vector<1x64x512xbf16>
    %178 = vector.shape_cast %177 : vector<1x64x512xbf16> to vector<64x512xbf16>
    %cst_84 = arith.constant dense<0.000000e+00> : vector<16x512xf32>
    %179 = tpu.matmul %147, %178, %cst_84 {dimension_numbers = #tpu.dot_dimension_numbers<[1], [0], [0], [1], [0, 0, 1, 1], [], []>} : vector<16x64xbf16>, vector<64x512xbf16>, vector<16x512xf32> -> vector<16x512xf32>
    %c0_85 = arith.constant 0 : index
    %c0_86 = arith.constant 0 : index
    %c1024_87 = arith.constant 1024 : index
    %180 = vector.load %arg8[%c0_85, %c0_86, %c1024_87] : memref<2x1x2048xf32, #tpu.memory_space<vmem>>, vector<1x1x512xf32>
    %181 = vector.shape_cast %180 : vector<1x1x512xf32> to vector<1x512xf32>
    %182 = vector.broadcast %181 : vector<1x512xf32> to vector<16x512xf32>
    %183 = arith.addf %179, %182 : vector<16x512xf32>
    %cst_88 = arith.constant 0.000000e+00 : f32
    %184 = vector.broadcast %cst_88 : f32 to vector<16x512xf32>
    %185 = arith.maximumf %183, %184 : vector<16x512xf32>
    %186 = arith.truncf %185 : vector<16x512xf32> to vector<16x512xbf16>
    %c0_89 = arith.constant 0 : index
    %c1024_90 = arith.constant 1024 : index
    %c0_91 = arith.constant 0 : index
    %187 = vector.load %arg9[%c0_89, %c1024_90, %c0_91] : memref<2x2048x64xbf16, #tpu.memory_space<vmem>>, vector<1x512x64xbf16>
    %188 = vector.shape_cast %187 : vector<1x512x64xbf16> to vector<512x64xbf16>
    %cst_92 = arith.constant dense<0.000000e+00> : vector<16x64xf32>
    %189 = tpu.matmul %186, %188, %cst_92 {dimension_numbers = #tpu.dot_dimension_numbers<[1], [0], [0], [1], [0, 0, 1, 1], [], []>} : vector<16x512xbf16>, vector<512x64xbf16>, vector<16x64xf32> -> vector<16x64xf32>
    %190 = arith.addf %176, %189 : vector<16x64xf32>
    %c0_93 = arith.constant 0 : index
    %c0_94 = arith.constant 0 : index
    %c1536 = arith.constant 1536 : index
    %191 = vector.load %arg7[%c0_93, %c0_94, %c1536] : memref<2x64x2048xbf16, #tpu.memory_space<vmem>>, vector<1x64x512xbf16>
    %192 = vector.shape_cast %191 : vector<1x64x512xbf16> to vector<64x512xbf16>
    %cst_95 = arith.constant dense<0.000000e+00> : vector<16x512xf32>
    %193 = tpu.matmul %147, %192, %cst_95 {dimension_numbers = #tpu.dot_dimension_numbers<[1], [0], [0], [1], [0, 0, 1, 1], [], []>} : vector<16x64xbf16>, vector<64x512xbf16>, vector<16x512xf32> -> vector<16x512xf32>
    %c0_96 = arith.constant 0 : index
    %c0_97 = arith.constant 0 : index
    %c1536_98 = arith.constant 1536 : index
    %194 = vector.load %arg8[%c0_96, %c0_97, %c1536_98] : memref<2x1x2048xf32, #tpu.memory_space<vmem>>, vector<1x1x512xf32>
    %195 = vector.shape_cast %194 : vector<1x1x512xf32> to vector<1x512xf32>
    %196 = vector.broadcast %195 : vector<1x512xf32> to vector<16x512xf32>
    %197 = arith.addf %193, %196 : vector<16x512xf32>
    %cst_99 = arith.constant 0.000000e+00 : f32
    %198 = vector.broadcast %cst_99 : f32 to vector<16x512xf32>
    %199 = arith.maximumf %197, %198 : vector<16x512xf32>
    %200 = arith.truncf %199 : vector<16x512xf32> to vector<16x512xbf16>
    %c0_100 = arith.constant 0 : index
    %c1536_101 = arith.constant 1536 : index
    %c0_102 = arith.constant 0 : index
    %201 = vector.load %arg9[%c0_100, %c1536_101, %c0_102] : memref<2x2048x64xbf16, #tpu.memory_space<vmem>>, vector<1x512x64xbf16>
    %202 = vector.shape_cast %201 : vector<1x512x64xbf16> to vector<512x64xbf16>
    %cst_103 = arith.constant dense<0.000000e+00> : vector<16x64xf32>
    %203 = tpu.matmul %200, %202, %cst_103 {dimension_numbers = #tpu.dot_dimension_numbers<[1], [0], [0], [1], [0, 0, 1, 1], [], []>} : vector<16x512xbf16>, vector<512x64xbf16>, vector<16x64xf32> -> vector<16x64xf32>
    %204 = arith.addf %190, %203 : vector<16x64xf32>
    %c0_104 = arith.constant 0 : index
    %c0_105 = arith.constant 0 : index
    %c0_106 = arith.constant 0 : index
    %205 = vector.load %arg10[%c0_104, %c0_105, %c0_106] : memref<2x1x64xf32, #tpu.memory_space<vmem>>, vector<1x1x64xf32>
    %206 = vector.shape_cast %205 : vector<1x1x64xf32> to vector<1x64xf32>
    %207 = vector.broadcast %206 : vector<1x64xf32> to vector<16x64xf32>
    %208 = arith.addf %204, %207 : vector<16x64xf32>
    %209 = arith.addf %146, %208 : vector<16x64xf32>
    %c0_107 = arith.constant 0 : index
    %c0_108 = arith.constant 0 : index
    %c0_109 = arith.constant 0 : index
    %210 = vector.load %arg13[%c0_107, %c0_108, %c0_109] : memref<2x1x64xf32, #tpu.memory_space<vmem>>, vector<1x1x64xf32>
    %211 = vector.shape_cast %210 : vector<1x1x64xf32> to vector<1x64xf32>
    %c0_110 = arith.constant 0 : index
    %c0_111 = arith.constant 0 : index
    %c0_112 = arith.constant 0 : index
    %212 = vector.load %arg14[%c0_110, %c0_111, %c0_112] : memref<2x1x64xf32, #tpu.memory_space<vmem>>, vector<1x1x64xf32>
    %213 = vector.shape_cast %212 : vector<1x1x64xf32> to vector<1x64xf32>
    %cst_113 = arith.constant dense<0.000000e+00> : vector<16xf32>
    %214 = vector.multi_reduction <add>, %209, %cst_113 [1] : vector<16x64xf32> to vector<16xf32>
    %215 = vector.shape_cast %214 : vector<16xf32> to vector<16x1xf32>
    %cst_114 = arith.constant 6.400000e+01 : f32
    %216 = vector.broadcast %cst_114 : f32 to vector<16x1xf32>
    %217 = arith.divf %215, %216 : vector<16x1xf32>
    %218 = vector.broadcast %217 : vector<16x1xf32> to vector<16x64xf32>
    %219 = arith.subf %209, %218 : vector<16x64xf32>
    %220 = arith.mulf %219, %219 : vector<16x64xf32>
    %cst_115 = arith.constant dense<0.000000e+00> : vector<16xf32>
    %221 = vector.multi_reduction <add>, %220, %cst_115 [1] : vector<16x64xf32> to vector<16xf32>
    %222 = vector.shape_cast %221 : vector<16xf32> to vector<16x1xf32>
    %cst_116 = arith.constant 6.400000e+01 : f32
    %223 = vector.broadcast %cst_116 : f32 to vector<16x1xf32>
    %224 = arith.divf %222, %223 : vector<16x1xf32>
    %225 = vector.broadcast %217 : vector<16x1xf32> to vector<16x64xf32>
    %226 = arith.subf %209, %225 : vector<16x64xf32>
    %cst_117 = arith.constant 9.99999974E-6 : f32
    %227 = vector.broadcast %cst_117 : f32 to vector<16x1xf32>
    %228 = arith.addf %224, %227 : vector<16x1xf32>
    %229 = math.rsqrt %228 : vector<16x1xf32>
    %230 = vector.broadcast %229 : vector<16x1xf32> to vector<16x64xf32>
    %231 = arith.mulf %226, %230 : vector<16x64xf32>
    %232 = vector.broadcast %211 : vector<1x64xf32> to vector<16x64xf32>
    %233 = arith.mulf %231, %232 : vector<16x64xf32>
    %234 = vector.broadcast %213 : vector<1x64xf32> to vector<16x64xf32>
    %235 = arith.addf %233, %234 : vector<16x64xf32>
    %236 = arith.truncf %235 : vector<16x64xf32> to vector<16x64xbf16>
    %c1 = arith.constant 1 : index
    %c0_118 = arith.constant 0 : index
    %c0_119 = arith.constant 0 : index
    %237 = vector.load %arg3[%c1, %c0_118, %c0_119] : memref<2x64x192xbf16, #tpu.memory_space<vmem>>, vector<1x64x192xbf16>
    %238 = vector.shape_cast %237 : vector<1x64x192xbf16> to vector<64x192xbf16>
    %cst_120 = arith.constant dense<0.000000e+00> : vector<16x192xf32>
    %239 = tpu.matmul %236, %238, %cst_120 {dimension_numbers = #tpu.dot_dimension_numbers<[1], [0], [0], [1], [0, 0, 1, 1], [], []>} : vector<16x64xbf16>, vector<64x192xbf16>, vector<16x192xf32> -> vector<16x192xf32>
    %c1_121 = arith.constant 1 : index
    %c0_122 = arith.constant 0 : index
    %c0_123 = arith.constant 0 : index
    %240 = vector.load %arg4[%c1_121, %c0_122, %c0_123] : memref<2x1x192xf32, #tpu.memory_space<vmem>>, vector<1x1x192xf32>
    %241 = vector.shape_cast %240 : vector<1x1x192xf32> to vector<1x192xf32>
    %242 = vector.broadcast %241 : vector<1x192xf32> to vector<16x192xf32>
    %243 = arith.addf %239, %242 : vector<16x192xf32>
    %cst_124 = arith.constant 0.000000e+00 : f32
    %244 = vector.broadcast %cst_124 : f32 to vector<16x64xf32>
    %245 = vector.extract_strided_slice %243 {offsets = [0, 0], sizes = [16, 16], strides = [1, 1]} : vector<16x192xf32> to vector<16x16xf32>
    %246 = arith.truncf %245 : vector<16x16xf32> to vector<16x16xbf16>
    %247 = vector.extract_strided_slice %243 {offsets = [0, 64], sizes = [16, 16], strides = [1, 1]} : vector<16x192xf32> to vector<16x16xf32>
    %248 = arith.truncf %247 : vector<16x16xf32> to vector<16x16xbf16>
    %249 = vector.extract_strided_slice %243 {offsets = [0, 128], sizes = [16, 16], strides = [1, 1]} : vector<16x192xf32> to vector<16x16xf32>
    %250 = arith.truncf %249 : vector<16x16xf32> to vector<16x16xbf16>
    %cst_125 = arith.constant dense<0.000000e+00> : vector<16x16xf32>
    %251 = tpu.matmul %246, %248, %cst_125 {dimension_numbers = #tpu.dot_dimension_numbers<[1], [1], [0], [0], [0, 0, 1, 0], [], []>} : vector<16x16xbf16>, vector<16x16xbf16>, vector<16x16xf32> -> vector<16x16xf32>
    %252 = arith.addf %251, %2 : vector<16x16xf32>
    %cst_126 = arith.constant dense<0xFF800000> : vector<16xf32>
    %253 = vector.multi_reduction <maximumf>, %252, %cst_126 [1] : vector<16x16xf32> to vector<16xf32>
    %254 = vector.shape_cast %253 : vector<16xf32> to vector<16x1xf32>
    %255 = vector.broadcast %254 : vector<16x1xf32> to vector<16x16xf32>
    %256 = arith.subf %252, %255 : vector<16x16xf32>
    %257 = math.exp %256 : vector<16x16xf32>
    %cst_127 = arith.constant dense<0.000000e+00> : vector<16xf32>
    %258 = vector.multi_reduction <add>, %257, %cst_127 [1] : vector<16x16xf32> to vector<16xf32>
    %259 = vector.shape_cast %258 : vector<16xf32> to vector<16x1xf32>
    %cst_128 = arith.constant 1.000000e+00 : f32
    %260 = vector.broadcast %cst_128 : f32 to vector<16x1xf32>
    %261 = arith.divf %260, %259 : vector<16x1xf32>
    %262 = vector.broadcast %261 : vector<16x1xf32> to vector<16x16xf32>
    %263 = arith.mulf %257, %262 : vector<16x16xf32>
    %264 = arith.truncf %263 : vector<16x16xf32> to vector<16x16xbf16>
    %cst_129 = arith.constant dense<0.000000e+00> : vector<16x16xf32>
    %265 = tpu.matmul %264, %250, %cst_129 {dimension_numbers = #tpu.dot_dimension_numbers<[1], [0], [0], [1], [0, 0, 1, 1], [], []>} : vector<16x16xbf16>, vector<16x16xbf16>, vector<16x16xf32> -> vector<16x16xf32>
    %266 = arith.truncf %265 : vector<16x16xf32> to vector<16x16xbf16>
    %c1_130 = arith.constant 1 : index
    %c0_131 = arith.constant 0 : index
    %c0_132 = arith.constant 0 : index
    %267 = vector.load %arg5[%c1_130, %c0_131, %c0_132] : memref<2x64x64xbf16, #tpu.memory_space<vmem>>, vector<1x16x64xbf16>
    %268 = vector.shape_cast %267 : vector<1x16x64xbf16> to vector<16x64xbf16>
    %cst_133 = arith.constant dense<0.000000e+00> : vector<16x64xf32>
    %269 = tpu.matmul %266, %268, %cst_133 {dimension_numbers = #tpu.dot_dimension_numbers<[1], [0], [0], [1], [0, 0, 1, 1], [], []>} : vector<16x16xbf16>, vector<16x64xbf16>, vector<16x64xf32> -> vector<16x64xf32>
    %270 = arith.addf %244, %269 : vector<16x64xf32>
    %271 = vector.extract_strided_slice %243 {offsets = [0, 16], sizes = [16, 16], strides = [1, 1]} : vector<16x192xf32> to vector<16x16xf32>
    %272 = arith.truncf %271 : vector<16x16xf32> to vector<16x16xbf16>
    %273 = vector.extract_strided_slice %243 {offsets = [0, 80], sizes = [16, 16], strides = [1, 1]} : vector<16x192xf32> to vector<16x16xf32>
    %274 = arith.truncf %273 : vector<16x16xf32> to vector<16x16xbf16>
    %275 = vector.extract_strided_slice %243 {offsets = [0, 144], sizes = [16, 16], strides = [1, 1]} : vector<16x192xf32> to vector<16x16xf32>
    %276 = arith.truncf %275 : vector<16x16xf32> to vector<16x16xbf16>
    %cst_134 = arith.constant dense<0.000000e+00> : vector<16x16xf32>
    %277 = tpu.matmul %272, %274, %cst_134 {dimension_numbers = #tpu.dot_dimension_numbers<[1], [1], [0], [0], [0, 0, 1, 0], [], []>} : vector<16x16xbf16>, vector<16x16xbf16>, vector<16x16xf32> -> vector<16x16xf32>
    %278 = arith.addf %277, %2 : vector<16x16xf32>
    %cst_135 = arith.constant dense<0xFF800000> : vector<16xf32>
    %279 = vector.multi_reduction <maximumf>, %278, %cst_135 [1] : vector<16x16xf32> to vector<16xf32>
    %280 = vector.shape_cast %279 : vector<16xf32> to vector<16x1xf32>
    %281 = vector.broadcast %280 : vector<16x1xf32> to vector<16x16xf32>
    %282 = arith.subf %278, %281 : vector<16x16xf32>
    %283 = math.exp %282 : vector<16x16xf32>
    %cst_136 = arith.constant dense<0.000000e+00> : vector<16xf32>
    %284 = vector.multi_reduction <add>, %283, %cst_136 [1] : vector<16x16xf32> to vector<16xf32>
    %285 = vector.shape_cast %284 : vector<16xf32> to vector<16x1xf32>
    %cst_137 = arith.constant 1.000000e+00 : f32
    %286 = vector.broadcast %cst_137 : f32 to vector<16x1xf32>
    %287 = arith.divf %286, %285 : vector<16x1xf32>
    %288 = vector.broadcast %287 : vector<16x1xf32> to vector<16x16xf32>
    %289 = arith.mulf %283, %288 : vector<16x16xf32>
    %290 = arith.truncf %289 : vector<16x16xf32> to vector<16x16xbf16>
    %cst_138 = arith.constant dense<0.000000e+00> : vector<16x16xf32>
    %291 = tpu.matmul %290, %276, %cst_138 {dimension_numbers = #tpu.dot_dimension_numbers<[1], [0], [0], [1], [0, 0, 1, 1], [], []>} : vector<16x16xbf16>, vector<16x16xbf16>, vector<16x16xf32> -> vector<16x16xf32>
    %292 = arith.truncf %291 : vector<16x16xf32> to vector<16x16xbf16>
    %c1_139 = arith.constant 1 : index
    %c16_140 = arith.constant 16 : index
    %c0_141 = arith.constant 0 : index
    %293 = vector.load %arg5[%c1_139, %c16_140, %c0_141] : memref<2x64x64xbf16, #tpu.memory_space<vmem>>, vector<1x16x64xbf16>
    %294 = vector.shape_cast %293 : vector<1x16x64xbf16> to vector<16x64xbf16>
    %cst_142 = arith.constant dense<0.000000e+00> : vector<16x64xf32>
    %295 = tpu.matmul %292, %294, %cst_142 {dimension_numbers = #tpu.dot_dimension_numbers<[1], [0], [0], [1], [0, 0, 1, 1], [], []>} : vector<16x16xbf16>, vector<16x64xbf16>, vector<16x64xf32> -> vector<16x64xf32>
    %296 = arith.addf %270, %295 : vector<16x64xf32>
    %297 = vector.extract_strided_slice %243 {offsets = [0, 32], sizes = [16, 16], strides = [1, 1]} : vector<16x192xf32> to vector<16x16xf32>
    %298 = arith.truncf %297 : vector<16x16xf32> to vector<16x16xbf16>
    %299 = vector.extract_strided_slice %243 {offsets = [0, 96], sizes = [16, 16], strides = [1, 1]} : vector<16x192xf32> to vector<16x16xf32>
    %300 = arith.truncf %299 : vector<16x16xf32> to vector<16x16xbf16>
    %301 = vector.extract_strided_slice %243 {offsets = [0, 160], sizes = [16, 16], strides = [1, 1]} : vector<16x192xf32> to vector<16x16xf32>
    %302 = arith.truncf %301 : vector<16x16xf32> to vector<16x16xbf16>
    %cst_143 = arith.constant dense<0.000000e+00> : vector<16x16xf32>
    %303 = tpu.matmul %298, %300, %cst_143 {dimension_numbers = #tpu.dot_dimension_numbers<[1], [1], [0], [0], [0, 0, 1, 0], [], []>} : vector<16x16xbf16>, vector<16x16xbf16>, vector<16x16xf32> -> vector<16x16xf32>
    %304 = arith.addf %303, %2 : vector<16x16xf32>
    %cst_144 = arith.constant dense<0xFF800000> : vector<16xf32>
    %305 = vector.multi_reduction <maximumf>, %304, %cst_144 [1] : vector<16x16xf32> to vector<16xf32>
    %306 = vector.shape_cast %305 : vector<16xf32> to vector<16x1xf32>
    %307 = vector.broadcast %306 : vector<16x1xf32> to vector<16x16xf32>
    %308 = arith.subf %304, %307 : vector<16x16xf32>
    %309 = math.exp %308 : vector<16x16xf32>
    %cst_145 = arith.constant dense<0.000000e+00> : vector<16xf32>
    %310 = vector.multi_reduction <add>, %309, %cst_145 [1] : vector<16x16xf32> to vector<16xf32>
    %311 = vector.shape_cast %310 : vector<16xf32> to vector<16x1xf32>
    %cst_146 = arith.constant 1.000000e+00 : f32
    %312 = vector.broadcast %cst_146 : f32 to vector<16x1xf32>
    %313 = arith.divf %312, %311 : vector<16x1xf32>
    %314 = vector.broadcast %313 : vector<16x1xf32> to vector<16x16xf32>
    %315 = arith.mulf %309, %314 : vector<16x16xf32>
    %316 = arith.truncf %315 : vector<16x16xf32> to vector<16x16xbf16>
    %cst_147 = arith.constant dense<0.000000e+00> : vector<16x16xf32>
    %317 = tpu.matmul %316, %302, %cst_147 {dimension_numbers = #tpu.dot_dimension_numbers<[1], [0], [0], [1], [0, 0, 1, 1], [], []>} : vector<16x16xbf16>, vector<16x16xbf16>, vector<16x16xf32> -> vector<16x16xf32>
    %318 = arith.truncf %317 : vector<16x16xf32> to vector<16x16xbf16>
    %c1_148 = arith.constant 1 : index
    %c32_149 = arith.constant 32 : index
    %c0_150 = arith.constant 0 : index
    %319 = vector.load %arg5[%c1_148, %c32_149, %c0_150] : memref<2x64x64xbf16, #tpu.memory_space<vmem>>, vector<1x16x64xbf16>
    %320 = vector.shape_cast %319 : vector<1x16x64xbf16> to vector<16x64xbf16>
    %cst_151 = arith.constant dense<0.000000e+00> : vector<16x64xf32>
    %321 = tpu.matmul %318, %320, %cst_151 {dimension_numbers = #tpu.dot_dimension_numbers<[1], [0], [0], [1], [0, 0, 1, 1], [], []>} : vector<16x16xbf16>, vector<16x64xbf16>, vector<16x64xf32> -> vector<16x64xf32>
    %322 = arith.addf %296, %321 : vector<16x64xf32>
    %323 = vector.extract_strided_slice %243 {offsets = [0, 48], sizes = [16, 16], strides = [1, 1]} : vector<16x192xf32> to vector<16x16xf32>
    %324 = arith.truncf %323 : vector<16x16xf32> to vector<16x16xbf16>
    %325 = vector.extract_strided_slice %243 {offsets = [0, 112], sizes = [16, 16], strides = [1, 1]} : vector<16x192xf32> to vector<16x16xf32>
    %326 = arith.truncf %325 : vector<16x16xf32> to vector<16x16xbf16>
    %327 = vector.extract_strided_slice %243 {offsets = [0, 176], sizes = [16, 16], strides = [1, 1]} : vector<16x192xf32> to vector<16x16xf32>
    %328 = arith.truncf %327 : vector<16x16xf32> to vector<16x16xbf16>
    %cst_152 = arith.constant dense<0.000000e+00> : vector<16x16xf32>
    %329 = tpu.matmul %324, %326, %cst_152 {dimension_numbers = #tpu.dot_dimension_numbers<[1], [1], [0], [0], [0, 0, 1, 0], [], []>} : vector<16x16xbf16>, vector<16x16xbf16>, vector<16x16xf32> -> vector<16x16xf32>
    %330 = arith.addf %329, %2 : vector<16x16xf32>
    %cst_153 = arith.constant dense<0xFF800000> : vector<16xf32>
    %331 = vector.multi_reduction <maximumf>, %330, %cst_153 [1] : vector<16x16xf32> to vector<16xf32>
    %332 = vector.shape_cast %331 : vector<16xf32> to vector<16x1xf32>
    %333 = vector.broadcast %332 : vector<16x1xf32> to vector<16x16xf32>
    %334 = arith.subf %330, %333 : vector<16x16xf32>
    %335 = math.exp %334 : vector<16x16xf32>
    %cst_154 = arith.constant dense<0.000000e+00> : vector<16xf32>
    %336 = vector.multi_reduction <add>, %335, %cst_154 [1] : vector<16x16xf32> to vector<16xf32>
    %337 = vector.shape_cast %336 : vector<16xf32> to vector<16x1xf32>
    %cst_155 = arith.constant 1.000000e+00 : f32
    %338 = vector.broadcast %cst_155 : f32 to vector<16x1xf32>
    %339 = arith.divf %338, %337 : vector<16x1xf32>
    %340 = vector.broadcast %339 : vector<16x1xf32> to vector<16x16xf32>
    %341 = arith.mulf %335, %340 : vector<16x16xf32>
    %342 = arith.truncf %341 : vector<16x16xf32> to vector<16x16xbf16>
    %cst_156 = arith.constant dense<0.000000e+00> : vector<16x16xf32>
    %343 = tpu.matmul %342, %328, %cst_156 {dimension_numbers = #tpu.dot_dimension_numbers<[1], [0], [0], [1], [0, 0, 1, 1], [], []>} : vector<16x16xbf16>, vector<16x16xbf16>, vector<16x16xf32> -> vector<16x16xf32>
    %344 = arith.truncf %343 : vector<16x16xf32> to vector<16x16xbf16>
    %c1_157 = arith.constant 1 : index
    %c48_158 = arith.constant 48 : index
    %c0_159 = arith.constant 0 : index
    %345 = vector.load %arg5[%c1_157, %c48_158, %c0_159] : memref<2x64x64xbf16, #tpu.memory_space<vmem>>, vector<1x16x64xbf16>
    %346 = vector.shape_cast %345 : vector<1x16x64xbf16> to vector<16x64xbf16>
    %cst_160 = arith.constant dense<0.000000e+00> : vector<16x64xf32>
    %347 = tpu.matmul %344, %346, %cst_160 {dimension_numbers = #tpu.dot_dimension_numbers<[1], [0], [0], [1], [0, 0, 1, 1], [], []>} : vector<16x16xbf16>, vector<16x64xbf16>, vector<16x64xf32> -> vector<16x64xf32>
    %348 = arith.addf %322, %347 : vector<16x64xf32>
    %c1_161 = arith.constant 1 : index
    %c0_162 = arith.constant 0 : index
    %c0_163 = arith.constant 0 : index
    %349 = vector.load %arg6[%c1_161, %c0_162, %c0_163] : memref<2x1x64xf32, #tpu.memory_space<vmem>>, vector<1x1x64xf32>
    %350 = vector.shape_cast %349 : vector<1x1x64xf32> to vector<1x64xf32>
    %351 = vector.broadcast %350 : vector<1x64xf32> to vector<16x64xf32>
    %352 = arith.addf %348, %351 : vector<16x64xf32>
    %353 = arith.addf %235, %352 : vector<16x64xf32>
    %c1_164 = arith.constant 1 : index
    %c0_165 = arith.constant 0 : index
    %c0_166 = arith.constant 0 : index
    %354 = vector.load %arg11[%c1_164, %c0_165, %c0_166] : memref<2x1x64xf32, #tpu.memory_space<vmem>>, vector<1x1x64xf32>
    %355 = vector.shape_cast %354 : vector<1x1x64xf32> to vector<1x64xf32>
    %c1_167 = arith.constant 1 : index
    %c0_168 = arith.constant 0 : index
    %c0_169 = arith.constant 0 : index
    %356 = vector.load %arg12[%c1_167, %c0_168, %c0_169] : memref<2x1x64xf32, #tpu.memory_space<vmem>>, vector<1x1x64xf32>
    %357 = vector.shape_cast %356 : vector<1x1x64xf32> to vector<1x64xf32>
    %cst_170 = arith.constant dense<0.000000e+00> : vector<16xf32>
    %358 = vector.multi_reduction <add>, %353, %cst_170 [1] : vector<16x64xf32> to vector<16xf32>
    %359 = vector.shape_cast %358 : vector<16xf32> to vector<16x1xf32>
    %cst_171 = arith.constant 6.400000e+01 : f32
    %360 = vector.broadcast %cst_171 : f32 to vector<16x1xf32>
    %361 = arith.divf %359, %360 : vector<16x1xf32>
    %362 = vector.broadcast %361 : vector<16x1xf32> to vector<16x64xf32>
    %363 = arith.subf %353, %362 : vector<16x64xf32>
    %364 = arith.mulf %363, %363 : vector<16x64xf32>
    %cst_172 = arith.constant dense<0.000000e+00> : vector<16xf32>
    %365 = vector.multi_reduction <add>, %364, %cst_172 [1] : vector<16x64xf32> to vector<16xf32>
    %366 = vector.shape_cast %365 : vector<16xf32> to vector<16x1xf32>
    %cst_173 = arith.constant 6.400000e+01 : f32
    %367 = vector.broadcast %cst_173 : f32 to vector<16x1xf32>
    %368 = arith.divf %366, %367 : vector<16x1xf32>
    %369 = vector.broadcast %361 : vector<16x1xf32> to vector<16x64xf32>
    %370 = arith.subf %353, %369 : vector<16x64xf32>
    %cst_174 = arith.constant 9.99999974E-6 : f32
    %371 = vector.broadcast %cst_174 : f32 to vector<16x1xf32>
    %372 = arith.addf %368, %371 : vector<16x1xf32>
    %373 = math.rsqrt %372 : vector<16x1xf32>
    %374 = vector.broadcast %373 : vector<16x1xf32> to vector<16x64xf32>
    %375 = arith.mulf %370, %374 : vector<16x64xf32>
    %376 = vector.broadcast %355 : vector<1x64xf32> to vector<16x64xf32>
    %377 = arith.mulf %375, %376 : vector<16x64xf32>
    %378 = vector.broadcast %357 : vector<1x64xf32> to vector<16x64xf32>
    %379 = arith.addf %377, %378 : vector<16x64xf32>
    %380 = arith.truncf %379 : vector<16x64xf32> to vector<16x64xbf16>
    %cst_175 = arith.constant 0.000000e+00 : f32
    %381 = vector.broadcast %cst_175 : f32 to vector<16x64xf32>
    %c1_176 = arith.constant 1 : index
    %c0_177 = arith.constant 0 : index
    %c0_178 = arith.constant 0 : index
    %382 = vector.load %arg7[%c1_176, %c0_177, %c0_178] : memref<2x64x2048xbf16, #tpu.memory_space<vmem>>, vector<1x64x512xbf16>
    %383 = vector.shape_cast %382 : vector<1x64x512xbf16> to vector<64x512xbf16>
    %cst_179 = arith.constant dense<0.000000e+00> : vector<16x512xf32>
    %384 = tpu.matmul %380, %383, %cst_179 {dimension_numbers = #tpu.dot_dimension_numbers<[1], [0], [0], [1], [0, 0, 1, 1], [], []>} : vector<16x64xbf16>, vector<64x512xbf16>, vector<16x512xf32> -> vector<16x512xf32>
    %c1_180 = arith.constant 1 : index
    %c0_181 = arith.constant 0 : index
    %c0_182 = arith.constant 0 : index
    %385 = vector.load %arg8[%c1_180, %c0_181, %c0_182] : memref<2x1x2048xf32, #tpu.memory_space<vmem>>, vector<1x1x512xf32>
    %386 = vector.shape_cast %385 : vector<1x1x512xf32> to vector<1x512xf32>
    %387 = vector.broadcast %386 : vector<1x512xf32> to vector<16x512xf32>
    %388 = arith.addf %384, %387 : vector<16x512xf32>
    %cst_183 = arith.constant 0.000000e+00 : f32
    %389 = vector.broadcast %cst_183 : f32 to vector<16x512xf32>
    %390 = arith.maximumf %388, %389 : vector<16x512xf32>
    %391 = arith.truncf %390 : vector<16x512xf32> to vector<16x512xbf16>
    %c1_184 = arith.constant 1 : index
    %c0_185 = arith.constant 0 : index
    %c0_186 = arith.constant 0 : index
    %392 = vector.load %arg9[%c1_184, %c0_185, %c0_186] : memref<2x2048x64xbf16, #tpu.memory_space<vmem>>, vector<1x512x64xbf16>
    %393 = vector.shape_cast %392 : vector<1x512x64xbf16> to vector<512x64xbf16>
    %cst_187 = arith.constant dense<0.000000e+00> : vector<16x64xf32>
    %394 = tpu.matmul %391, %393, %cst_187 {dimension_numbers = #tpu.dot_dimension_numbers<[1], [0], [0], [1], [0, 0, 1, 1], [], []>} : vector<16x512xbf16>, vector<512x64xbf16>, vector<16x64xf32> -> vector<16x64xf32>
    %395 = arith.addf %381, %394 : vector<16x64xf32>
    %c1_188 = arith.constant 1 : index
    %c0_189 = arith.constant 0 : index
    %c512_190 = arith.constant 512 : index
    %396 = vector.load %arg7[%c1_188, %c0_189, %c512_190] : memref<2x64x2048xbf16, #tpu.memory_space<vmem>>, vector<1x64x512xbf16>
    %397 = vector.shape_cast %396 : vector<1x64x512xbf16> to vector<64x512xbf16>
    %cst_191 = arith.constant dense<0.000000e+00> : vector<16x512xf32>
    %398 = tpu.matmul %380, %397, %cst_191 {dimension_numbers = #tpu.dot_dimension_numbers<[1], [0], [0], [1], [0, 0, 1, 1], [], []>} : vector<16x64xbf16>, vector<64x512xbf16>, vector<16x512xf32> -> vector<16x512xf32>
    %c1_192 = arith.constant 1 : index
    %c0_193 = arith.constant 0 : index
    %c512_194 = arith.constant 512 : index
    %399 = vector.load %arg8[%c1_192, %c0_193, %c512_194] : memref<2x1x2048xf32, #tpu.memory_space<vmem>>, vector<1x1x512xf32>
    %400 = vector.shape_cast %399 : vector<1x1x512xf32> to vector<1x512xf32>
    %401 = vector.broadcast %400 : vector<1x512xf32> to vector<16x512xf32>
    %402 = arith.addf %398, %401 : vector<16x512xf32>
    %cst_195 = arith.constant 0.000000e+00 : f32
    %403 = vector.broadcast %cst_195 : f32 to vector<16x512xf32>
    %404 = arith.maximumf %402, %403 : vector<16x512xf32>
    %405 = arith.truncf %404 : vector<16x512xf32> to vector<16x512xbf16>
    %c1_196 = arith.constant 1 : index
    %c512_197 = arith.constant 512 : index
    %c0_198 = arith.constant 0 : index
    %406 = vector.load %arg9[%c1_196, %c512_197, %c0_198] : memref<2x2048x64xbf16, #tpu.memory_space<vmem>>, vector<1x512x64xbf16>
    %407 = vector.shape_cast %406 : vector<1x512x64xbf16> to vector<512x64xbf16>
    %cst_199 = arith.constant dense<0.000000e+00> : vector<16x64xf32>
    %408 = tpu.matmul %405, %407, %cst_199 {dimension_numbers = #tpu.dot_dimension_numbers<[1], [0], [0], [1], [0, 0, 1, 1], [], []>} : vector<16x512xbf16>, vector<512x64xbf16>, vector<16x64xf32> -> vector<16x64xf32>
    %409 = arith.addf %395, %408 : vector<16x64xf32>
    %c1_200 = arith.constant 1 : index
    %c0_201 = arith.constant 0 : index
    %c1024_202 = arith.constant 1024 : index
    %410 = vector.load %arg7[%c1_200, %c0_201, %c1024_202] : memref<2x64x2048xbf16, #tpu.memory_space<vmem>>, vector<1x64x512xbf16>
    %411 = vector.shape_cast %410 : vector<1x64x512xbf16> to vector<64x512xbf16>
    %cst_203 = arith.constant dense<0.000000e+00> : vector<16x512xf32>
    %412 = tpu.matmul %380, %411, %cst_203 {dimension_numbers = #tpu.dot_dimension_numbers<[1], [0], [0], [1], [0, 0, 1, 1], [], []>} : vector<16x64xbf16>, vector<64x512xbf16>, vector<16x512xf32> -> vector<16x512xf32>
    %c1_204 = arith.constant 1 : index
    %c0_205 = arith.constant 0 : index
    %c1024_206 = arith.constant 1024 : index
    %413 = vector.load %arg8[%c1_204, %c0_205, %c1024_206] : memref<2x1x2048xf32, #tpu.memory_space<vmem>>, vector<1x1x512xf32>
    %414 = vector.shape_cast %413 : vector<1x1x512xf32> to vector<1x512xf32>
    %415 = vector.broadcast %414 : vector<1x512xf32> to vector<16x512xf32>
    %416 = arith.addf %412, %415 : vector<16x512xf32>
    %cst_207 = arith.constant 0.000000e+00 : f32
    %417 = vector.broadcast %cst_207 : f32 to vector<16x512xf32>
    %418 = arith.maximumf %416, %417 : vector<16x512xf32>
    %419 = arith.truncf %418 : vector<16x512xf32> to vector<16x512xbf16>
    %c1_208 = arith.constant 1 : index
    %c1024_209 = arith.constant 1024 : index
    %c0_210 = arith.constant 0 : index
    %420 = vector.load %arg9[%c1_208, %c1024_209, %c0_210] : memref<2x2048x64xbf16, #tpu.memory_space<vmem>>, vector<1x512x64xbf16>
    %421 = vector.shape_cast %420 : vector<1x512x64xbf16> to vector<512x64xbf16>
    %cst_211 = arith.constant dense<0.000000e+00> : vector<16x64xf32>
    %422 = tpu.matmul %419, %421, %cst_211 {dimension_numbers = #tpu.dot_dimension_numbers<[1], [0], [0], [1], [0, 0, 1, 1], [], []>} : vector<16x512xbf16>, vector<512x64xbf16>, vector<16x64xf32> -> vector<16x64xf32>
    %423 = arith.addf %409, %422 : vector<16x64xf32>
    %c1_212 = arith.constant 1 : index
    %c0_213 = arith.constant 0 : index
    %c1536_214 = arith.constant 1536 : index
    %424 = vector.load %arg7[%c1_212, %c0_213, %c1536_214] : memref<2x64x2048xbf16, #tpu.memory_space<vmem>>, vector<1x64x512xbf16>
    %425 = vector.shape_cast %424 : vector<1x64x512xbf16> to vector<64x512xbf16>
    %cst_215 = arith.constant dense<0.000000e+00> : vector<16x512xf32>
    %426 = tpu.matmul %380, %425, %cst_215 {dimension_numbers = #tpu.dot_dimension_numbers<[1], [0], [0], [1], [0, 0, 1, 1], [], []>} : vector<16x64xbf16>, vector<64x512xbf16>, vector<16x512xf32> -> vector<16x512xf32>
    %c1_216 = arith.constant 1 : index
    %c0_217 = arith.constant 0 : index
    %c1536_218 = arith.constant 1536 : index
    %427 = vector.load %arg8[%c1_216, %c0_217, %c1536_218] : memref<2x1x2048xf32, #tpu.memory_space<vmem>>, vector<1x1x512xf32>
    %428 = vector.shape_cast %427 : vector<1x1x512xf32> to vector<1x512xf32>
    %429 = vector.broadcast %428 : vector<1x512xf32> to vector<16x512xf32>
    %430 = arith.addf %426, %429 : vector<16x512xf32>
    %cst_219 = arith.constant 0.000000e+00 : f32
    %431 = vector.broadcast %cst_219 : f32 to vector<16x512xf32>
    %432 = arith.maximumf %430, %431 : vector<16x512xf32>
    %433 = arith.truncf %432 : vector<16x512xf32> to vector<16x512xbf16>
    %c1_220 = arith.constant 1 : index
    %c1536_221 = arith.constant 1536 : index
    %c0_222 = arith.constant 0 : index
    %434 = vector.load %arg9[%c1_220, %c1536_221, %c0_222] : memref<2x2048x64xbf16, #tpu.memory_space<vmem>>, vector<1x512x64xbf16>
    %435 = vector.shape_cast %434 : vector<1x512x64xbf16> to vector<512x64xbf16>
    %cst_223 = arith.constant dense<0.000000e+00> : vector<16x64xf32>
    %436 = tpu.matmul %433, %435, %cst_223 {dimension_numbers = #tpu.dot_dimension_numbers<[1], [0], [0], [1], [0, 0, 1, 1], [], []>} : vector<16x512xbf16>, vector<512x64xbf16>, vector<16x64xf32> -> vector<16x64xf32>
    %437 = arith.addf %423, %436 : vector<16x64xf32>
    %c1_224 = arith.constant 1 : index
    %c0_225 = arith.constant 0 : index
    %c0_226 = arith.constant 0 : index
    %438 = vector.load %arg10[%c1_224, %c0_225, %c0_226] : memref<2x1x64xf32, #tpu.memory_space<vmem>>, vector<1x1x64xf32>
    %439 = vector.shape_cast %438 : vector<1x1x64xf32> to vector<1x64xf32>
    %440 = vector.broadcast %439 : vector<1x64xf32> to vector<16x64xf32>
    %441 = arith.addf %437, %440 : vector<16x64xf32>
    %442 = arith.addf %379, %441 : vector<16x64xf32>
    %c1_227 = arith.constant 1 : index
    %c0_228 = arith.constant 0 : index
    %c0_229 = arith.constant 0 : index
    %443 = vector.load %arg13[%c1_227, %c0_228, %c0_229] : memref<2x1x64xf32, #tpu.memory_space<vmem>>, vector<1x1x64xf32>
    %444 = vector.shape_cast %443 : vector<1x1x64xf32> to vector<1x64xf32>
    %c1_230 = arith.constant 1 : index
    %c0_231 = arith.constant 0 : index
    %c0_232 = arith.constant 0 : index
    %445 = vector.load %arg14[%c1_230, %c0_231, %c0_232] : memref<2x1x64xf32, #tpu.memory_space<vmem>>, vector<1x1x64xf32>
    %446 = vector.shape_cast %445 : vector<1x1x64xf32> to vector<1x64xf32>
    %cst_233 = arith.constant dense<0.000000e+00> : vector<16xf32>
    %447 = vector.multi_reduction <add>, %442, %cst_233 [1] : vector<16x64xf32> to vector<16xf32>
    %448 = vector.shape_cast %447 : vector<16xf32> to vector<16x1xf32>
    %cst_234 = arith.constant 6.400000e+01 : f32
    %449 = vector.broadcast %cst_234 : f32 to vector<16x1xf32>
    %450 = arith.divf %448, %449 : vector<16x1xf32>
    %451 = vector.broadcast %450 : vector<16x1xf32> to vector<16x64xf32>
    %452 = arith.subf %442, %451 : vector<16x64xf32>
    %453 = arith.mulf %452, %452 : vector<16x64xf32>
    %cst_235 = arith.constant dense<0.000000e+00> : vector<16xf32>
    %454 = vector.multi_reduction <add>, %453, %cst_235 [1] : vector<16x64xf32> to vector<16xf32>
    %455 = vector.shape_cast %454 : vector<16xf32> to vector<16x1xf32>
    %cst_236 = arith.constant 6.400000e+01 : f32
    %456 = vector.broadcast %cst_236 : f32 to vector<16x1xf32>
    %457 = arith.divf %455, %456 : vector<16x1xf32>
    %458 = vector.broadcast %450 : vector<16x1xf32> to vector<16x64xf32>
    %459 = arith.subf %442, %458 : vector<16x64xf32>
    %cst_237 = arith.constant 9.99999974E-6 : f32
    %460 = vector.broadcast %cst_237 : f32 to vector<16x1xf32>
    %461 = arith.addf %457, %460 : vector<16x1xf32>
    %462 = math.rsqrt %461 : vector<16x1xf32>
    %463 = vector.broadcast %462 : vector<16x1xf32> to vector<16x64xf32>
    %464 = arith.mulf %459, %463 : vector<16x64xf32>
    %465 = vector.broadcast %444 : vector<1x64xf32> to vector<16x64xf32>
    %466 = arith.mulf %464, %465 : vector<16x64xf32>
    %467 = vector.broadcast %446 : vector<1x64xf32> to vector<16x64xf32>
    %468 = arith.addf %466, %467 : vector<16x64xf32>
    %c0_238 = arith.constant 0 : index
    %c0_239 = arith.constant 0 : index
    %469 = vector.load %arg15[%c0_238, %c0_239] : memref<1x64xf32, #tpu.memory_space<vmem>>, vector<1x64xf32>
    %470 = vector.broadcast %469 : vector<1x64xf32> to vector<16x64xf32>
    %471 = arith.mulf %468, %470 : vector<16x64xf32>
    %cst_240 = arith.constant dense<0.000000e+00> : vector<16xf32>
    %472 = vector.multi_reduction <add>, %471, %cst_240 [1] : vector<16x64xf32> to vector<16xf32>
    %473 = vector.shape_cast %472 : vector<16xf32> to vector<16x1xf32>
    %c0_241 = arith.constant 0 : index
    %c0_242 = arith.constant 0 : index
    %474 = vector.load %arg16[%c0_241, %c0_242] : memref<1x1xf32, #tpu.memory_space<vmem>>, vector<1x1xf32>
    %475 = vector.broadcast %474 : vector<1x1xf32> to vector<16x1xf32>
    %476 = arith.addf %473, %475 : vector<16x1xf32>
    %477 = vector.shape_cast %476 : vector<16x1xf32> to vector<16xf32>
    %c0_243 = arith.constant 0 : index
    %c0_244 = arith.constant 0 : index
    %c0_245 = arith.constant 0 : index
    %478 = vector.load %arg17[%c0_243, %c0_244, %c0_245] : memref<1x1x16xf32, #tpu.memory_space<vmem>>, vector<1x1x16xf32>
    %479 = vector.shape_cast %478 : vector<1x1x16xf32> to vector<16xf32>
    %480 = vector.shape_cast %477 : vector<16xf32> to vector<1x1x16xf32>
    tpu.vector_store %arg17[%c0_243, %c0_244, %c0_245], %480 {strides = array<i32>} : memref<1x1x16xf32, #tpu.memory_space<vmem>>, vector<1x1x16xf32>,
    return
  }
  func.func @transform_0(%arg0: i32) -> (i32, i32, i32) {
    %c0_i32 = arith.constant 0 : i32
    %c0_i32_0 = arith.constant 0 : i32
    %c0_i32_1 = arith.constant 0 : i32
    return %c0_i32, %arg0, %c0_i32_0 : i32, i32, i32
  }
  func.func @transform_1(%arg0: i32) -> (i32, i32) {
    %c0_i32 = arith.constant 0 : i32
    %c0_i32_0 = arith.constant 0 : i32
    %c0_i32_1 = arith.constant 0 : i32
    return %c0_i32, %c0_i32_0 : i32, i32
  }
  func.func @transform_2(%arg0: i32) -> (i32, i32, i32) {
    %c0_i32 = arith.constant 0 : i32
    %c0_i32_0 = arith.constant 0 : i32
    %c0_i32_1 = arith.constant 0 : i32
    %c0_i32_2 = arith.constant 0 : i32
    return %c0_i32, %c0_i32_0, %c0_i32_1 : i32, i32, i32
  }
  func.func @transform_3(%arg0: i32) -> (i32, i32, i32) {
    %c0_i32 = arith.constant 0 : i32
    %c0_i32_0 = arith.constant 0 : i32
    %c0_i32_1 = arith.constant 0 : i32
    %c0_i32_2 = arith.constant 0 : i32
    return %c0_i32, %c0_i32_0, %c0_i32_1 : i32, i32, i32
  }
  func.func @transform_4(%arg0: i32) -> (i32, i32, i32) {
    %c0_i32 = arith.constant 0 : i32
    %c0_i32_0 = arith.constant 0 : i32
    %c0_i32_1 = arith.constant 0 : i32
    %c0_i32_2 = arith.constant 0 : i32
    return %c0_i32, %c0_i32_0, %c0_i32_1 : i32, i32, i32
  }
  func.func @transform_5(%arg0: i32) -> (i32, i32, i32) {
    %c0_i32 = arith.constant 0 : i32
    %c0_i32_0 = arith.constant 0 : i32
    %c0_i32_1 = arith.constant 0 : i32
    %c0_i32_2 = arith.constant 0 : i32
    return %c0_i32, %c0_i32_0, %c0_i32_1 : i32, i32, i32
  }
  func.func @transform_6(%arg0: i32) -> (i32, i32, i32) {
    %c0_i32 = arith.constant 0 : i32
    %c0_i32_0 = arith.constant 0 : i32
    %c0_i32_1 = arith.constant 0 : i32
    %c0_i32_2 = arith.constant 0 : i32
    return %c0_i32, %c0_i32_0, %c0_i32_1 : i32, i32, i32
  }
  func.func @transform_7(%arg0: i32) -> (i32, i32, i32) {
    %c0_i32 = arith.constant 0 : i32
    %c0_i32_0 = arith.constant 0 : i32
    %c0_i32_1 = arith.constant 0 : i32
    %c0_i32_2 = arith.constant 0 : i32
    return %c0_i32, %c0_i32_0, %c0_i32_1 : i32, i32, i32
  }
  func.func @transform_8(%arg0: i32) -> (i32, i32, i32) {
    %c0_i32 = arith.constant 0 : i32
    %c0_i32_0 = arith.constant 0 : i32
    %c0_i32_1 = arith.constant 0 : i32
    %c0_i32_2 = arith.constant 0 : i32
    return %c0_i32, %c0_i32_0, %c0_i32_1 : i32, i32, i32
  }
  func.func @transform_9(%arg0: i32) -> (i32, i32, i32) {
    %c0_i32 = arith.constant 0 : i32
    %c0_i32_0 = arith.constant 0 : i32
    %c0_i32_1 = arith.constant 0 : i32
    %c0_i32_2 = arith.constant 0 : i32
    return %c0_i32, %c0_i32_0, %c0_i32_1 : i32, i32, i32
  }
  func.func @transform_10(%arg0: i32) -> (i32, i32, i32) {
    %c0_i32 = arith.constant 0 : i32
    %c0_i32_0 = arith.constant 0 : i32
    %c0_i32_1 = arith.constant 0 : i32
    %c0_i32_2 = arith.constant 0 : i32
    return %c0_i32, %c0_i32_0, %c0_i32_1 : i32, i32, i32
  }
  func.func @transform_11(%arg0: i32) -> (i32, i32, i32) {
    %c0_i32 = arith.constant 0 : i32
    %c0_i32_0 = arith.constant 0 : i32
    %c0_i32_1 = arith.constant 0 : i32
    %c0_i32_2 = arith.constant 0 : i32
    return %c0_i32, %c0_i32_0, %c0_i32_1 : i32, i32, i32
  }
  func.func @transform_12(%arg0: i32) -> (i32, i32, i32) {
    %c0_i32 = arith.constant 0 : i32
    %c0_i32_0 = arith.constant 0 : i32
    %c0_i32_1 = arith.constant 0 : i32
    %c0_i32_2 = arith.constant 0 : i32
    return %c0_i32, %c0_i32_0, %c0_i32_1 : i32, i32, i32
  }
  func.func @transform_13(%arg0: i32) -> (i32, i32, i32) {
    %c0_i32 = arith.constant 0 : i32
    %c0_i32_0 = arith.constant 0 : i32
    %c0_i32_1 = arith.constant 0 : i32
    %c0_i32_2 = arith.constant 0 : i32
    return %c0_i32, %c0_i32_0, %c0_i32_1 : i32, i32, i32
  }
  func.func @transform_14(%arg0: i32) -> (i32, i32) {
    %c0_i32 = arith.constant 0 : i32
    %c0_i32_0 = arith.constant 0 : i32
    %c0_i32_1 = arith.constant 0 : i32
    return %c0_i32, %c0_i32_0 : i32, i32
  }
  func.func @transform_15(%arg0: i32) -> (i32, i32) {
    %c0_i32 = arith.constant 0 : i32
    %c0_i32_0 = arith.constant 0 : i32
    %c0_i32_1 = arith.constant 0 : i32
    return %c0_i32, %c0_i32_0 : i32, i32
  }
  func.func @transform_16(%arg0: i32) -> (i32, i32, i32) {
    %c0_i32 = arith.constant 0 : i32
    %c0_i32_0 = arith.constant 0 : i32
    %c0_i32_1 = arith.constant 0 : i32
    return %arg0, %c0_i32, %c0_i32_0 : i32, i32, i32
  }
}

</mosaic_0001>

<bundles_post_ra>
// kernel: tpu_custom_call.1
= control target key start
LH: loop header
LB: loop body
LE: loop exit
PB: predicated region body
PF: predicated region fallthrough
CT: control target
= control target key end

     0   :  { %s12190_s0 = inlined_call_operand.vmem [shape: f32[8,2,64], index: 0, kind: input, shape index: {}]   ;;  %s12191_s1 = inlined_call_operand.vmem [shape: f32[16,16], index: 1, kind: input, shape index: {}]   ;;  %s12192_s2 = inlined_call_operand.vmem [shape: bf16[2,64,192], index: 2, kind: input, shape index: {}]   ;;  %s12193_s3 = inlined_call_operand.vmem [shape: f32[2,1,192], index: 3, kind: input, shape index: {}]   ;;  %s12194_s4 = inlined_call_operand.vmem [shape: bf16[2,64,64], index: 4, kind: input, shape index: {}]   ;;  %s12195_s5 = inlined_call_operand.vmem [shape: f32[2,1,64], index: 5, kind: input, shape index: {}]   ;;  %s12196_s6 = inlined_call_operand.vmem [shape: bf16[2,64,2048], index: 6, kind: input, shape index: {}]   ;;  %s12197_s7 = inlined_call_operand.vmem [shape: f32[2,1,2048], index: 7, kind: input, shape index: {}]   ;;  %s12198_s8 = inlined_call_operand.vmem [shape: bf16[2,2048,64], index: 8, kind: input, shape index: {}]   ;;  %s12199_s9 = inlined_call_operand.vmem [shape: f32[2,1,64], index: 9, kind: input, shape index: {}]   ;;  %s12200_s10 = inlined_call_operand.vmem [shape: f32[2,1,64], index: 10, kind: input, shape index: {}]   ;;  %s12201_s11 = inlined_call_operand.vmem [shape: f32[2,1,64], index: 11, kind: input, shape index: {}]   ;;  %s12202_s12 = inlined_call_operand.vmem [shape: f32[2,1,64], index: 12, kind: input, shape index: {}]   ;;  %s12203_s13 = inlined_call_operand.vmem [shape: f32[2,1,64], index: 13, kind: input, shape index: {}]   ;;  %s12204_s14 = inlined_call_operand.vmem [shape: f32[1,64], index: 14, kind: input, shape index: {}]   ;;  %s12205_s15 = inlined_call_operand.<no memory space> [shape: f32[1,1], index: 15, kind: input, shape index: {}]   ;;  %s12206_s16 = inlined_call_operand.hbm [shape: f32[1,1,16], index: 16, kind: output, shape index: {}]  }
   0x1   :  { %12213 = sst [smem:[#allocation6_spill]] %s12190_s0  ;;  %v21_v0 = vstv %s12205_s15 }
   0x2   :  { %22 = vst [vmem:[#allocation2] sm:$0x1] %v21_v0 }
   0x3   :  { %v9419_v1 = vld [vmem:[%s12192_s2 + $0x34] ss:$8 sps:$4 sm:$0xff]   ;;  %v80_v2 = vlaneseq  ;;  %v9421_v3 = vld [vmem:[%s12192_s2 + $0x30] ss:$8 sps:$4 sm:$0xff]   ;;  %v9819_v4 = vmov 0   ;;  %s12214_s21 = sld [smem:[#allocation6_spill]] }
   0x4   :  { %208 = vmatprep.mubr.bf16.mxu0 %v9819_v4  ;;  %9417 = vset.pattern.permute.xlu1 %v9819_v4  ;;  %v9422_v5 = vld [vmem:[%s12192_s2 + $0x24] ss:$8 sps:$4 sm:$0xff]   ;;  %v9820_v6 = vmov 1983009808   ;;  %v9424_v9 = vld [vmem:[%s12192_s2 + $0x20] ss:$8 sps:$4 sm:$0xff]  }
   0x5   :  { %184 = vmatprep.subr.bf16.mxu0 %v9419_v1  ;;  %v78_v7 = vunpack.c.l.s4 %v9820_v6  ;;  %v9935_v8 = vshrl.u32 %v80_v2, 7  ;;  %9418 = vset.pattern.permute.xlu0 %v9819_v4  ;;  %v9425_v10 = vld [vmem:[%s12192_s2 + $0x14] ss:$8 sps:$4 sm:$0xff]   ;;  %v9427_v12 = vld [vmem:[%s12192_s2 + $0x10] ss:$8 sps:$4 sm:$0xff]   ;;  %vm172_vm0 = vcmask 523264  }
   0x6   :  { %185 = vmatpush1.bf16.msra.mxu0 %v9421_v3  ;;  %v9428_v24 = vld [vmem:[%s12192_s2 + $0x4] ss:$8 sps:$4 sm:$0xff]   ;;  %v9430_v28 = vld [vmem:[%s12192_s2] ss:$8 sps:$4 sm:$0xff]  }
   0x7   :  { %186 = vmatprep.subr.bf16.mxu0 %v9422_v5  ;;  %v79_v11 = vunpack.c.0.s8 %v78_v7 }
   0x9   :  { %v57_v13 = vld [vmem:[%s12214_s21] sm:$0x3]  ;;  %v58_v14 = vld [vmem:[%s12214_s21 + $0x2] sm:$0x3]  ;;  %v59_v15 = vld [vmem:[%s12214_s21 + $0x4] sm:$0x3]  ;;  %v9963_v19 = vsub.s32 %v79_v11, %v9935_v8 }
   0xa   :  { %v60_v16 = vld [vmem:[%s12214_s21 + $0x6] sm:$0x3]  ;;  %v61_v17 = vld [vmem:[%s12214_s21 + $0x8] sm:$0x3]  ;;  %v75_v18 = vcombine.low %v57_v13, %v58_v14  ;;  %187 = vmatpush1.bf16.msra.mxu0 %v9424_v9  ;;  %v62_v20 = vld [vmem:[%s12214_s21 + $0xa] sm:$0x3] }
   0xb   :  { %v63_v21 = vld [vmem:[%s12214_s21 + $0xc] sm:$0x3]  ;;  %v64_v22 = vld [vmem:[%s12214_s21 + $0xe] sm:$0x3]  ;;  %v76_v23 = vcombine.low %v59_v15, %v60_v16  ;;  %188 = vmatprep.subr.bf16.mxu0 %v9425_v10  ;;  %v92_v26 = vcombine.low %v61_v17, %v62_v20 }
   0xc   :  { %v83_v25 = vrot.slane %v75_v18, %v9963_v19  ;;  %v93_v27 = vcombine.low %v63_v21, %v64_v22 }
   0xd   :  { %v90_v29 = vrot.slane %v76_v23, %v9963_v19  ;;  %v100_v30 = vrot.slane %v92_v26, %v9963_v19 }
   0xe   :  { %v107_v31 = vrot.slane %v93_v27, %v9963_v19  ;;  %189 = vmatpush1.bf16.msra.mxu0 %v9427_v12 }
   0xf   :  { %v91_v32 = vcombine.low %v83_v25, %v90_v29  ;;  %190 = vmatprep.subr.bf16.mxu0 %v9428_v24 }
  0x10   :  { %v108_v33 = vcombine.low %v100_v30, %v107_v31 }
  0x12   :  { %v111_v34 = vpack.c.bf16 %v108_v33, %v91_v32  ;;  %191 = vmatpush1.bf16.msra.mxu0 %v9430_v28 }
  0x15   :  { %8054 = vmatmul.mubr.msk.bf16.vlgmr.msra.gmra.mxu0 %vm172_vm0, %v111_v34 }
  0x16   :  { %23 = vsyncpa [#allocation4], 0  ;;  %v9821_v35 = vmov 0.0   ;;  %v9988_v36 = vsub.s32 0, %v9935_v8  ;;  %v120_v37 = vld [vmem:[%s12193_s3] sm:$0x3] }
  0x17   :  { %9257 = vmatprep.subr.bf16.mxu1 %v9821_v35  ;;  %9269 = vmatprep.subr.bf16.mxu0 %v9821_v35  ;;  %vm9822_vm1 = vmmov 0   ;;  %s9823_s27 = smov 112   ;;  %s9824_s28 = smov 64   ;;  %v10007_v45 = vsub.s32 1, %v9935_v8  ;;  %vm224_vm2 = vcmask 130048   ;;  %v10028_v56 = vld [vmem:[%s12191_s1] sm:$0xff] }
  0x18   :  { %v125_v39 = vrot.slane %v120_v37, %v9988_v36  ;;  %9259 = vmatprep.mubr.msk.bf16.mxu1 %vm9822_vm1, %v9821_v35  ;;  %9271 = vmatprep.mubr.msk.bf16.mxu0 %vm9822_vm1, %v9821_v35  ;;  %s9825_s15 = smov 48   ;;  %v10034_v60 = vld [vmem:[%s12191_s1 + $0x8] sm:$0xff]  ;;  %s9826_s18 = smov 32   ;;  %vm8027_vm3 = vcmask 130112   ;;  %vm8030_vm4 = vcmask 122880  }
  0x19   :  { %v129_v49 = vrot.slane %v120_v37, %v10007_v45  ;;  %s12211_s19 = smov 96   ;;  %s12209_s25 = smov 80  }
  0x1a   :  { %s12208_s26 = smov 16   ;;  %s12216_s30 = smov 80  }
  0x1b   :  { %s12217_s0 = smov 16  }
  0xd5   :  { %v210_v38 = vpop.f32.mrf.mxu0 }
  0xd6   :  { %v211_v42 = vadd.f32 %v210_v38, %v125_v39 }
  0xd7   :  { %v212_v40 = vpop.f32.mrf.mxu0 }
  0xd8   :  { %v213_v53 = vadd.f32 %v212_v40, %v129_v49 }
  0xd9   :  { %v214_v41 = vpop.f32.mrf.mxu0 }
  0xda   :  { %v215_v43 = vadd.f32 %v214_v41, %v125_v39 }
  0xdb   :  { %v216_v47 = vpop.f32.mrf.mxu0 }
  0xdc   :  { %v9998_v44 = vpack.c.bf16 %v215_v43, %v211_v42  ;;  %v217_v50 = vadd.f32 %v216_v47, %v129_v49 }
  0xde   :  { %344 = vrot.lane.b32.xlu1 %v9998_v44, %s9823_s27  ;;  %222 = vrot.lane.b32.xlu0 %v9998_v44, %s9824_s28  ;;  %v10014_v54 = vpack.c.bf16 %v217_v50, %v213_v53  ;;  %v9431_v53 = vld [vmem:[%s12194_s4] sm:$0xff]  }
  0xe2   :  { %346 = vrot.lane.b32.xlu0 %v9998_v44, %s9825_s15 }
 0x150   :  { %v223_v46 = vpop.permute.xlu0 %222  ;;  %v345_v55 = vpop.permute.xlu1 %344 }
 0x151   :  { %v229_v48 = vsel %vm224_vm2, %v223_v46, 0 }
 0x152   :  { %9258 = vmatpush3.bf16.xpose.msra.mxu1 %v229_v48 }
 0x153   :  { %9263 = vmatprep.subr.bf16.mxu1 %v9821_v35 }
 0x154   :  { %v347_v51 = vpop.permute.xlu0 %346 }
 0x155   :  { %v352_v52 = vsel %vm224_vm2, %v347_v51, 0 }
 0x156   :  { %9270 = vmatpush3.bf16.xpose.msra.mxu0 %v352_v52 }
 0x157   :  { %9281 = vmatprep.subr.bf16.mxu0 %v9821_v35 }
 0x159   :  { %9260 = vmatmul.mubr.msk.bf16.vlgmr.msra.gmra.mxu1 %vm224_vm2, %v9998_v44 }
 0x15a   :  { %9264 = vmatpush3.bf16.msra.mxu1 %v10014_v54  ;;  %9265 = vmatprep.mubr.msk.bf16.mxu1 %vm9822_vm1, %v9821_v35 }
 0x15b   :  { %9275 = vmatprep.subr.bf16.mxu1 %v9821_v35 }
 0x15d   :  { %9272 = vmatmul.mubr.msk.bf16.vlgmr.msra.gmra.mxu0 %vm224_vm2, %v345_v55  ;;  %v9432_v55 = vld [vmem:[%s12194_s4 + $0x8] sm:$0xff]  }
 0x15e   :  { %9283 = vmatprep.mubr.msk.bf16.mxu0 %vm9822_vm1, %v9821_v35  ;;  %9282 = vmatpush3.bf16.msra.mxu0 %v9432_v55 }
 0x15f   :  { %9293 = vmatprep.subr.bf16.mxu0 %v9821_v35 }
 0x219   :  { %v265_v57 = vpop.f32.mrf.mxu1 }
 0x21a   :  { %v266_v58 = vadd.f32 %v265_v57, %v10028_v56 }
 0x21b   :  { %v9261_v59 = vpop.f32.mrf.mxu1 }
 0x21c   :  { %v272_v61 = vsel %vm224_vm2, %v266_v58, -inf }
 0x21d   :  { %273 = vmax.xlane.f32.xlu1 %v272_v61  ;;  %v268_v62 = vpop.f32.mrf.mxu1  ;;  %v388_v63 = vpop.f32.mrf.mxu0 }
 0x21e   :  { %v269_v0 = vadd.f32 %v268_v62, %v10034_v60  ;;  %v389_v5 = vadd.f32 %v388_v63, %v10028_v56 }
 0x21f   :  { %v9262_v1 = vpop.f32.mrf.mxu1  ;;  %v9273_v3 = vpop.f32.mrf.mxu0 }
 0x220   :  { %v275_v6 = vsel %vm224_vm2, %v269_v0, -inf  ;;  %v395_v11 = vsel %vm224_vm2, %v389_v5, -inf }
 0x221   :  { %276 = vmax.xlane.f32.xlu0 %v275_v6  ;;  %v391_v7 = vpop.f32.mrf.mxu0 }
 0x222   :  { %v392_v9 = vadd.f32 %v391_v7, %v10034_v60 }
 0x223   :  { %v9274_v10 = vpop.f32.mrf.mxu0 }
 0x224   :  { %v398_v12 = vsel %vm224_vm2, %v392_v9, -inf }
 0x225   :  { %396 = vmax.xlane.f32.xlu0 %v395_v11  ;;  %399 = vmax.xlane.f32.xlu1 %v398_v12 }
 0x2a6   :  { %v274_v13 = vpop.xlane.xlu1 %273 }
 0x2a7   :  { %v278_v14 = vsub.f32 %v266_v58, %v274_v13 }
 0x2a9   :  { %v280_v15 = vmul.f32 1.442695, %v278_v14 }
 0x2aa   :  { %v277_v16 = vpop.xlane.xlu0 %276 }
 0x2ab   :  { %9707 = vpow2.f32 %v280_v15  ;;  %v279_v17 = vsub.f32 %v269_v0, %v277_v16 }
 0x2ad   :  { %v282_v18 = vmul.f32 1.442695, %v279_v17 }
 0x2ae   :  { %v400_v20 = vpop.xlane.xlu1 %399  ;;  %v397_v21 = vpop.xlane.xlu0 %396 }
 0x2af   :  { %9709 = vpow2.f32 %v282_v18  ;;  %v402_v22 = vsub.f32 %v392_v9, %v400_v20  ;;  %v401_v23 = vsub.f32 %v389_v5, %v397_v21 }
 0x2b1   :  { %v405_v24 = vmul.f32 1.442695, %v402_v22  ;;  %v403_v25 = vmul.f32 1.442695, %v401_v23 }
 0x2b3   :  { %9711 = vpow2.f32 %v405_v24 }
 0x2b4   :  { %9713 = vpow2.f32 %v403_v25 }
 0x2b8   :  { %v9708_v26 = vpop.eup %9707 }
 0x2b9   :  { %v284_v27 = vsel %vm224_vm2, %v9708_v26, 0.0 }
 0x2ba   :  { %285 = vadd.xlane.f32.xlu0 %v284_v27 }
 0x2bc   :  { %v9710_v28 = vpop.eup %9709 }
 0x2bd   :  { %v287_v29 = vsel %vm224_vm2, %v9710_v28, 0.0 }
 0x2be   :  { %288 = vadd.xlane.f32.xlu1 %v287_v29 }
 0x2c0   :  { %v9712_v30 = vpop.eup %9711 }
 0x2c1   :  { %v9714_v31 = vpop.eup %9713  ;;  %v410_v32 = vsel %vm224_vm2, %v9712_v30, 0.0 }
 0x2c2   :  { %411 = vadd.xlane.f32.xlu1 %v410_v32  ;;  %v407_v33 = vsel %vm224_vm2, %v9714_v31, 0.0 }
 0x2c3   :  { %408 = vadd.xlane.f32.xlu0 %v407_v33 }
 0x2d3   :  { %573 = vrot.lane.b32.xlu1 %v9998_v44, %s9826_s18 }
 0x2d7   :  { %571 = vrot.lane.b32.xlu1 %v9998_v44, %s12211_s19 }
 0x2d9   :  { %421 = vrot.lane.b32.xlu0 %v10014_v54, %s9823_s27 }
 0x343   :  { %v286_v34 = vpop.xlane.xlu0 %285 }
 0x344   :  { %9715 = vrcp.f32 %v286_v34 }
 0x347   :  { %v289_v37 = vpop.xlane.xlu1 %288 }
 0x348   :  { %9717 = vrcp.f32 %v289_v37 }
 0x34b   :  { %v412_v38 = vpop.xlane.xlu1 %411 }
 0x34c   :  { %9719 = vrcp.f32 %v412_v38  ;;  %v409_v39 = vpop.xlane.xlu0 %408 }
 0x34d   :  { %9721 = vrcp.f32 %v409_v39 }
 0x34f   :  { %v574_v1 = vpop.permute.xlu1 %573 }
 0x350   :  { %v422_v49 = vpop.permute.xlu0 %421  ;;  %v579_v7 = vsel %vm224_vm2, %v574_v1, 0 }
 0x351   :  { %v9716_v40 = vpop.eup %9715 }
 0x352   :  { %v294_v42 = vmul.f32 %v9716_v40, %v9708_v26 }
 0x353   :  { %v572_v9 = vpop.permute.xlu1 %571 }
 0x355   :  { %v9718_v41 = vpop.eup %9717 }
 0x356   :  { %v295_v43 = vmul.f32 %v9718_v41, %v9710_v28 }
 0x358   :  { %v296_v46 = vpack.c.bf16 %v295_v43, %v294_v42 }
 0x359   :  { %v9720_v47 = vpop.eup %9719 }
 0x35a   :  { %v9722_v48 = vpop.eup %9721  ;;  %9266 = vmatmul.mubr.msk.bf16.vlgmr.msra.gmra.mxu1 %vm224_vm2, %v296_v46  ;;  %v418_v51 = vmul.f32 %v9720_v47, %v9712_v30 }
 0x35b   :  { %9276 = vmatpush3.bf16.msra.mxu1 %v422_v49  ;;  %9277 = vmatprep.mubr.msk.bf16.mxu1 %vm9822_vm1, %v9821_v35  ;;  %v417_v50 = vmul.f32 %v9722_v48, %v9714_v31 }
 0x35c   :  { %9287 = vmatprep.subr.bf16.mxu1 %v9821_v35 }
 0x35d   :  { %v419_v52 = vpack.c.bf16 %v418_v51, %v417_v50 }
 0x362   :  { %9278 = vmatmul.mubr.msk.bf16.vlgmr.msra.gmra.mxu1 %vm224_vm2, %v419_v52 }
 0x363   :  { %9289 = vmatprep.mubr.msk.bf16.mxu1 %vm9822_vm1, %v9821_v35  ;;  %9288 = vmatpush3.bf16.msra.mxu1 %v9431_v53  ;;  %v9433_v53 = vld [vmem:[%s12194_s4 + $0x10] sm:$0xff]  }
 0x364   :  { %9299 = vmatprep.subr.bf16.mxu1 %v9821_v35 }
 0x41a   :  { %v334_v57 = vpop.f32.mrf.mxu1 }
 0x41c   :  { %v9267_v58 = vpop.f32.mrf.mxu1 }
 0x41e   :  { %v337_v59 = vpop.f32.mrf.mxu1 }
 0x41f   :  { %v341_v61 = vpack.c.bf16 %v337_v59, %v334_v57 }
 0x420   :  { %v9268_v62 = vpop.f32.mrf.mxu1 }
 0x421   :  { %9290 = vmatmul.mubr.msk.bf16.vlgmr.msra.gmra.mxu1 %vm224_vm2, %v341_v61 }
 0x422   :  { %v461_v63 = vpop.f32.mrf.mxu1  ;;  %9301 = vmatprep.mubr.msk.bf16.mxu1 %vm9822_vm1, %v9821_v35 }
 0x424   :  { %v9279_v0 = vpop.f32.mrf.mxu1 }
 0x426   :  { %v464_v3 = vpop.f32.mrf.mxu1 }
 0x427   :  { %v468_v5 = vpack.c.bf16 %v464_v3, %v461_v63 }
 0x428   :  { %v9280_v6 = vpop.f32.mrf.mxu1 }
 0x429   :  { %9284 = vmatmul.mubr.msk.bf16.vlgmr.msra.gmra.mxu0 %vm224_vm2, %v468_v5 }
 0x42a   :  { %9294 = vmatpush3.bf16.xpose.msra.mxu0 %v579_v7  ;;  %9295 = vmatprep.mubr.msk.bf16.mxu0 %vm9822_vm1, %v9821_v35 }
 0x42b   :  { %9305 = vmatprep.subr.bf16.mxu0 %v9821_v35 }
 0x431   :  { %9296 = vmatmul.mubr.msk.bf16.vlgmr.msra.gmra.mxu0 %vm224_vm2, %v572_v9 }
 0x432   :  { %9307 = vmatprep.mubr.msk.bf16.mxu0 %vm9822_vm1, %v9821_v35  ;;  %9306 = vmatpush3.bf16.msra.mxu0 %v9433_v53 }
 0x433   :  { %9317 = vmatprep.subr.bf16.mxu0 %v9821_v35 }
 0x4e1   :  { %v564_v10 = vpop.f32.mrf.mxu1 }
 0x4e3   :  { %v9291_v11 = vpop.f32.mrf.mxu1 }
 0x4e5   :  { %v567_v12 = vpop.f32.mrf.mxu1 }
 0x4e7   :  { %v9292_v13 = vpop.f32.mrf.mxu1 }
 0x4e9   :  { %v514_v14 = vpop.f32.mrf.mxu0 }
 0x4ea   :  { %v10079_v15 = vadd.f32 %v564_v10, %v514_v14 }
 0x4eb   :  { %v9285_v16 = vpop.f32.mrf.mxu0 }
 0x4ed   :  { %v517_v17 = vpop.f32.mrf.mxu0 }
 0x4ee   :  { %v10081_v18 = vadd.f32 %v567_v12, %v517_v17 }
 0x4ef   :  { %v9286_v20 = vpop.f32.mrf.mxu0 }
 0x4f1   :  { %v615_v21 = vpop.f32.mrf.mxu0 }
 0x4f2   :  { %v616_v22 = vadd.f32 %v615_v21, %v10028_v56 }
 0x4f3   :  { %v9297_v23 = vpop.f32.mrf.mxu0 }
 0x4f4   :  { %v622_v24 = vsel %vm224_vm2, %v616_v22, -inf }
 0x4f5   :  { %623 = vmax.xlane.f32.xlu0 %v622_v24  ;;  %v618_v25 = vpop.f32.mrf.mxu0 }
 0x4f6   :  { %v619_v26 = vadd.f32 %v618_v25, %v10034_v60 }
 0x4f7   :  { %v9298_v27 = vpop.f32.mrf.mxu0 }
 0x4f8   :  { %v625_v28 = vsel %vm224_vm2, %v619_v26, -inf }
 0x4f9   :  { %626 = vmax.xlane.f32.xlu1 %v625_v28 }
 0x50a   :  { %647 = vrot.lane.b32.xlu1 %v10014_v54, %s12211_s19 }
 0x50e   :  { %749 = vrot.lane.b32.xlu1 %v9998_v44, %s12209_s25 }
 0x57e   :  { %v624_v29 = vpop.xlane.xlu0 %623 }
 0x57f   :  { %v628_v30 = vsub.f32 %v616_v22, %v624_v29 }
 0x581   :  { %v630_v31 = vmul.f32 1.442695, %v628_v30 }
 0x582   :  { %v627_v32 = vpop.xlane.xlu1 %626 }
 0x583   :  { %9723 = vpow2.f32 %v630_v31  ;;  %v629_v33 = vsub.f32 %v619_v26, %v627_v32 }
 0x585   :  { %v632_v34 = vmul.f32 1.442695, %v629_v33 }
 0x586   :  { %v648_v37 = vpop.permute.xlu1 %647 }
 0x587   :  { %9725 = vpow2.f32 %v632_v34  ;;  %9300 = vmatpush3.bf16.msra.mxu1 %v648_v37 }
 0x588   :  { %9311 = vmatprep.subr.bf16.mxu1 %v9821_v35 }
 0x590   :  { %v9724_v38 = vpop.eup %9723 }
 0x591   :  { %v634_v39 = vsel %vm224_vm2, %v9724_v38, 0.0 }
 0x592   :  { %635 = vadd.xlane.f32.xlu0 %v634_v39 }
 0x594   :  { %v9726_v40 = vpop.eup %9725 }
 0x595   :  { %v637_v41 = vsel %vm224_vm2, %v9726_v40, 0.0 }
 0x596   :  { %638 = vadd.xlane.f32.xlu0 %v637_v41 }
 0x5ac   :  { %751 = vrot.lane.b32.xlu0 %v9998_v44, %s12208_s26  ;;  %v750_v44 = vpop.permute.xlu1 %749 }
 0x61b   :  { %v636_v42 = vpop.xlane.xlu0 %635 }
 0x61c   :  { %9727 = vrcp.f32 %v636_v42 }
 0x61f   :  { %v639_v43 = vpop.xlane.xlu0 %638 }
 0x620   :  { %9729 = vrcp.f32 %v639_v43 }
 0x623   :  { %v752_v50 = vpop.permute.xlu0 %751 }
 0x624   :  { %v757_v52 = vsel %vm224_vm2, %v752_v50, 0 }
 0x629   :  { %v9728_v46 = vpop.eup %9727 }
 0x62a   :  { %v644_v48 = vmul.f32 %v9728_v46, %v9724_v38 }
 0x62d   :  { %v9730_v47 = vpop.eup %9729 }
 0x62e   :  { %v645_v49 = vmul.f32 %v9730_v47, %v9726_v40  ;;  %v8071_v40 = vld [vmem:[%s12195_s5] ss:$0 sm:$0xff] }
 0x630   :  { %v646_v51 = vpack.c.bf16 %v645_v49, %v644_v48 }
 0x632   :  { %9302 = vmatmul.mubr.msk.bf16.vlgmr.msra.gmra.mxu1 %vm224_vm2, %v646_v51 }
 0x633   :  { %9312 = vmatpush3.bf16.xpose.msra.mxu1 %v757_v52  ;;  %9313 = vmatprep.mubr.msk.bf16.mxu1 %vm9822_vm1, %v9821_v35 }
 0x634   :  { %9323 = vmatprep.subr.bf16.mxu1 %v9821_v35 }
 0x63a   :  { %9314 = vmatmul.mubr.msk.bf16.vlgmr.msra.gmra.mxu1 %vm224_vm2, %v750_v44 }
 0x63b   :  { %9325 = vmatprep.mubr.msk.bf16.mxu1 %vm9822_vm1, %v9821_v35 }
 0x6f2   :  { %v687_v55 = vpop.f32.mrf.mxu1 }
 0x6f4   :  { %v9303_v57 = vpop.f32.mrf.mxu1 }
 0x6f6   :  { %v690_v58 = vpop.f32.mrf.mxu1 }
 0x6f7   :  { %v694_v59 = vpack.c.bf16 %v690_v58, %v687_v55  ;;  %v9787_v58 = vld [vmem:[%s12214_s21 + $0x2] sm:$0x3] }
 0x6f8   :  { %v9304_v61 = vpop.f32.mrf.mxu1 }
 0x6f9   :  { %9308 = vmatmul.mubr.msk.bf16.vlgmr.msra.gmra.mxu0 %vm224_vm2, %v694_v59  ;;  %v9788_v61 = vld [vmem:[%s12214_s21] sm:$0x3] }
 0x6fa   :  { %v793_v62 = vpop.f32.mrf.mxu1  ;;  %9319 = vmatprep.mubr.msk.bf16.mxu0 %vm9822_vm1, %v9821_v35 }
 0x6fb   :  { %v794_v63 = vadd.f32 %v793_v62, %v10028_v56 }
 0x6fc   :  { %v9315_v0 = vpop.f32.mrf.mxu1 }
 0x6fd   :  { %v800_v1 = vsel %vm224_vm2, %v794_v63, -inf }
 0x6fe   :  { %801 = vmax.xlane.f32.xlu1 %v800_v1  ;;  %v796_v3 = vpop.f32.mrf.mxu1  ;;  %v9789_v1 = vld [vmem:[%s12214_s21 + $0x4] sm:$0x3] }
 0x6ff   :  { %v797_v5 = vadd.f32 %v796_v3, %v10034_v60 }
 0x700   :  { %v9316_v6 = vpop.f32.mrf.mxu1 }
 0x701   :  { %v803_v7 = vsel %vm224_vm2, %v797_v5, -inf }
 0x702   :  { %804 = vmax.xlane.f32.xlu0 %v803_v7 }
 0x787   :  { %v802_v9 = vpop.xlane.xlu1 %801 }
 0x788   :  { %v806_v10 = vsub.f32 %v794_v63, %v802_v9 }
 0x78a   :  { %v808_v11 = vmul.f32 1.442695, %v806_v10  ;;  %v9791_v10 = vld [vmem:[%s12214_s21 + $0x8] sm:$0x3] }
 0x78b   :  { %v805_v12 = vpop.xlane.xlu0 %804 }
 0x78c   :  { %9731 = vpow2.f32 %v808_v11  ;;  %v807_v13 = vsub.f32 %v797_v5, %v805_v12  ;;  %v9790_v5 = vld [vmem:[%s12214_s21 + $0x6] sm:$0x3] }
 0x78e   :  { %v810_v14 = vmul.f32 1.442695, %v807_v13  ;;  %v9792_v13 = vld [vmem:[%s12214_s21 + $0xa] sm:$0x3] }
 0x790   :  { %9733 = vpow2.f32 %v810_v14 }
 0x799   :  { %v9732_v56 = vpop.eup %9731 }
 0x79a   :  { %v812_v16 = vsel %vm224_vm2, %v9732_v56, 0.0 }
 0x79b   :  { %813 = vadd.xlane.f32.xlu0 %v812_v16 }
 0x79d   :  { %v9734_v17 = vpop.eup %9733 }
 0x79e   :  { %v815_v20 = vsel %vm224_vm2, %v9734_v17, 0.0 }
 0x79f   :  { %816 = vadd.xlane.f32.xlu1 %v815_v20 }
 0x7b1   :  { %825 = vrot.lane.b32.xlu0 %v10014_v54, %s12209_s25  ;;  %v9434_v54 = vld [vmem:[%s12194_s4 + $0x18] sm:$0xff]  }
 0x7b2   :  { %9324 = vmatpush3.bf16.msra.mxu1 %v9434_v54  ;;  %v9832_v54 = vmov 1414812756  }
 0x7b9   :  { %v740_v60 = vpop.f32.mrf.mxu0 }
 0x7ba   :  { %v747_v21 = vadd.f32 %v740_v60, %v10079_v15  ;;  %v9794_v60 = vld [vmem:[%s12214_s21 + $0xe] sm:$0x3] }
 0x7bb   :  { %v9309_v22 = vpop.f32.mrf.mxu0 }
 0x7bd   :  { %v743_v23 = vpop.f32.mrf.mxu0 }
 0x7be   :  { %v748_v24 = vadd.f32 %v743_v23, %v10081_v18 }
 0x7bf   :  { %v9310_v25 = vpop.f32.mrf.mxu0 }
 0x824   :  { %v814_v26 = vpop.xlane.xlu0 %813 }
 0x825   :  { %9735 = vrcp.f32 %v814_v26 }
 0x828   :  { %v817_v27 = vpop.xlane.xlu1 %816  ;;  %v826_v28 = vpop.permute.xlu0 %825 }
 0x829   :  { %9737 = vrcp.f32 %v817_v27  ;;  %9318 = vmatpush3.bf16.msra.mxu0 %v826_v28 }
 0x832   :  { %v9736_v29 = vpop.eup %9735 }
 0x833   :  { %v822_v31 = vmul.f32 %v9736_v29, %v9732_v56  ;;  %v9793_v56 = vld [vmem:[%s12214_s21 + $0xc] sm:$0x3] }
 0x836   :  { %v9738_v30 = vpop.eup %9737 }
 0x837   :  { %v823_v32 = vmul.f32 %v9738_v30, %v9734_v17  ;;  %v9830_v30 = vmov 269488144  }
 0x839   :  { %v824_v33 = vpack.c.bf16 %v823_v32, %v822_v31  ;;  %v1046_v31 = vunpack.c.l.s4 %v9830_v30  ;;  %v9831_v32 = vmov 842150450   ;;  %v1382_v30 = vld [vmem:[%s12196_s6 + $0x1c0] sm:$0xff] }
 0x83b   :  { %9320 = vmatmul.mubr.msk.bf16.vlgmr.msra.gmra.mxu0 %vm224_vm2, %v824_v33  ;;  %v1053_v33 = vunpack.c.l.s4 %v9831_v32 }
 0x83c   :  { %1521 = vmatprep.mubr.bf16.mxu0 %v9819_v4 }
 0x8fb   :  { %v865_v15 = vpop.f32.mrf.mxu0 }
 0x8fd   :  { %v9321_v18 = vpop.f32.mrf.mxu0 }
 0x8fe   :  { %v9833_v18 = vmov 1987475062  }
 0x8ff   :  { %v868_v34 = vpop.f32.mrf.mxu0 }
 0x900   :  { %v872_v37 = vpack.c.bf16 %v868_v34, %v865_v15  ;;  %v1060_v15 = vunpack.c.l.s4 %v9832_v54  ;;  %v1067_v34 = vunpack.c.l.s4 %v9833_v18  ;;  %v1383_v54 = vld [vmem:[%s12196_s6 + $0x1c8] sm:$0xff]  ;;  %v1378_v18 = vld [vmem:[%s12196_s6 + $0x140] sm:$0xff] }
 0x901   :  { %v9322_v38 = vpop.f32.mrf.mxu0 }
 0x902   :  { %9326 = vmatmul.mubr.msk.bf16.vlgmr.msra.gmra.mxu1 %vm224_vm2, %v872_v37  ;;  %v1047_v37 = vunpack.c.0.s8 %v1046_v31  ;;  %v1054_v38 = vunpack.c.0.s8 %v1053_v33  ;;  %v1381_v31 = vld [vmem:[%s12196_s6 + $0x188] sm:$0xff] }
 0x903   :  { %1564 = vmatprep.mubr.bf16.mxu1 %v9819_v4 }
 0x9c2   :  { %v918_v39 = vpop.f32.mrf.mxu1 }
 0x9c3   :  { %v925_v41 = vadd.f32 %v918_v39, %v747_v21  ;;  %v1061_v39 = vunpack.c.0.s8 %v1060_v15  ;;  %v1376_v15 = vld [vmem:[%s12196_s6 + $0x100] sm:$0xff] }
 0x9c4   :  { %v9327_v42 = vpop.f32.mrf.mxu1 }
 0x9c5   :  { %v934_v43 = vadd.f32 %v8071_v40, %v925_v41  ;;  %v10166_v41 = vsub.s32 %v1047_v37, %v9935_v8  ;;  %v10169_v42 = vsub.s32 %v1054_v38, %v9935_v8  ;;  %v8089_v37 = vcombine.high %v1381_v31, %v1383_v54 }
 0x9c6   :  { %v921_v46 = vpop.f32.mrf.mxu1  ;;  %v8083_v38 = vcombine.high %v1376_v15, %v1378_v18 }
 0x9c7   :  { %v938_v47 = vcombine.high %v934_v43, %v934_v43  ;;  %v945_v48 = vrot.slane %v934_v43, %v9963_v19  ;;  %v926_v49 = vadd.f32 %v921_v46, %v748_v24  ;;  %v10172_v43 = vsub.s32 %v1061_v39, %v9935_v8  ;;  %v1377_v39 = vld [vmem:[%s12196_s6 + $0x108] sm:$0xff]  ;;  %1540 = vmatprep.subr.bf16.mxu1 %v8089_v37 }
 0x9c8   :  { %v9328_v50 = vpop.f32.mrf.mxu1 }
 0x9c9   :  { %v952_v51 = vrot.slane %v938_v47, %v9963_v19  ;;  %v953_v52 = vcombine.high %v945_v48, %v945_v48  ;;  %v935_v44 = vadd.f32 %v8071_v40, %v926_v49  ;;  %v980_v62 = vadd.f32 %v9788_v61, %v945_v48 }
 0x9ca   :  { %v1068_v40 = vunpack.c.0.s8 %v1067_v34  ;;  %v8088_v34 = vcombine.low %v1381_v31, %v1383_v54  ;;  %v8073_v31 = vld [vmem:[%s12201_s11] ss:$0 sm:$0xff] }
 0x9cb   :  { %v954_v53 = vcombine.high %v952_v51, %v952_v51  ;;  %v955_v55 = vcombine.high %v935_v44, %v935_v44  ;;  %v962_v57 = vrot.slane %v935_v44, %v9963_v19  ;;  %v981_v59 = vadd.f32 %v9787_v58, %v953_v52 }
 0x9cc   :  { %v982_v3 = vadd.f32 %v9789_v1, %v952_v51  ;;  %v10175_v46 = vsub.s32 %v1068_v40, %v9935_v8  ;;  %v1379_v40 = vld [vmem:[%s12196_s6 + $0x148] sm:$0xff]  ;;  %1541 = vmatpush1.bf16.msra.mxu1 %v8088_v34  ;;  %v1301_v34 = vrot.slane %v8073_v31, %v9963_v19 }
 0x9cd   :  { %v969_v63 = vrot.slane %v955_v55, %v9963_v19  ;;  %v970_v0 = vcombine.high %v962_v57, %v962_v57  ;;  %v983_v6 = vadd.f32 %v9790_v5, %v954_v53  ;;  %v998_v7 = vcombine.low %v980_v62, %v981_v59 }
 0x9ce   :  { %v984_v11 = vadd.f32 %v9791_v10, %v962_v57 }
 0x9cf   :  { %v971_v9 = vcombine.high %v969_v63, %v969_v63  ;;  %v999_v12 = vcombine.low %v982_v3, %v983_v6  ;;  %v985_v14 = vadd.f32 %v9792_v13, %v970_v0  ;;  %v986_v16 = vadd.f32 %v9793_v56, %v969_v63 }
 0x9d0   :  { %v1006_v17 = vrot.slane %v998_v7, %v9963_v19 }
 0x9d1   :  { %v1013_v20 = vrot.slane %v999_v12, %v9963_v19  ;;  %v987_v21 = vadd.f32 %v9794_v60, %v971_v9  ;;  %v1015_v22 = vcombine.low %v984_v11, %v985_v14 }
 0x9d3   :  { %v1014_v23 = vcombine.low %v1006_v17, %v1013_v20  ;;  %v1016_v24 = vcombine.low %v986_v16, %v987_v21  ;;  %v1023_v26 = vrot.slane %v1015_v22, %v9963_v19 }
 0x9d5   :  { %v1034_v25 = vsel %vm172_vm0, %v1014_v23, 0.0  ;;  %v1030_v27 = vrot.slane %v1016_v24, %v9963_v19 }
 0x9d6   :  { %1035 = vadd.xlane.f32.xlu1 %v1034_v25 }
 0x9d7   :  { %v1031_v28 = vcombine.low %v1023_v26, %v1030_v27 }
 0x9d9   :  { %v1037_v29 = vsel %vm172_vm0, %v1031_v28, 0.0 }
 0x9da   :  { %1038 = vadd.xlane.f32.xlu1 %v1037_v29  ;;  %v1380_v29 = vld [vmem:[%s12196_s6 + $0x180] sm:$0xff] }
 0x9db   :  { %v8086_v32 = vcombine.low %v1380_v29, %v1382_v30  ;;  %v8087_v33 = vcombine.high %v1380_v29, %v1382_v30  ;;  %v8072_v30 = vld [vmem:[%s12200_s10] ss:$0 sm:$0xff] }
 0x9dc   :  { %v1267_v54 = vrot.slane %v8072_v30, %v9963_v19 }
 0x9dd   :  { %1497 = vmatprep.subr.bf16.mxu0 %v8087_v33  ;;  %v1294_v33 = vcombine.high %v8073_v31, %v8073_v31 }
 0x9de   :  { %1498 = vmatpush1.bf16.msra.mxu0 %v8086_v32  ;;  %v1260_v32 = vcombine.high %v8072_v30, %v8072_v30 }
 0x9df   :  { %1499 = vmatprep.subr.bf16.mxu0 %v8083_v38  ;;  %v1308_v37 = vrot.slane %v1294_v33, %v9963_v19 }
 0xa5f   :  { %v1036_v47 = vpop.xlane.xlu1 %1035 }
 0xa60   :  { %v1041_v48 = vmul.f32 0.015625, %v1036_v47  ;;  %v1372_v47 = vld [vmem:[%s12196_s6 + $0x80] sm:$0xff] }
 0xa62   :  { %v1051_v49 = vrot.slane %v1041_v48, %v10166_v41  ;;  %v1058_v50 = vrot.slane %v1041_v48, %v10169_v42  ;;  %v1065_v51 = vrot.slane %v1041_v48, %v10172_v43  ;;  %v1072_v52 = vrot.slane %v1041_v48, %v10175_v46 }
 0xa63   :  { %v1039_v44 = vpop.xlane.xlu1 %1038  ;;  %v8085_v48 = vcombine.high %v1377_v39, %v1379_v40 }
 0xa64   :  { %v1042_v53 = vmul.f32 0.015625, %v1039_v44  ;;  %v10181_v55 = vsub.f32 %v980_v62, %v1051_v49  ;;  %v10183_v57 = vsub.f32 %v981_v59, %v1058_v50  ;;  %v10185_v58 = vsub.f32 %v982_v3, %v1065_v51  ;;  %v1374_v49 = vld [vmem:[%s12196_s6 + $0xc0] sm:$0xff]  ;;  %v1373_v50 = vld [vmem:[%s12196_s6 + $0x88] sm:$0xff] }
 0xa65   :  { %v10187_v61 = vsub.f32 %v983_v6, %v1072_v52  ;;  %v1375_v51 = vld [vmem:[%s12196_s6 + $0xc8] sm:$0xff]  ;;  %v8082_v52 = vcombine.low %v1376_v15, %v1378_v18  ;;  %v8084_v44 = vcombine.low %v1377_v39, %v1379_v40  ;;  %1542 = vmatprep.subr.bf16.mxu1 %v8085_v48  ;;  %v1274_v15 = vrot.slane %v1260_v32, %v9963_v19 }
 0xa66   :  { %v1079_v63 = vrot.slane %v1042_v53, %v10166_v41  ;;  %v1086_v0 = vrot.slane %v1042_v53, %v10169_v42  ;;  %v1093_v1 = vrot.slane %v1042_v53, %v10172_v43  ;;  %v1100_v5 = vrot.slane %v1042_v53, %v10175_v46 }
 0xa67   :  { %v1117_v7 = vmul.f32 %v10181_v55, %v10181_v55  ;;  %v1118_v62 = vmul.f32 %v10183_v57, %v10183_v57  ;;  %v1119_v59 = vmul.f32 %v10185_v58, %v10185_v58  ;;  %v1120_v3 = vmul.f32 %v10187_v61, %v10187_v61  ;;  %1500 = vmatpush1.bf16.msra.mxu0 %v8082_v52 }
 0xa68   :  { %v10201_v6 = vsub.f32 %v984_v11, %v1079_v63  ;;  %v10203_v9 = vsub.f32 %v985_v14, %v1086_v0  ;;  %v10205_v10 = vsub.f32 %v986_v16, %v1093_v1  ;;  %v10207_v12 = vsub.f32 %v987_v21, %v1100_v5  ;;  %v1368_v63 = vld [vmem:[%s12196_s6] sm:$0xff]  ;;  %v10265_v0 = vld [vmem:[%s12196_s6 + $0x190] sm:$0xff]  ;;  %1543 = vmatpush1.bf16.msra.mxu1 %v8084_v44 }
 0xa69   :  { %v1133_v13 = vcombine.low %v1117_v7, %v1118_v62  ;;  %v1134_v56 = vcombine.low %v1119_v59, %v1120_v3  ;;  %v8079_v53 = vcombine.high %v1372_v47, %v1374_v49  ;;  %v10270_v1 = vld [vmem:[%s12196_s6 + $0x1d0] sm:$0xff]  ;;  %v8081_v5 = vcombine.high %v1373_v50, %v1375_v51  ;;  %v1370_v7 = vld [vmem:[%s12196_s6 + $0x40] sm:$0xff]  ;;  %v10280_v59 = vld [vmem:[%s12196_s6 + $0x198] sm:$0xff] }
 0xa6a   :  { %v1121_v17 = vmul.f32 %v10201_v6, %v10201_v6  ;;  %v1122_v20 = vmul.f32 %v10203_v9, %v10203_v9  ;;  %v1123_v60 = vmul.f32 %v10205_v10, %v10205_v10  ;;  %v1124_v11 = vmul.f32 %v10207_v12, %v10207_v12  ;;  %v10285_v3 = vld [vmem:[%s12196_s6 + $0x1d8] sm:$0xff] }
 0xa6b   :  { %v1141_v14 = vrot.slane %v1133_v13, %v9963_v19  ;;  %v1148_v16 = vrot.slane %v1134_v56, %v9963_v19  ;;  %v8104_v62 = vcombine.low %v10265_v0, %v10270_v1  ;;  %v1369_v13 = vld [vmem:[%s12196_s6 + $0x8] sm:$0xff]  ;;  %1501 = vmatprep.subr.bf16.mxu0 %v8079_v53  ;;  %1544 = vmatprep.subr.bf16.mxu1 %v8081_v5 }
 0xa6c   :  { %v1150_v21 = vcombine.low %v1121_v17, %v1122_v20  ;;  %v1151_v22 = vcombine.low %v1123_v60, %v1124_v11  ;;  %v1371_v56 = vld [vmem:[%s12196_s6 + $0x48] sm:$0xff]  ;;  %v8106_v17 = vcombine.low %v10280_v59, %v10285_v3  ;;  %v8078_v20 = vcombine.low %v1372_v47, %v1374_v49 }
 0xa6d   :  { %v1149_v23 = vcombine.low %v1141_v14, %v1148_v16  ;;  %v8080_v60 = vcombine.low %v1373_v50, %v1375_v51  ;;  %v8075_v11 = vcombine.high %v1368_v63, %v1370_v7  ;;  %v8077_v14 = vcombine.high %v1369_v13, %v1371_v56 }
 0xa6e   :  { %v1158_v24 = vrot.slane %v1150_v21, %v9963_v19  ;;  %v1165_v25 = vrot.slane %v1151_v22, %v9963_v19  ;;  %1502 = vmatpush1.bf16.msra.mxu0 %v8078_v20  ;;  %v8074_v16 = vcombine.low %v1368_v63, %v1370_v7  ;;  %v8076_v21 = vcombine.low %v1369_v13, %v1371_v56 }
 0xa6f   :  { %v1169_v26 = vsel %vm172_vm0, %v1149_v23, 0.0  ;;  %1545 = vmatpush1.bf16.msra.mxu1 %v8080_v60  ;;  %1503 = vmatprep.subr.bf16.mxu0 %v8075_v11  ;;  %v8105_v22 = vcombine.high %v10265_v0, %v10270_v1  ;;  %v8107_v23 = vcombine.high %v10280_v59, %v10285_v3  ;;  %v1275_v48 = vcombine.high %v1267_v54, %v1267_v54  ;;  %v1652_v0 = vld [vmem:[%s12196_s6 + $0x18] sm:$0xff] }
 0xa70   :  { %1170 = vadd.xlane.f32.xlu1 %v1169_v26  ;;  %v1166_v27 = vcombine.low %v1158_v24, %v1165_v25  ;;  %1546 = vmatprep.subr.bf16.mxu1 %v8077_v14  ;;  %v1276_v49 = vcombine.high %v1274_v15, %v1274_v15  ;;  %v1309_v63 = vcombine.high %v1301_v34, %v1301_v34  ;;  %v1654_v1 = vld [vmem:[%s12196_s6 + $0x58] sm:$0xff] }
 0xa71   :  { %v1310_v5 = vcombine.high %v1308_v37, %v1308_v37 }
 0xa72   :  { %v1172_v28 = vsel %vm172_vm0, %v1166_v27, 0.0  ;;  %1504 = vmatpush1.bf16.msra.mxu0 %v8074_v16 }
 0xa73   :  { %1547 = vmatpush1.bf16.msra.mxu1 %v8076_v21  ;;  %1777 = vmatprep.subr.bf16.mxu0 %v8105_v22 }
 0xa74   :  { %1173 = vadd.xlane.f32.xlu1 %v1172_v28  ;;  %1820 = vmatprep.subr.bf16.mxu1 %v8107_v23 }
 0xaf9   :  { %v1171_v24 = vpop.xlane.xlu1 %1170 }
 0xafa   :  { %v1175_v25 = vmul.f32 0.015625, %v1171_v24 }
 0xafc   :  { %v1177_v26 = vadd.f32 1e-05, %v1175_v25 }
 0xafd   :  { %v1174_v27 = vpop.xlane.xlu1 %1173 }
 0xafe   :  { %9739 = vrsqrt.f32 %v1177_v26  ;;  %v1176_v28 = vmul.f32 0.015625, %v1174_v27 }
 0xb00   :  { %v1178_v29 = vadd.f32 1e-05, %v1176_v28 }
 0xb02   :  { %9741 = vrsqrt.f32 %v1178_v29 }
 0xb0b   :  { %v9740_v18 = vpop.eup %9739 }
 0xb0c   :  { %v1189_v38 = vrot.slane %v9740_v18, %v10166_v41  ;;  %v1196_v39 = vrot.slane %v9740_v18, %v10169_v42  ;;  %v1203_v40 = vrot.slane %v9740_v18, %v10172_v43  ;;  %v1210_v47 = vrot.slane %v9740_v18, %v10175_v46 }
 0xb0e   :  { %v1247_v50 = vmul.f32 %v1189_v38, %v10181_v55  ;;  %v1248_v51 = vmul.f32 %v1196_v39, %v10183_v57  ;;  %v1249_v52 = vmul.f32 %v1203_v40, %v10185_v58  ;;  %v1250_v44 = vmul.f32 %v1210_v47, %v10187_v61  ;;  %v1660_v38 = vld [vmem:[%s12196_s6 + $0x118] sm:$0xff] }
 0xb0f   :  { %v9742_v53 = vpop.eup %9741  ;;  %v1662_v39 = vld [vmem:[%s12196_s6 + $0x158] sm:$0xff] }
 0xb10   :  { %v1217_v7 = vrot.slane %v9742_v53, %v10166_v41  ;;  %v1224_v13 = vrot.slane %v9742_v53, %v10169_v42  ;;  %v1231_v56 = vrot.slane %v9742_v53, %v10172_v43  ;;  %v1238_v20 = vrot.slane %v9742_v53, %v10175_v46  ;;  %v1658_v53 = vld [vmem:[%s12196_s6 + $0xd8] sm:$0xff] }
 0xb11   :  { %v1281_v60 = vmul.f32 %v1267_v54, %v1247_v50  ;;  %v1282_v11 = vmul.f32 %v1275_v48, %v1248_v51  ;;  %v1283_v55 = vmul.f32 %v1274_v15, %v1249_v52  ;;  %v1284_v14 = vmul.f32 %v1276_v49, %v1250_v44  ;;  %v1655_v51 = vld [vmem:[%s12196_s6 + $0x90] sm:$0xff]  ;;  %v1656_v44 = vld [vmem:[%s12196_s6 + $0x98] sm:$0xff] }
 0xb12   :  { %v1251_v57 = vmul.f32 %v1217_v7, %v10201_v6  ;;  %v1252_v58 = vmul.f32 %v1224_v13, %v10203_v9  ;;  %v1253_v61 = vmul.f32 %v1231_v56, %v10205_v10  ;;  %v1254_v16 = vmul.f32 %v1238_v20, %v10207_v12  ;;  %v1657_v52 = vld [vmem:[%s12196_s6 + $0xd0] sm:$0xff] }
 0xb13   :  { %v10325_v21 = vadd.f32 %v1301_v34, %v1281_v60  ;;  %v10327_v22 = vadd.f32 %v1309_v63, %v1282_v11  ;;  %v10329_v23 = vadd.f32 %v1308_v37, %v1283_v55  ;;  %v10331_v24 = vadd.f32 %v1310_v5, %v1284_v14  ;;  %v1651_v56 = vld [vmem:[%s12196_s6 + $0x10] sm:$0xff]  ;;  %v9435_v55 = vld [vmem:[%s12198_s8 + $0x178] sm:$0xff]  }
 0xb14   :  { %v1285_v25 = vmul.f32 %v1267_v54, %v1251_v57  ;;  %v1286_v26 = vmul.f32 %v1275_v48, %v1252_v58  ;;  %v1287_v27 = vmul.f32 %v1274_v15, %v1253_v61  ;;  %v1288_v28 = vmul.f32 %v1276_v49, %v1254_v16  ;;  %v1653_v20 = vld [vmem:[%s12196_s6 + $0x50] sm:$0xff]  ;;  %v9436_v14 = vld [vmem:[%s12198_s8 + $0x1f8] sm:$0xff]  }
 0xb15   :  { %v1331_v6 = vcombine.low %v10325_v21, %v10327_v22  ;;  %v1332_v9 = vcombine.low %v10329_v23, %v10331_v24  ;;  %v8103_v50 = vcombine.high %v1660_v38, %v1662_v39  ;;  %v8097_v7 = vcombine.high %v1655_v51, %v1657_v52  ;;  %v9437_v57 = vld [vmem:[%s12198_s8 + $0x138] sm:$0xff]   ;;  %v9439_v61 = vld [vmem:[%s12198_s8 + $0x170] sm:$0xff]  }
 0xb16   :  { %v10337_v10 = vadd.f32 %v1301_v34, %v1285_v25  ;;  %v10339_v12 = vadd.f32 %v1309_v63, %v1286_v26  ;;  %v10341_v29 = vadd.f32 %v1308_v37, %v1287_v27  ;;  %v10343_v30 = vadd.f32 %v1310_v5, %v1288_v28  ;;  %v1659_v34 = vld [vmem:[%s12196_s6 + $0x110] sm:$0xff]  ;;  %v9438_v58 = vld [vmem:[%s12198_s8 + $0x1b8] sm:$0xff]   ;;  %v9443_v27 = vld [vmem:[%s12198_s8 + $0x168] sm:$0xff]  }
 0xb17   :  { %v1339_v31 = vrot.slane %v1331_v6, %v9963_v19  ;;  %v1346_v32 = vrot.slane %v1332_v9, %v9963_v19  ;;  %v1661_v37 = vld [vmem:[%s12196_s6 + $0x150] sm:$0xff]  ;;  %v8102_v5 = vcombine.low %v1660_v38, %v1662_v39  ;;  %v8099_v13 = vcombine.high %v1656_v44, %v1658_v53  ;;  %v9444_v28 = vld [vmem:[%s12198_s8 + $0x1e8] sm:$0xff]  }
 0xb18   :  { %v1348_v33 = vcombine.low %v10337_v10, %v10339_v12  ;;  %v1349_v54 = vcombine.low %v10341_v29, %v10343_v30  ;;  %v8101_v49 = vcombine.high %v1659_v34, %v1661_v37  ;;  %v8100_v63 = vcombine.low %v1659_v34, %v1661_v37  ;;  %v9440_v16 = vld [vmem:[%s12198_s8 + $0x1f0] sm:$0xff]   ;;  %v9445_v6 = vld [vmem:[%s12198_s8 + $0x128] sm:$0xff]   ;;  %v9453_v34 = vld [vmem:[%s12198_s8 + $0x118] sm:$0xff]  }
 0xb19   :  { %v1347_v40 = vcombine.low %v1339_v31, %v1346_v32  ;;  %v8098_v59 = vcombine.low %v1656_v44, %v1658_v53  ;;  %v8093_v3 = vcombine.high %v1651_v56, %v1653_v20  ;;  %v8092_v60 = vcombine.low %v1651_v56, %v1653_v20  ;;  %v9441_v25 = vld [vmem:[%s12198_s8 + $0x130] sm:$0xff]   ;;  %v9446_v9 = vld [vmem:[%s12198_s8 + $0x1a8] sm:$0xff]   ;;  %v9447_v31 = vld [vmem:[%s12198_s8 + $0x160] sm:$0xff]  }
 0xb1a   :  { %v1356_v15 = vrot.slane %v1348_v33, %v9963_v19  ;;  %v1363_v18 = vrot.slane %v1349_v54, %v9963_v19  ;;  %v8094_v11 = vcombine.low %v1652_v0, %v1654_v1  ;;  %v9442_v26 = vld [vmem:[%s12198_s8 + $0x1b0] sm:$0xff]   ;;  %v9448_v32 = vld [vmem:[%s12198_s8 + $0x1e0] sm:$0xff]   ;;  %v9454_v37 = vld [vmem:[%s12198_s8 + $0x198] sm:$0xff]  }
 0xb1b   :  { %v9449_v33 = vld [vmem:[%s12198_s8 + $0x120] sm:$0xff]   ;;  %v9455_v38 = vld [vmem:[%s12198_s8 + $0x150] sm:$0xff]  }
 0xb1c   :  { %v1364_v47 = vcombine.low %v1356_v15, %v1363_v18  ;;  %v9450_v54 = vld [vmem:[%s12198_s8 + $0x1a0] sm:$0xff]   ;;  %v9451_v15 = vld [vmem:[%s12198_s8 + $0x158] sm:$0xff]   ;;  %v9456_v39 = vld [vmem:[%s12198_s8 + $0x1d0] sm:$0xff]  }
 0xb1d   :  { %v9452_v18 = vld [vmem:[%s12198_s8 + $0x1d8] sm:$0xff]   ;;  %v9463_v44 = vld [vmem:[%s12198_s8 + $0x140] sm:$0xff]  }
 0xb1e   :  { %v10365_v48 = vpack.c.bf16 %v1364_v47, %v1347_v40  ;;  %v9457_v40 = vld [vmem:[%s12198_s8 + $0x110] sm:$0xff]   ;;  %v9464_v53 = vld [vmem:[%s12198_s8 + $0x1c0] sm:$0xff]  }
 0xb1f   :  { %v9458_v47 = vld [vmem:[%s12198_s8 + $0x190] sm:$0xff]  }
 0xb20   :  { %8090 = vmatmul.mubr.msk.bf16.vlgmr.msra.gmra.mxu0 %vm172_vm0, %v10365_v48  ;;  %8091 = vmatmul.mubr.msk.bf16.vlgmr.msra.gmra.mxu1 %vm172_vm0, %v10365_v48 }
 0xb21   :  { %1778 = vmatpush1.bf16.msra.mxu0 %v8104_v62  ;;  %1821 = vmatpush1.bf16.msra.mxu1 %v8106_v17  ;;  %v8096_v62 = vcombine.low %v1655_v51, %v1657_v52  ;;  %v8095_v17 = vcombine.high %v1652_v0, %v1654_v1  ;;  %v9461_v51 = vld [vmem:[%s12198_s8 + $0x108] sm:$0xff]  }
 0xb22   :  { %1779 = vmatprep.subr.bf16.mxu0 %v8101_v49  ;;  %1822 = vmatprep.subr.bf16.mxu1 %v8103_v50  ;;  %v9459_v49 = vld [vmem:[%s12198_s8 + $0x148] sm:$0xff]  }
 0xb23   :  { %1801 = vmatprep.mubr.bf16.mxu0 %v9819_v4  ;;  %1844 = vmatprep.mubr.bf16.mxu1 %v9819_v4  ;;  %v9460_v50 = vld [vmem:[%s12198_s8 + $0x1c8] sm:$0xff]  }
 0xb24   :  { %v9462_v52 = vld [vmem:[%s12198_s8 + $0x188] sm:$0xff]  }
 0xb25   :  { %1780 = vmatpush1.bf16.msra.mxu0 %v8100_v63  ;;  %1823 = vmatpush1.bf16.msra.mxu1 %v8102_v5  ;;  %v9465_v63 = vld [vmem:[%s12198_s8 + $0x100] sm:$0xff]  }
 0xb26   :  { %1781 = vmatprep.subr.bf16.mxu0 %v8097_v7  ;;  %1824 = vmatprep.subr.bf16.mxu1 %v8099_v13  ;;  %v9466_v5 = vld [vmem:[%s12198_s8 + $0x180] sm:$0xff]   ;;  %v9467_v7 = vld [vmem:[%s12198_s8 + $0x78] sm:$0xff]  }
 0xb27   :  { %v9468_v13 = vld [vmem:[%s12198_s8 + $0xf8] sm:$0xff]  }
 0xb29   :  { %1782 = vmatpush1.bf16.msra.mxu0 %v8096_v62  ;;  %1825 = vmatpush1.bf16.msra.mxu1 %v8098_v59 }
 0xb2a   :  { %1783 = vmatprep.subr.bf16.mxu0 %v8093_v3  ;;  %1826 = vmatprep.subr.bf16.mxu1 %v8095_v17 }
 0xb2d   :  { %1784 = vmatpush1.bf16.msra.mxu0 %v8092_v60  ;;  %1827 = vmatpush1.bf16.msra.mxu1 %v8094_v11  ;;  %v10518_v60 = vsub.s32 3, %v9935_v8  ;;  %v1667_v11 = vld [vmem:[%s12197_s7 + $0x4] sm:$0xf] }
 0xb2e   :  { %8881 = vmatprep.subr.bf16.mxu0 %v9435_v55  ;;  %8903 = vmatprep.subr.bf16.mxu1 %v9436_v14  ;;  %v10524_v55 = vsub.s32 2, %v9935_v8 }
 0xb30   :  { %8108 = vmatmul.mubr.msk.bf16.vlgmr.msra.gmra.mxu0 %vm172_vm0, %v10365_v48  ;;  %8109 = vmatmul.mubr.msk.bf16.vlgmr.msra.gmra.mxu1 %vm172_vm0, %v10365_v48 }
 0xb31   :  { %8882 = vmatpush3.bf16.msra.mxu0 %v9437_v57  ;;  %8904 = vmatpush3.bf16.msra.mxu1 %v9438_v58  ;;  %v1676_v58 = vrot.slane %v1667_v11, %v10007_v45 }
 0xb32   :  { %8883 = vmatprep.subr.bf16.mxu0 %v9439_v61  ;;  %8905 = vmatprep.subr.bf16.mxu1 %v9440_v16  ;;  %v1684_v61 = vrot.slane %v1667_v11, %v10518_v60  ;;  %v1672_v16 = vrot.slane %v1667_v11, %v9988_v36 }
 0xb35   :  { %8884 = vmatpush3.bf16.msra.mxu0 %v9441_v25  ;;  %8906 = vmatpush3.bf16.msra.mxu1 %v9442_v26  ;;  %v1680_v25 = vrot.slane %v1667_v11, %v10524_v55 }
 0xb36   :  { %8885 = vmatprep.subr.bf16.mxu0 %v9443_v27  ;;  %8907 = vmatprep.subr.bf16.mxu1 %v9444_v28  ;;  %v10533_v28 = vld [vmem:[%s12197_s7] sm:$0xf] }
 0xb39   :  { %8886 = vmatpush3.bf16.msra.mxu0 %v9445_v6  ;;  %8908 = vmatpush3.bf16.msra.mxu1 %v9446_v9  ;;  %v1393_v6 = vrot.slane %v10533_v28, %v10007_v45  ;;  %v1401_v9 = vrot.slane %v10533_v28, %v10518_v60 }
 0xb3a   :  { %8887 = vmatprep.subr.bf16.mxu0 %v9447_v31  ;;  %8909 = vmatprep.subr.bf16.mxu1 %v9448_v32 }
 0xb3d   :  { %8888 = vmatpush3.bf16.msra.mxu0 %v9449_v33  ;;  %8910 = vmatpush3.bf16.msra.mxu1 %v9450_v54 }
 0xb3e   :  { %8889 = vmatprep.subr.bf16.mxu0 %v9451_v15  ;;  %8911 = vmatprep.subr.bf16.mxu1 %v9452_v18 }
 0xb41   :  { %8890 = vmatpush3.bf16.msra.mxu0 %v9453_v34  ;;  %8912 = vmatpush3.bf16.msra.mxu1 %v9454_v37 }
 0xb42   :  { %8891 = vmatprep.subr.bf16.mxu0 %v9455_v38  ;;  %8913 = vmatprep.subr.bf16.mxu1 %v9456_v39 }
 0xb45   :  { %8892 = vmatpush3.bf16.msra.mxu0 %v9457_v40  ;;  %8914 = vmatpush3.bf16.msra.mxu1 %v9458_v47 }
 0xb46   :  { %8893 = vmatprep.subr.bf16.mxu0 %v9459_v49  ;;  %8915 = vmatprep.subr.bf16.mxu1 %v9460_v50 }
 0xb49   :  { %8894 = vmatpush3.bf16.msra.mxu0 %v9461_v51  ;;  %8916 = vmatpush3.bf16.msra.mxu1 %v9462_v52 }
 0xb4a   :  { %8895 = vmatprep.subr.bf16.mxu0 %v9463_v44  ;;  %8917 = vmatprep.subr.bf16.mxu1 %v9464_v53 }
 0xb4d   :  { %8896 = vmatpush3.bf16.msra.mxu0 %v9465_v63  ;;  %8918 = vmatpush3.bf16.msra.mxu1 %v9466_v5 }
 0xb4e   :  { %8925 = vmatprep.subr.bf16.mxu0 %v9467_v7  ;;  %8947 = vmatprep.subr.bf16.mxu1 %v9468_v13 }
 0xbe0   :  { %v10509_v56 = vpop.f32.mrf.mxu0  ;;  %v10511_v20 = vpop.f32.mrf.mxu1 }
 0xbe2   :  { %v1525_v0 = vpop.f32.mrf.mxu0  ;;  %v1568_v1 = vpop.f32.mrf.mxu1 }
 0xbe3   :  { %v1526_v51 = vadd.f32 %v1525_v0, %v1393_v6  ;;  %v1569_v52 = vadd.f32 %v1568_v1, %v1401_v9  ;;  %v9470_v0 = vld [vmem:[%s12198_s8 + $0xb8] sm:$0xff]  }
 0xbe4   :  { %v10513_v62 = vpop.f32.mrf.mxu0  ;;  %v10515_v59 = vpop.f32.mrf.mxu1 }
 0xbe5   :  { %v1576_v1 = vmax.f32 %v1526_v51, 0.0  ;;  %v9486_v51 = vld [vmem:[%s12198_s8 + $0x98] sm:$0xff]  }
 0xbe6   :  { %v1529_v3 = vpop.f32.mrf.mxu0  ;;  %v1572_v17 = vpop.f32.mrf.mxu1 }
 0xbe7   :  { %v1530_v34 = vadd.f32 %v1529_v3, %v1393_v6  ;;  %v1573_v37 = vadd.f32 %v1572_v17, %v1401_v9 }
 0xbe9   :  { %v1580_v11 = vmax.f32 %v1530_v34, 0.0  ;;  %v9478_v34 = vld [vmem:[%s12198_s8 + $0xa8] sm:$0xff]  }
 0xbeb   :  { %v1584_v6 = vpack.c.bf16 %v1580_v11, %v1576_v1  ;;  %v1397_v11 = vrot.slane %v10533_v28, %v10524_v55 }
 0xbf0   :  { %v1803_v14 = vpop.f32.mrf.mxu0  ;;  %v1846_v57 = vpop.f32.mrf.mxu1 }
 0xbf1   :  { %v1804_v38 = vadd.f32 %v1803_v14, %v1672_v16  ;;  %v1847_v39 = vadd.f32 %v1846_v57, %v1680_v25  ;;  %v9469_v14 = vld [vmem:[%s12198_s8 + $0x38] sm:$0xff]   ;;  %v1578_v57 = vmax.f32 %v1569_v52, 0.0  ;;  %v9487_v52 = vld [vmem:[%s12198_s8 + $0x50] sm:$0xff]  }
 0xbf2   :  { %v1805_v26 = vpop.f32.mrf.mxu0  ;;  %v1848_v27 = vpop.f32.mrf.mxu1 }
 0xbf3   :  { %v1806_v33 = vadd.f32 %v1805_v26, %v1676_v58  ;;  %v1849_v54 = vadd.f32 %v1848_v27, %v1684_v61  ;;  %v1582_v26 = vmax.f32 %v1573_v37, 0.0  ;;  %v1855_v27 = vmax.f32 %v1804_v38, 0.0  ;;  %v9479_v37 = vld [vmem:[%s12198_s8 + $0x60] sm:$0xff]  }
 0xbf4   :  { %v1807_v31 = vpop.f32.mrf.mxu0  ;;  %v1850_v32 = vpop.f32.mrf.mxu1  ;;  %v9480_v38 = vld [vmem:[%s12198_s8 + $0xe0] sm:$0xff]  }
 0xbf5   :  { %v1808_v15 = vadd.f32 %v1807_v31, %v1672_v16  ;;  %v1851_v18 = vadd.f32 %v1850_v32, %v1680_v25  ;;  %v1856_v63 = vmax.f32 %v1806_v33, 0.0  ;;  %v1858_v5 = vmax.f32 %v1849_v54, 0.0  ;;  %v9471_v16 = vld [vmem:[%s12198_s8 + $0x70] sm:$0xff]   ;;  %v9475_v54 = vld [vmem:[%s12198_s8 + $0x68] sm:$0xff]  }
 0xbf6   :  { %v1809_v40 = vpop.f32.mrf.mxu0  ;;  %v1852_v47 = vpop.f32.mrf.mxu1  ;;  %v1857_v31 = vmax.f32 %v1847_v39, 0.0  ;;  %v9472_v25 = vld [vmem:[%s12198_s8 + $0xf0] sm:$0xff]   ;;  %v1586_v9 = vpack.c.bf16 %v1582_v26, %v1578_v57  ;;  %v9481_v39 = vld [vmem:[%s12198_s8 + $0x20] sm:$0xff]   ;;  %v9493_v26 = vld [vmem:[%s12198_s8 + $0x8] sm:$0xff]   ;;  %v1567_v57 = vadd.f32 %v10511_v20, %v1397_v11 }
 0xbf7   :  { %v1810_v49 = vadd.f32 %v1809_v40, %v1676_v58  ;;  %v1853_v50 = vadd.f32 %v1852_v47, %v1684_v61  ;;  %v1859_v44 = vmax.f32 %v1808_v15, 0.0  ;;  %v1861_v53 = vmax.f32 %v1851_v18, 0.0  ;;  %v9473_v32 = vld [vmem:[%s12198_s8 + $0x30] sm:$0xff]   ;;  %v9476_v15 = vld [vmem:[%s12198_s8 + $0xe8] sm:$0xff]   ;;  %v9482_v40 = vld [vmem:[%s12198_s8 + $0xa0] sm:$0xff]  }
 0xbf8   :  { %v9474_v33 = vld [vmem:[%s12198_s8 + $0xb0] sm:$0xff]   ;;  %v9477_v18 = vld [vmem:[%s12198_s8 + $0x28] sm:$0xff]   ;;  %v9483_v47 = vld [vmem:[%s12198_s8 + $0x58] sm:$0xff]  }
 0xbf9   :  { %v1860_v7 = vmax.f32 %v1810_v49, 0.0  ;;  %v1862_v13 = vmax.f32 %v1853_v50, 0.0  ;;  %v1863_v58 = vpack.c.bf16 %v1859_v44, %v1855_v27  ;;  %v1865_v61 = vpack.c.bf16 %v1861_v53, %v1857_v31  ;;  %v9484_v49 = vld [vmem:[%s12198_s8 + $0xd8] sm:$0xff]   ;;  %v9488_v44 = vld [vmem:[%s12198_s8 + $0xd0] sm:$0xff]   ;;  %v9494_v27 = vld [vmem:[%s12198_s8 + $0x88] sm:$0xff]  }
 0xbfa   :  { %v9485_v50 = vld [vmem:[%s12198_s8 + $0x18] sm:$0xff]   ;;  %v9489_v53 = vld [vmem:[%s12198_s8 + $0x10] sm:$0xff]   ;;  %v2489_v20 = vld [vmem:[%s12196_s6 + $0x160] sm:$0xff] }
 0xbfb   :  { %v1864_v3 = vpack.c.bf16 %v1860_v7, %v1856_v63  ;;  %v1866_v17 = vpack.c.bf16 %v1862_v13, %v1858_v5  ;;  %v9490_v63 = vld [vmem:[%s12198_s8 + $0x90] sm:$0xff]   ;;  %v9491_v5 = vld [vmem:[%s12198_s8 + $0x48] sm:$0xff]   ;;  %v1389_v13 = vrot.slane %v10533_v28, %v9988_v36  ;;  %v9495_v28 = vld [vmem:[%s12198_s8 + $0x40] sm:$0xff]  }
 0xbfc   :  { %v9492_v7 = vld [vmem:[%s12198_s8 + $0xc8] sm:$0xff]  }
 0xbfd   :  { %2155 = vmatprep.mubr.bf16.mxu0 %v1864_v3  ;;  %2196 = vmatprep.mubr.bf16.mxu1 %v1866_v17  ;;  %v1528_v31 = vadd.f32 %v10513_v62, %v1389_v13  ;;  %v1571_v3 = vadd.f32 %v10515_v59, %v1397_v11  ;;  %v9496_v17 = vld [vmem:[%s12198_s8 + $0xc0] sm:$0xff]   ;;  %v2492_v59 = vld [vmem:[%s12196_s6 + $0x1a8] sm:$0xff]  ;;  %v1524_v1 = vadd.f32 %v10509_v56, %v1389_v13 }
 0xbfe   :  { %2156 = vmatmul.mubr.bf16.vlgmr.msra.gmra.mxu0 %v1863_v58  ;;  %2197 = vmatmul.mubr.bf16.vlgmr.msra.gmra.mxu1 %v1865_v61  ;;  %v2493_v62 = vld [vmem:[%s12196_s6 + $0x1e0] sm:$0xff]  ;;  %v2480_v13 = vld [vmem:[%s12196_s6 + $0x28] sm:$0xff] }
 0xbff   :  { %8926 = vmatpush3.bf16.msra.mxu0 %v9469_v14  ;;  %8948 = vmatpush3.bf16.msra.mxu1 %v9470_v0  ;;  %v2491_v14 = vld [vmem:[%s12196_s6 + $0x1a0] sm:$0xff]  ;;  %v2494_v0 = vld [vmem:[%s12196_s6 + $0x1e8] sm:$0xff] }
 0xc00   :  { %2429 = vmatprep.mubr.bf16.mxu0 %v1584_v6  ;;  %2470 = vmatprep.mubr.bf16.mxu1 %v1586_v9  ;;  %v9497_v58 = vld [vmem:[%s12198_s8] sm:$0xff]   ;;  %v8187_v6 = vcombine.high %v2491_v14, %v2493_v62  ;;  %v8189_v9 = vcombine.high %v2492_v59, %v2494_v0  ;;  %v2482_v11 = vld [vmem:[%s12196_s6 + $0x68] sm:$0xff] }
 0xc01   :  { %8927 = vmatprep.subr.bf16.mxu0 %v9471_v16  ;;  %8949 = vmatprep.subr.bf16.mxu1 %v9472_v25  ;;  %v9498_v61 = vld [vmem:[%s12198_s8 + $0x80] sm:$0xff]   ;;  %v1579_v16 = vmax.f32 %v1528_v31, 0.0  ;;  %v1581_v25 = vmax.f32 %v1571_v3, 0.0  ;;  %v8177_v3 = vcombine.high %v2480_v13, %v2482_v11 }
 0xc02   :  { %v2487_v56 = vld [vmem:[%s12196_s6 + $0x120] sm:$0xff] }
 0xc03   :  { %8928 = vmatpush3.bf16.msra.mxu0 %v9473_v32  ;;  %8950 = vmatpush3.bf16.msra.mxu1 %v9474_v33  ;;  %v2488_v32 = vld [vmem:[%s12196_s6 + $0x128] sm:$0xff] }
 0xc04   :  { %8929 = vmatprep.subr.bf16.mxu0 %v9475_v54  ;;  %8951 = vmatprep.subr.bf16.mxu1 %v9476_v15  ;;  %v2490_v33 = vld [vmem:[%s12196_s6 + $0x168] sm:$0xff]  ;;  %v1575_v54 = vmax.f32 %v1524_v1, 0.0  ;;  %v1577_v15 = vmax.f32 %v1567_v57, 0.0  ;;  %v9503_v1 = vld [vmem:[%s12198_s8 + $0x270] sm:$0xff]  }
 0xc05   :  { %v9504_v57 = vld [vmem:[%s12198_s8 + $0x2f0] sm:$0xff]  }
 0xc07   :  { %8930 = vmatpush3.bf16.msra.mxu0 %v9477_v18  ;;  %8952 = vmatpush3.bf16.msra.mxu1 %v9478_v34  ;;  %v8186_v18 = vcombine.low %v2491_v14, %v2493_v62  ;;  %v8188_v34 = vcombine.low %v2492_v59, %v2494_v0  ;;  %v9499_v14 = vld [vmem:[%s12198_s8 + $0x278] sm:$0xff]  }
 0xc08   :  { %8931 = vmatprep.subr.bf16.mxu0 %v9479_v37  ;;  %8953 = vmatprep.subr.bf16.mxu1 %v9480_v38  ;;  %v8183_v37 = vcombine.high %v2487_v56, %v2489_v20  ;;  %v1583_v38 = vpack.c.bf16 %v1579_v16, %v1575_v54  ;;  %v9500_v62 = vld [vmem:[%s12198_s8 + $0x2f8] sm:$0xff]   ;;  %v9507_v16 = vld [vmem:[%s12198_s8 + $0x268] sm:$0xff]  }
 0xc09   :  { %v9501_v59 = vld [vmem:[%s12198_s8 + $0x238] sm:$0xff]  }
 0xc0a   :  { %v9502_v0 = vld [vmem:[%s12198_s8 + $0x2b8] sm:$0xff]  }
 0xc0b   :  { %8932 = vmatpush3.bf16.msra.mxu0 %v9481_v39  ;;  %8954 = vmatpush3.bf16.msra.mxu1 %v9482_v40  ;;  %v1585_v39 = vpack.c.bf16 %v1581_v25, %v1577_v15  ;;  %v8185_v40 = vcombine.high %v2488_v32, %v2490_v33  ;;  %v9508_v25 = vld [vmem:[%s12198_s8 + $0x2e8] sm:$0xff]   ;;  %v9515_v54 = vld [vmem:[%s12198_s8 + $0x258] sm:$0xff]  }
 0xc0c   :  { %8933 = vmatprep.subr.bf16.mxu0 %v9483_v47  ;;  %8955 = vmatprep.subr.bf16.mxu1 %v9484_v49  ;;  %v2483_v47 = vld [vmem:[%s12196_s6 + $0xa0] sm:$0xff]  ;;  %v9516_v15 = vld [vmem:[%s12198_s8 + $0x2d8] sm:$0xff]  }
 0xc0d   :  { %v2485_v49 = vld [vmem:[%s12196_s6 + $0xe0] sm:$0xff] }
 0xc0f   :  { %8934 = vmatpush3.bf16.msra.mxu0 %v9485_v50  ;;  %8956 = vmatpush3.bf16.msra.mxu1 %v9486_v51  ;;  %v2484_v50 = vld [vmem:[%s12196_s6 + $0xa8] sm:$0xff] }
 0xc10   :  { %8935 = vmatprep.subr.bf16.mxu0 %v9487_v52  ;;  %8957 = vmatprep.subr.bf16.mxu1 %v9488_v44  ;;  %v2486_v51 = vld [vmem:[%s12196_s6 + $0xe8] sm:$0xff]  ;;  %v8182_v52 = vcombine.low %v2487_v56, %v2489_v20  ;;  %v8184_v44 = vcombine.low %v2488_v32, %v2490_v33  ;;  %v9511_v56 = vld [vmem:[%s12198_s8 + $0x260] sm:$0xff]  }
 0xc11   :  { %v9512_v20 = vld [vmem:[%s12198_s8 + $0x2e0] sm:$0xff]  }
 0xc12   :  { %v9513_v32 = vld [vmem:[%s12198_s8 + $0x220] sm:$0xff]  }
 0xc13   :  { %8936 = vmatpush3.bf16.msra.mxu0 %v9489_v53  ;;  %8958 = vmatpush3.bf16.msra.mxu1 %v9490_v63  ;;  %v8179_v53 = vcombine.high %v2483_v47, %v2485_v49  ;;  %v8181_v63 = vcombine.high %v2484_v50, %v2486_v51  ;;  %v9514_v33 = vld [vmem:[%s12198_s8 + $0x2a0] sm:$0xff]  }
 0xc14   :  { %8937 = vmatprep.subr.bf16.mxu0 %v9491_v5  ;;  %8959 = vmatprep.subr.bf16.mxu1 %v9492_v7  ;;  %v2479_v5 = vld [vmem:[%s12196_s6 + $0x20] sm:$0xff] }
 0xc15   :  { %v2481_v7 = vld [vmem:[%s12196_s6 + $0x60] sm:$0xff] }
 0xc16   :  { %v8175_v31 = vcombine.high %v2479_v5, %v2481_v7 }
 0xc17   :  { %8938 = vmatpush3.bf16.msra.mxu0 %v9493_v26  ;;  %8960 = vmatpush3.bf16.msra.mxu1 %v9494_v27  ;;  %v8178_v26 = vcombine.low %v2483_v47, %v2485_v49  ;;  %v8180_v27 = vcombine.low %v2484_v50, %v2486_v51  ;;  %v9523_v47 = vld [vmem:[%s12198_s8 + $0x248] sm:$0xff]  }
 0xc18   :  { %8939 = vmatprep.subr.bf16.mxu0 %v9495_v28  ;;  %8961 = vmatprep.subr.bf16.mxu1 %v9496_v17  ;;  %v8174_v28 = vcombine.low %v2479_v5, %v2481_v7  ;;  %v8176_v17 = vcombine.low %v2480_v13, %v2482_v11  ;;  %v9524_v49 = vld [vmem:[%s12198_s8 + $0x2c8] sm:$0xff]   ;;  %v10790_v5 = vld [vmem:[%s12196_s6 + $0x1b0] sm:$0xff]  ;;  %v10800_v13 = vld [vmem:[%s12196_s6 + $0x1b8] sm:$0xff] }
 0xc19   :  { %v9525_v50 = vld [vmem:[%s12198_s8 + $0x208] sm:$0xff]   ;;  %v10795_v7 = vld [vmem:[%s12196_s6 + $0x1f0] sm:$0xff] }
 0xc1a   :  { %v9526_v51 = vld [vmem:[%s12198_s8 + $0x288] sm:$0xff]   ;;  %v8237_v11 = vcombine.high %v10790_v5, %v10795_v7 }
 0xc1b   :  { %8940 = vmatpush3.bf16.msra.mxu0 %v9497_v58  ;;  %8962 = vmatpush3.bf16.msra.mxu1 %v9498_v61  ;;  %v9505_v58 = vld [vmem:[%s12198_s8 + $0x230] sm:$0xff]  }
 0xc1c   :  { %2605 = vmatprep.subr.bf16.mxu0 %v8187_v6  ;;  %2648 = vmatprep.subr.bf16.mxu1 %v8189_v9  ;;  %v9506_v61 = vld [vmem:[%s12198_s8 + $0x2b0] sm:$0xff]   ;;  %v9509_v6 = vld [vmem:[%s12198_s8 + $0x228] sm:$0xff]  }
 0xc1d   :  { %v9510_v9 = vld [vmem:[%s12198_s8 + $0x2a8] sm:$0xff]  }
 0xc1e   :  { %2430 = vmatmul.mubr.bf16.vlgmr.msra.gmra.mxu0 %v1583_v38  ;;  %2471 = vmatmul.mubr.bf16.vlgmr.msra.gmra.mxu1 %v1585_v39  ;;  %v9520_v38 = vld [vmem:[%s12198_s8 + $0x2d0] sm:$0xff]  }
 0xc1f   :  { %2606 = vmatpush1.bf16.msra.mxu0 %v8186_v18  ;;  %2649 = vmatpush1.bf16.msra.mxu1 %v8188_v34  ;;  %v9517_v18 = vld [vmem:[%s12198_s8 + $0x218] sm:$0xff]   ;;  %v9521_v39 = vld [vmem:[%s12198_s8 + $0x210] sm:$0xff]  }
 0xc20   :  { %2607 = vmatprep.subr.bf16.mxu0 %v8183_v37  ;;  %2650 = vmatprep.subr.bf16.mxu1 %v8185_v40  ;;  %v9518_v34 = vld [vmem:[%s12198_s8 + $0x298] sm:$0xff]   ;;  %v9519_v37 = vld [vmem:[%s12198_s8 + $0x250] sm:$0xff]  }
 0xc21   :  { %2629 = vmatprep.mubr.bf16.mxu0 %v9819_v4  ;;  %2672 = vmatprep.mubr.bf16.mxu1 %v9819_v4  ;;  %v9522_v40 = vld [vmem:[%s12198_s8 + $0x290] sm:$0xff]  }
 0xc23   :  { %2608 = vmatpush1.bf16.msra.mxu0 %v8182_v52  ;;  %2651 = vmatpush1.bf16.msra.mxu1 %v8184_v44  ;;  %v9527_v52 = vld [vmem:[%s12198_s8 + $0x240] sm:$0xff]  }
 0xc24   :  { %2609 = vmatprep.subr.bf16.mxu0 %v8179_v53  ;;  %2652 = vmatprep.subr.bf16.mxu1 %v8181_v63  ;;  %v9528_v44 = vld [vmem:[%s12198_s8 + $0x2c0] sm:$0xff]  }
 0xc25   :  { %v9529_v53 = vld [vmem:[%s12198_s8 + $0x200] sm:$0xff]  }
 0xc26   :  { %v9530_v63 = vld [vmem:[%s12198_s8 + $0x280] sm:$0xff]  }
 0xc27   :  { %2610 = vmatpush1.bf16.msra.mxu0 %v8178_v26  ;;  %2653 = vmatpush1.bf16.msra.mxu1 %v8180_v27  ;;  %v10807_v26 = vld [vmem:[%s12196_s6 + $0x1f8] sm:$0xff]  ;;  %v8236_v27 = vcombine.low %v10790_v5, %v10795_v7 }
 0xc28   :  { %2611 = vmatprep.subr.bf16.mxu0 %v8175_v31  ;;  %2654 = vmatprep.subr.bf16.mxu1 %v8177_v3  ;;  %v8238_v31 = vcombine.low %v10800_v13, %v10807_v26  ;;  %v8239_v3 = vcombine.high %v10800_v13, %v10807_v26  ;;  %v3036_v5 = vld [vmem:[%s12196_s6 + $0x38] sm:$0xff] }
 0xc29   :  { %v3038_v7 = vld [vmem:[%s12196_s6 + $0x78] sm:$0xff] }
 0xc2b   :  { %2612 = vmatpush1.bf16.msra.mxu0 %v8174_v28  ;;  %2655 = vmatpush1.bf16.msra.mxu1 %v8176_v17 }
 0xc2c   :  { %8969 = vmatprep.subr.bf16.mxu0 %v9499_v14  ;;  %8991 = vmatprep.subr.bf16.mxu1 %v9500_v62 }
 0xc2e   :  { %8190 = vmatmul.mubr.msk.bf16.vlgmr.msra.gmra.mxu0 %vm172_vm0, %v10365_v48  ;;  %8191 = vmatmul.mubr.msk.bf16.vlgmr.msra.gmra.mxu1 %vm172_vm0, %v10365_v48 }
 0xc2f   :  { %8970 = vmatpush3.bf16.msra.mxu0 %v9501_v59  ;;  %8992 = vmatpush3.bf16.msra.mxu1 %v9502_v0 }
 0xc30   :  { %8971 = vmatprep.subr.bf16.mxu0 %v9503_v1  ;;  %8993 = vmatprep.subr.bf16.mxu1 %v9504_v57 }
 0xc33   :  { %8972 = vmatpush3.bf16.msra.mxu0 %v9505_v58  ;;  %8994 = vmatpush3.bf16.msra.mxu1 %v9506_v61 }
 0xc34   :  { %8973 = vmatprep.subr.bf16.mxu0 %v9507_v16  ;;  %8995 = vmatprep.subr.bf16.mxu1 %v9508_v25 }
 0xc37   :  { %8974 = vmatpush3.bf16.msra.mxu0 %v9509_v6  ;;  %8996 = vmatpush3.bf16.msra.mxu1 %v9510_v9 }
 0xc38   :  { %8975 = vmatprep.subr.bf16.mxu0 %v9511_v56  ;;  %8997 = vmatprep.subr.bf16.mxu1 %v9512_v20 }
 0xc3b   :  { %8976 = vmatpush3.bf16.msra.mxu0 %v9513_v32  ;;  %8998 = vmatpush3.bf16.msra.mxu1 %v9514_v33 }
 0xc3c   :  { %8977 = vmatprep.subr.bf16.mxu0 %v9515_v54  ;;  %8999 = vmatprep.subr.bf16.mxu1 %v9516_v15 }
 0xc3f   :  { %8978 = vmatpush3.bf16.msra.mxu0 %v9517_v18  ;;  %9000 = vmatpush3.bf16.msra.mxu1 %v9518_v34 }
 0xc40   :  { %8979 = vmatprep.subr.bf16.mxu0 %v9519_v37  ;;  %9001 = vmatprep.subr.bf16.mxu1 %v9520_v38 }
 0xc43   :  { %8980 = vmatpush3.bf16.msra.mxu0 %v9521_v39  ;;  %9002 = vmatpush3.bf16.msra.mxu1 %v9522_v40 }
 0xc44   :  { %8981 = vmatprep.subr.bf16.mxu0 %v9523_v47  ;;  %9003 = vmatprep.subr.bf16.mxu1 %v9524_v49 }
 0xc47   :  { %8982 = vmatpush3.bf16.msra.mxu0 %v9525_v50  ;;  %9004 = vmatpush3.bf16.msra.mxu1 %v9526_v51 }
 0xc48   :  { %8983 = vmatprep.subr.bf16.mxu0 %v9527_v52  ;;  %9005 = vmatprep.subr.bf16.mxu1 %v9528_v44  ;;  %v2495_v52 = vld [vmem:[%s12197_s7 + $0x8] sm:$0xf] }
 0xc4b   :  { %8984 = vmatpush3.bf16.msra.mxu0 %v9529_v53  ;;  %9006 = vmatpush3.bf16.msra.mxu1 %v9530_v63  ;;  %v2504_v63 = vrot.slane %v2495_v52, %v10007_v45 }
 0xc4c   :  { %3161 = vmatprep.subr.bf16.mxu0 %v8237_v11  ;;  %3204 = vmatprep.subr.bf16.mxu1 %v8239_v3  ;;  %v2512_v11 = vrot.slane %v2495_v52, %v10518_v60  ;;  %v2500_v3 = vrot.slane %v2495_v52, %v9988_v36 }
 0xcbe   :  { %v8897_v28 = vpop.f32.mrf.mxu0  ;;  %v8919_v17 = vpop.f32.mrf.mxu1 }
 0xcc0   :  { %v8898_v14 = vpop.f32.mrf.mxu0  ;;  %v8920_v62 = vpop.f32.mrf.mxu1 }
 0xcc1   :  { %v8899_v59 = vadd.f32 %v8898_v14, %v8897_v28  ;;  %v8921_v0 = vadd.f32 %v8920_v62, %v8919_v17  ;;  %v2508_v28 = vrot.slane %v2495_v52, %v10524_v55 }
 0xcc2   :  { %v8900_v1 = vpop.f32.mrf.mxu0  ;;  %v8922_v57 = vpop.f32.mrf.mxu1 }
 0xcc3   :  { %v2199_v58 = vadd.f32 %v8921_v0, %v8899_v59 }
 0xcc4   :  { %v8901_v61 = vpop.f32.mrf.mxu0  ;;  %v8923_v16 = vpop.f32.mrf.mxu1 }
 0xcc5   :  { %v8902_v25 = vadd.f32 %v8901_v61, %v8900_v1  ;;  %v8924_v6 = vadd.f32 %v8923_v16, %v8922_v57 }
 0xcc7   :  { %v2202_v9 = vadd.f32 %v8924_v6, %v8902_v25 }
 0xcde   :  { %v8941_v56 = vpop.f32.mrf.mxu0  ;;  %v8963_v20 = vpop.f32.mrf.mxu1 }
 0xce0   :  { %v8942_v32 = vpop.f32.mrf.mxu0  ;;  %v8964_v33 = vpop.f32.mrf.mxu1 }
 0xce1   :  { %v8943_v54 = vadd.f32 %v8942_v32, %v8941_v56  ;;  %v8965_v15 = vadd.f32 %v8964_v33, %v8963_v20  ;;  %v3043_v33 = vld [vmem:[%s12196_s6 + $0x130] sm:$0xff] }
 0xce2   :  { %v8944_v18 = vpop.f32.mrf.mxu0  ;;  %v8966_v34 = vpop.f32.mrf.mxu1 }
 0xce3   :  { %v2432_v37 = vadd.f32 %v8943_v54, %v2199_v58  ;;  %v3045_v54 = vld [vmem:[%s12196_s6 + $0x170] sm:$0xff] }
 0xce4   :  { %v8945_v38 = vpop.f32.mrf.mxu0  ;;  %v8967_v39 = vpop.f32.mrf.mxu1 }
 0xce5   :  { %v10815_v40 = vadd.f32 %v8965_v15, %v2432_v37  ;;  %v8946_v47 = vadd.f32 %v8945_v38, %v8944_v18  ;;  %v8968_v49 = vadd.f32 %v8967_v39, %v8966_v34  ;;  %v3044_v38 = vld [vmem:[%s12196_s6 + $0x138] sm:$0xff] }
 0xce6   :  { %v3046_v39 = vld [vmem:[%s12196_s6 + $0x178] sm:$0xff] }
 0xce7   :  { %v2435_v50 = vadd.f32 %v8946_v47, %v2202_v9 }
 0xce9   :  { %v10817_v51 = vadd.f32 %v8968_v49, %v2435_v50 }
 0xcee   :  { %v2631_v44 = vpop.f32.mrf.mxu0  ;;  %v2674_v53 = vpop.f32.mrf.mxu1 }
 0xcef   :  { %v2632_v61 = vadd.f32 %v2631_v44, %v2500_v3  ;;  %v2675_v16 = vadd.f32 %v2674_v53, %v2508_v28 }
 0xcf0   :  { %v2633_v17 = vpop.f32.mrf.mxu0  ;;  %v2676_v14 = vpop.f32.mrf.mxu1 }
 0xcf1   :  { %v2634_v0 = vadd.f32 %v2633_v17, %v2504_v63  ;;  %v2677_v1 = vadd.f32 %v2676_v14, %v2512_v11  ;;  %v2683_v47 = vmax.f32 %v2632_v61, 0.0  ;;  %v2685_v49 = vmax.f32 %v2675_v16, 0.0  ;;  %v3040_v17 = vld [vmem:[%s12196_s6 + $0xb8] sm:$0xff] }
 0xcf2   :  { %v2635_v62 = vpop.f32.mrf.mxu0  ;;  %v2678_v59 = vpop.f32.mrf.mxu1  ;;  %v3042_v14 = vld [vmem:[%s12196_s6 + $0xf8] sm:$0xff]  ;;  %v8226_v16 = vcombine.low %v3036_v5, %v3038_v7 }
 0xcf3   :  { %v2636_v57 = vadd.f32 %v2635_v62, %v2500_v3  ;;  %v2679_v58 = vadd.f32 %v2678_v59, %v2508_v28  ;;  %v2684_v15 = vmax.f32 %v2634_v0, 0.0  ;;  %v2686_v18 = vmax.f32 %v2677_v1, 0.0  ;;  %v3039_v3 = vld [vmem:[%s12196_s6 + $0xb0] sm:$0xff] }
 0xcf4   :  { %v2637_v25 = vpop.f32.mrf.mxu0  ;;  %v2680_v6 = vpop.f32.mrf.mxu1  ;;  %v3041_v28 = vld [vmem:[%s12196_s6 + $0xf0] sm:$0xff]  ;;  %v8232_v62 = vcombine.low %v3043_v33, %v3045_v54  ;;  %v8234_v59 = vcombine.low %v3044_v38, %v3046_v39  ;;  %v8231_v1 = vcombine.high %v3040_v17, %v3042_v14  ;;  %v8230_v26 = vcombine.low %v3040_v17, %v3042_v14  ;;  %v9556_v17 = vld [vmem:[%s12198_s8 + $0x3c8] sm:$0xff]  }
 0xcf5   :  { %v2638_v9 = vadd.f32 %v2637_v25, %v2504_v63  ;;  %v2681_v56 = vadd.f32 %v2680_v6, %v2512_v11  ;;  %v2687_v20 = vmax.f32 %v2636_v57, 0.0  ;;  %v2689_v32 = vmax.f32 %v2679_v58, 0.0  ;;  %v3035_v57 = vld [vmem:[%s12196_s6 + $0x30] sm:$0xff]  ;;  %v9531_v25 = vld [vmem:[%s12198_s8 + $0x378] sm:$0xff]   ;;  %v9557_v14 = vld [vmem:[%s12198_s8 + $0x308] sm:$0xff]  }
 0xcf6   :  { %v8233_v63 = vcombine.high %v3043_v33, %v3045_v54  ;;  %v8235_v11 = vcombine.high %v3044_v38, %v3046_v39  ;;  %v8229_v0 = vcombine.high %v3039_v3, %v3041_v28  ;;  %v3037_v58 = vld [vmem:[%s12196_s6 + $0x70] sm:$0xff]  ;;  %v8228_v13 = vcombine.low %v3039_v3, %v3041_v28  ;;  %v9532_v6 = vld [vmem:[%s12198_s8 + $0x3f8] sm:$0xff]   ;;  %v9544_v38 = vld [vmem:[%s12198_s8 + $0x3e0] sm:$0xff]  }
 0xcf7   :  { %v2688_v34 = vmax.f32 %v2638_v9, 0.0  ;;  %v2690_v37 = vmax.f32 %v2681_v56, 0.0  ;;  %v2691_v44 = vpack.c.bf16 %v2687_v20, %v2683_v47  ;;  %v2693_v53 = vpack.c.bf16 %v2689_v32, %v2685_v49  ;;  %v9533_v9 = vld [vmem:[%s12198_s8 + $0x338] sm:$0xff]   ;;  %v9535_v20 = vld [vmem:[%s12198_s8 + $0x370] sm:$0xff]   ;;  %v9545_v39 = vld [vmem:[%s12198_s8 + $0x320] sm:$0xff]  }
 0xcf8   :  { %v8224_v61 = vcombine.low %v3035_v57, %v3037_v58  ;;  %v9534_v56 = vld [vmem:[%s12198_s8 + $0x3b8] sm:$0xff]   ;;  %v9536_v32 = vld [vmem:[%s12198_s8 + $0x3f0] sm:$0xff]   ;;  %v9546_v47 = vld [vmem:[%s12198_s8 + $0x3a0] sm:$0xff]  }
 0xcf9   :  { %v2692_v50 = vpack.c.bf16 %v2688_v34, %v2684_v15  ;;  %v2694_v52 = vpack.c.bf16 %v2690_v37, %v2686_v18  ;;  %v9537_v33 = vld [vmem:[%s12198_s8 + $0x330] sm:$0xff]   ;;  %v9540_v15 = vld [vmem:[%s12198_s8 + $0x3e8] sm:$0xff]   ;;  %v9543_v37 = vld [vmem:[%s12198_s8 + $0x360] sm:$0xff]  }
 0xcfa   :  { %v9538_v54 = vld [vmem:[%s12198_s8 + $0x3b0] sm:$0xff]   ;;  %v9541_v18 = vld [vmem:[%s12198_s8 + $0x328] sm:$0xff]   ;;  %v9547_v49 = vld [vmem:[%s12198_s8 + $0x358] sm:$0xff]  }
 0xcfb   :  { %2983 = vmatprep.mubr.bf16.mxu0 %v2692_v50  ;;  %3024 = vmatprep.mubr.bf16.mxu1 %v2694_v52  ;;  %v9542_v34 = vld [vmem:[%s12198_s8 + $0x3a8] sm:$0xff]   ;;  %v9548_v50 = vld [vmem:[%s12198_s8 + $0x3d8] sm:$0xff]   ;;  %v9554_v3 = vld [vmem:[%s12198_s8 + $0x390] sm:$0xff]  }
 0xcfc   :  { %2984 = vmatmul.mubr.bf16.vlgmr.msra.gmra.mxu0 %v2691_v44  ;;  %3025 = vmatmul.mubr.bf16.vlgmr.msra.gmra.mxu1 %v2693_v53  ;;  %v9549_v52 = vld [vmem:[%s12198_s8 + $0x318] sm:$0xff]   ;;  %v9551_v53 = vld [vmem:[%s12198_s8 + $0x350] sm:$0xff]   ;;  %v9555_v28 = vld [vmem:[%s12198_s8 + $0x348] sm:$0xff]  }
 0xcfd   :  { %3162 = vmatpush1.bf16.msra.mxu0 %v8236_v27  ;;  %3205 = vmatpush1.bf16.msra.mxu1 %v8238_v31  ;;  %v8225_v27 = vcombine.high %v3035_v57, %v3037_v58  ;;  %v8227_v31 = vcombine.high %v3036_v5, %v3038_v7  ;;  %v9550_v44 = vld [vmem:[%s12198_s8 + $0x398] sm:$0xff]   ;;  %v9562_v57 = vld [vmem:[%s12198_s8 + $0x380] sm:$0xff]  }
 0xcfe   :  { %3163 = vmatprep.subr.bf16.mxu0 %v8233_v63  ;;  %3206 = vmatprep.subr.bf16.mxu1 %v8235_v11  ;;  %v9552_v63 = vld [vmem:[%s12198_s8 + $0x3d0] sm:$0xff]  }
 0xcff   :  { %3185 = vmatprep.mubr.bf16.mxu0 %v9819_v4  ;;  %3228 = vmatprep.mubr.bf16.mxu1 %v9819_v4  ;;  %v9553_v11 = vld [vmem:[%s12198_s8 + $0x310] sm:$0xff]  }
 0xd01   :  { %3164 = vmatpush1.bf16.msra.mxu0 %v8232_v62  ;;  %3207 = vmatpush1.bf16.msra.mxu1 %v8234_v59  ;;  %v9558_v62 = vld [vmem:[%s12198_s8 + $0x388] sm:$0xff]   ;;  %v9559_v59 = vld [vmem:[%s12198_s8 + $0x340] sm:$0xff]  }
 0xd02   :  { %3165 = vmatprep.subr.bf16.mxu0 %v8229_v0  ;;  %3208 = vmatprep.subr.bf16.mxu1 %v8231_v1  ;;  %v9560_v0 = vld [vmem:[%s12198_s8 + $0x3c0] sm:$0xff]  }
 0xd03   :  { %v9561_v1 = vld [vmem:[%s12198_s8 + $0x300] sm:$0xff]  }
 0xd05   :  { %3166 = vmatpush1.bf16.msra.mxu0 %v8228_v13  ;;  %3209 = vmatpush1.bf16.msra.mxu1 %v8230_v26 }
 0xd06   :  { %3167 = vmatprep.subr.bf16.mxu0 %v8225_v27  ;;  %3210 = vmatprep.subr.bf16.mxu1 %v8227_v31 }
 0xd09   :  { %3168 = vmatpush1.bf16.msra.mxu0 %v8224_v61  ;;  %3211 = vmatpush1.bf16.msra.mxu1 %v8226_v16 }
 0xd0a   :  { %9013 = vmatprep.subr.bf16.mxu0 %v9531_v25  ;;  %9035 = vmatprep.subr.bf16.mxu1 %v9532_v6 }
 0xd0c   :  { %8240 = vmatmul.mubr.msk.bf16.vlgmr.msra.gmra.mxu0 %vm172_vm0, %v10365_v48  ;;  %8241 = vmatmul.mubr.msk.bf16.vlgmr.msra.gmra.mxu1 %vm172_vm0, %v10365_v48  ;;  %v9539_v48 = vld [vmem:[%s12198_s8 + $0x368] sm:$0xff]  }
 0xd0d   :  { %9014 = vmatpush3.bf16.msra.mxu0 %v9533_v9  ;;  %9036 = vmatpush3.bf16.msra.mxu1 %v9534_v56 }
 0xd0e   :  { %9015 = vmatprep.subr.bf16.mxu0 %v9535_v20  ;;  %9037 = vmatprep.subr.bf16.mxu1 %v9536_v32 }
 0xd11   :  { %9016 = vmatpush3.bf16.msra.mxu0 %v9537_v33  ;;  %9038 = vmatpush3.bf16.msra.mxu1 %v9538_v54  ;;  %v3051_v54 = vld [vmem:[%s12197_s7 + $0xc] sm:$0xf] }
 0xd12   :  { %9017 = vmatprep.subr.bf16.mxu0 %v9539_v48  ;;  %9039 = vmatprep.subr.bf16.mxu1 %v9540_v15 }
 0xd15   :  { %9018 = vmatpush3.bf16.msra.mxu0 %v9541_v18  ;;  %9040 = vmatpush3.bf16.msra.mxu1 %v9542_v34  ;;  %v3060_v18 = vrot.slane %v3051_v54, %v10007_v45  ;;  %v3068_v34 = vrot.slane %v3051_v54, %v10518_v60 }
 0xd16   :  { %9019 = vmatprep.subr.bf16.mxu0 %v9543_v37  ;;  %9041 = vmatprep.subr.bf16.mxu1 %v9544_v38  ;;  %v3056_v37 = vrot.slane %v3051_v54, %v9988_v36  ;;  %v3064_v38 = vrot.slane %v3051_v54, %v10524_v55 }
 0xd19   :  { %9020 = vmatpush3.bf16.msra.mxu0 %v9545_v39  ;;  %9042 = vmatpush3.bf16.msra.mxu1 %v9546_v47 }
 0xd1a   :  { %9021 = vmatprep.subr.bf16.mxu0 %v9547_v49  ;;  %9043 = vmatprep.subr.bf16.mxu1 %v9548_v50 }
 0xd1d   :  { %9022 = vmatpush3.bf16.msra.mxu0 %v9549_v52  ;;  %9044 = vmatpush3.bf16.msra.mxu1 %v9550_v44 }
 0xd1e   :  { %9023 = vmatprep.subr.bf16.mxu0 %v9551_v53  ;;  %9045 = vmatprep.subr.bf16.mxu1 %v9552_v63 }
 0xd21   :  { %9024 = vmatpush3.bf16.msra.mxu0 %v9553_v11  ;;  %9046 = vmatpush3.bf16.msra.mxu1 %v9554_v3 }
 0xd22   :  { %9025 = vmatprep.subr.bf16.mxu0 %v9555_v28  ;;  %9047 = vmatprep.subr.bf16.mxu1 %v9556_v17 }
 0xd25   :  { %9026 = vmatpush3.bf16.msra.mxu0 %v9557_v14  ;;  %9048 = vmatpush3.bf16.msra.mxu1 %v9558_v62 }
 0xd26   :  { %9027 = vmatprep.subr.bf16.mxu0 %v9559_v59  ;;  %9049 = vmatprep.subr.bf16.mxu1 %v9560_v0 }
 0xd29   :  { %9028 = vmatpush3.bf16.msra.mxu0 %v9561_v1  ;;  %9050 = vmatpush3.bf16.msra.mxu1 %v9562_v57 }
 0xd2a   :  { %9329 = vmatprep.subr.bf16.mxu1 %v9821_v35 }
 0xdbc   :  { %v8985_v58 = vpop.f32.mrf.mxu0  ;;  %v9007_v5 = vpop.f32.mrf.mxu1 }
 0xdbe   :  { %v8986_v7 = vpop.f32.mrf.mxu0  ;;  %v9008_v13 = vpop.f32.mrf.mxu1 }
 0xdbf   :  { %v8987_v26 = vadd.f32 %v8986_v7, %v8985_v58  ;;  %v9009_v27 = vadd.f32 %v9008_v13, %v9007_v5 }
 0xdc0   :  { %v8988_v31 = vpop.f32.mrf.mxu0  ;;  %v9010_v61 = vpop.f32.mrf.mxu1 }
 0xdc1   :  { %v3027_v16 = vadd.f32 %v9009_v27, %v8987_v26 }
 0xdc2   :  { %v8989_v25 = vpop.f32.mrf.mxu0  ;;  %v9011_v6 = vpop.f32.mrf.mxu1 }
 0xdc3   :  { %v3033_v9 = vadd.f32 %v3027_v16, %v10815_v40  ;;  %v8990_v56 = vadd.f32 %v8989_v25, %v8988_v31  ;;  %v9012_v20 = vadd.f32 %v9011_v6, %v9010_v61 }
 0xdc5   :  { %v3030_v32 = vadd.f32 %v9012_v20, %v8990_v56 }
 0xdc7   :  { %v3034_v33 = vadd.f32 %v3030_v32, %v10817_v51 }
 0xdcc   :  { %v3187_v48 = vpop.f32.mrf.mxu0  ;;  %v3230_v15 = vpop.f32.mrf.mxu1 }
 0xdcd   :  { %v3188_v53 = vadd.f32 %v3187_v48, %v3056_v37  ;;  %v3231_v63 = vadd.f32 %v3230_v15, %v3064_v38  ;;  %v8274_v48 = vld [vmem:[%s12199_s9] ss:$0 sm:$0xff] }
 0xdce   :  { %v3189_v40 = vpop.f32.mrf.mxu0  ;;  %v3232_v39 = vpop.f32.mrf.mxu1 }
 0xdcf   :  { %v3190_v50 = vadd.f32 %v3189_v40, %v3060_v18  ;;  %v3233_v51 = vadd.f32 %v3232_v39, %v3068_v34  ;;  %v3239_v58 = vmax.f32 %v3188_v53, 0.0  ;;  %v3241_v5 = vmax.f32 %v3231_v63, 0.0 }
 0xdd0   :  { %v3191_v47 = vpop.f32.mrf.mxu0  ;;  %v3234_v49 = vpop.f32.mrf.mxu1 }
 0xdd1   :  { %v3192_v52 = vadd.f32 %v3191_v47, %v3056_v37  ;;  %v3235_v44 = vadd.f32 %v3234_v49, %v3064_v38  ;;  %v3240_v59 = vmax.f32 %v3190_v50, 0.0  ;;  %v3242_v0 = vmax.f32 %v3233_v51, 0.0 }
 0xdd2   :  { %v3193_v11 = vpop.f32.mrf.mxu0  ;;  %v3236_v3 = vpop.f32.mrf.mxu1 }
 0xdd3   :  { %v3194_v28 = vadd.f32 %v3193_v11, %v3060_v18  ;;  %v3237_v17 = vadd.f32 %v3236_v3, %v3068_v34  ;;  %v3243_v14 = vmax.f32 %v3192_v52, 0.0  ;;  %v3245_v62 = vmax.f32 %v3235_v44, 0.0 }
 0xdd5   :  { %v3244_v1 = vmax.f32 %v3194_v28, 0.0  ;;  %v3246_v57 = vmax.f32 %v3237_v17, 0.0  ;;  %v3247_v26 = vpack.c.bf16 %v3243_v14, %v3239_v58  ;;  %v3249_v27 = vpack.c.bf16 %v3245_v62, %v3241_v5 }
 0xdd7   :  { %v3248_v7 = vpack.c.bf16 %v3244_v1, %v3240_v59  ;;  %v3250_v13 = vpack.c.bf16 %v3246_v57, %v3242_v0 }
 0xdd9   :  { %3539 = vmatprep.mubr.bf16.mxu0 %v3248_v7  ;;  %3580 = vmatprep.mubr.bf16.mxu1 %v3250_v13 }
 0xdda   :  { %3540 = vmatmul.mubr.bf16.vlgmr.msra.gmra.mxu0 %v3247_v26  ;;  %3581 = vmatmul.mubr.bf16.vlgmr.msra.gmra.mxu1 %v3249_v27 }
 0xddb   :  { %4128 = vmatprep.mubr.bf16.mxu0 %v9819_v4  ;;  %9331 = vmatprep.mubr.msk.bf16.mxu1 %vm9822_vm1, %v9821_v35 }
 0xe9a   :  { %v9029_v31 = vpop.f32.mrf.mxu0  ;;  %v9051_v61 = vpop.f32.mrf.mxu1 }
 0xe9c   :  { %v9030_v16 = vpop.f32.mrf.mxu0  ;;  %v9052_v25 = vpop.f32.mrf.mxu1 }
 0xe9d   :  { %v9031_v6 = vadd.f32 %v9030_v16, %v9029_v31  ;;  %v9053_v56 = vadd.f32 %v9052_v25, %v9051_v61 }
 0xe9e   :  { %v9032_v20 = vpop.f32.mrf.mxu0  ;;  %v9054_v32 = vpop.f32.mrf.mxu1 }
 0xe9f   :  { %v3583_v54 = vadd.f32 %v9053_v56, %v9031_v6 }
 0xea0   :  { %v9033_v15 = vpop.f32.mrf.mxu0  ;;  %v9055_v18 = vpop.f32.mrf.mxu1 }
 0xea1   :  { %v3589_v34 = vadd.f32 %v3583_v54, %v3033_v9  ;;  %v9034_v37 = vadd.f32 %v9033_v15, %v9032_v20  ;;  %v9056_v38 = vadd.f32 %v9055_v18, %v9054_v32 }
 0xea3   :  { %v3598_v40 = vadd.f32 %v8274_v48, %v3589_v34  ;;  %v3586_v39 = vadd.f32 %v9056_v38, %v9034_v37 }
 0xea5   :  { %v3602_v47 = vcombine.high %v3598_v40, %v3598_v40  ;;  %v3609_v49 = vrot.slane %v3598_v40, %v9963_v19  ;;  %v3590_v50 = vadd.f32 %v3586_v39, %v3034_v33 }
 0xea7   :  { %v3599_v51 = vadd.f32 %v8274_v48, %v3590_v50  ;;  %v3616_v52 = vrot.slane %v3602_v47, %v9963_v19  ;;  %v3617_v44 = vcombine.high %v3609_v49, %v3609_v49  ;;  %v3644_v53 = vadd.f32 %v3609_v49, %v10325_v21 }
 0xea9   :  { %v3619_v63 = vcombine.high %v3599_v51, %v3599_v51  ;;  %v3626_v11 = vrot.slane %v3599_v51, %v9963_v19  ;;  %v3618_v3 = vcombine.high %v3616_v52, %v3616_v52  ;;  %v3645_v9 = vadd.f32 %v3617_v44, %v10327_v22 }
 0xeaa   :  { %v3646_v28 = vadd.f32 %v3616_v52, %v10329_v23 }
 0xeab   :  { %v3647_v17 = vadd.f32 %v3618_v3, %v10331_v24  ;;  %v3662_v14 = vcombine.low %v3644_v53, %v3645_v9  ;;  %v3633_v62 = vrot.slane %v3619_v63, %v9963_v19  ;;  %v3634_v33 = vcombine.high %v3626_v11, %v3626_v11 }
 0xeac   :  { %v3648_v1 = vadd.f32 %v3626_v11, %v10337_v10 }
 0xead   :  { %v3663_v59 = vcombine.low %v3646_v28, %v3647_v17  ;;  %v3635_v0 = vcombine.high %v3633_v62, %v3633_v62  ;;  %v3649_v21 = vadd.f32 %v3634_v33, %v10339_v12  ;;  %v3670_v57 = vrot.slane %v3662_v14, %v9963_v19 }
 0xeae   :  { %v3650_v22 = vadd.f32 %v3633_v62, %v10341_v29 }
 0xeaf   :  { %v3677_v58 = vrot.slane %v3663_v59, %v9963_v19  ;;  %v3651_v23 = vadd.f32 %v3635_v0, %v10343_v30  ;;  %v3679_v5 = vcombine.low %v3648_v1, %v3649_v21 }
 0xeb1   :  { %v3678_v24 = vcombine.low %v3670_v57, %v3677_v58  ;;  %v3680_v7 = vcombine.low %v3650_v22, %v3651_v23  ;;  %v3687_v26 = vrot.slane %v3679_v5, %v9963_v19  ;;  %v9563_v58 = vld [vmem:[%s12192_s2 + $0x70] ss:$8 sps:$4 sm:$0xff]   ;;  %v9566_v5 = vld [vmem:[%s12192_s2 + $0x60] ss:$8 sps:$4 sm:$0xff]  }
 0xeb3   :  { %v3698_v13 = vsel %vm172_vm0, %v3678_v24, 0.0  ;;  %v3694_v27 = vrot.slane %v3680_v7, %v9963_v19  ;;  %v9571_v24 = vld [vmem:[%s12192_s2 + $0x54] ss:$8 sps:$4 sm:$0xff]   ;;  %v9569_v7 = vld [vmem:[%s12192_s2 + $0x50] ss:$8 sps:$4 sm:$0xff]  }
 0xeb4   :  { %3699 = vadd.xlane.f32.xlu1 %v3698_v13  ;;  %v9574_v13 = vld [vmem:[%s12192_s2 + $0x44] ss:$8 sps:$4 sm:$0xff]  }
 0xeb5   :  { %v3695_v10 = vcombine.low %v3687_v26, %v3694_v27  ;;  %v9572_v26 = vld [vmem:[%s12192_s2 + $0x40] ss:$8 sps:$4 sm:$0xff]  }
 0xeb7   :  { %v3701_v12 = vsel %vm172_vm0, %v3695_v10, 0.0 }
 0xeb8   :  { %3702 = vadd.xlane.f32.xlu1 %v3701_v12 }
 0xf3d   :  { %v3700_v31 = vpop.xlane.xlu1 %3699 }
 0xf3e   :  { %v3704_v61 = vmul.f32 0.015625, %v3700_v31 }
 0xf40   :  { %v3714_v29 = vrot.slane %v3704_v61, %v10166_v41  ;;  %v3721_v30 = vrot.slane %v3704_v61, %v10169_v42  ;;  %v3728_v16 = vrot.slane %v3704_v61, %v10172_v43  ;;  %v3735_v25 = vrot.slane %v3704_v61, %v10175_v46 }
 0xf41   :  { %v3703_v6 = vpop.xlane.xlu1 %3702 }
 0xf42   :  { %v3705_v56 = vmul.f32 0.015625, %v3703_v6  ;;  %v11008_v20 = vsub.f32 %v3644_v53, %v3714_v29  ;;  %v11010_v32 = vsub.f32 %v3645_v9, %v3721_v30  ;;  %v11012_v54 = vsub.f32 %v3646_v28, %v3728_v16  ;;  %v8275_v30 = vld [vmem:[%s12202_s12] ss:$0 sm:$0xff] }
 0xf43   :  { %v11014_v48 = vsub.f32 %v3647_v17, %v3735_v25  ;;  %v8276_v16 = vld [vmem:[%s12203_s13] ss:$0 sm:$0xff]  ;;  %v3923_v25 = vcombine.high %v8275_v30, %v8275_v30 }
 0xf44   :  { %v3742_v15 = vrot.slane %v3705_v56, %v10166_v41  ;;  %v3749_v18 = vrot.slane %v3705_v56, %v10169_v42  ;;  %v3756_v34 = vrot.slane %v3705_v56, %v10172_v43  ;;  %v3763_v37 = vrot.slane %v3705_v56, %v10175_v46 }
 0xf45   :  { %v3780_v38 = vmul.f32 %v11008_v20, %v11008_v20  ;;  %v3781_v40 = vmul.f32 %v11010_v32, %v11010_v32  ;;  %v3782_v39 = vmul.f32 %v11012_v54, %v11012_v54  ;;  %v3783_v47 = vmul.f32 %v11014_v48, %v11014_v48 }
 0xf46   :  { %v11028_v49 = vsub.f32 %v3648_v1, %v3742_v15  ;;  %v11030_v50 = vsub.f32 %v3649_v21, %v3749_v18  ;;  %v11032_v51 = vsub.f32 %v3650_v22, %v3756_v34  ;;  %v11034_v52 = vsub.f32 %v3651_v23, %v3763_v37  ;;  %v9565_v22 = vld [vmem:[%s12192_s2 + $0x74] ss:$8 sps:$4 sm:$0xff]   ;;  %v9568_v23 = vld [vmem:[%s12192_s2 + $0x64] ss:$8 sps:$4 sm:$0xff]  }
 0xf47   :  { %v3796_v44 = vcombine.low %v3780_v38, %v3781_v40  ;;  %v3797_v53 = vcombine.low %v3782_v39, %v3783_v47  ;;  %4104 = vmatprep.subr.bf16.mxu0 %v9565_v22  ;;  %v3957_v6 = vcombine.high %v8276_v16, %v8276_v16  ;;  %v3930_v56 = vrot.slane %v8275_v30, %v9963_v19 }
 0xf48   :  { %v3784_v63 = vmul.f32 %v11028_v49, %v11028_v49  ;;  %v3785_v11 = vmul.f32 %v11030_v50, %v11030_v50  ;;  %v3786_v3 = vmul.f32 %v11032_v51, %v11032_v51  ;;  %v3787_v9 = vmul.f32 %v11034_v52, %v11034_v52  ;;  %4105 = vmatpush1.bf16.msra.mxu0 %v9563_v58 }
 0xf49   :  { %v3804_v28 = vrot.slane %v3796_v44, %v9963_v19  ;;  %v3811_v17 = vrot.slane %v3797_v53, %v9963_v19  ;;  %4106 = vmatprep.subr.bf16.mxu0 %v9568_v23  ;;  %v3937_v15 = vrot.slane %v3923_v25, %v9963_v19  ;;  %v3964_v18 = vrot.slane %v8276_v16, %v9963_v19 }
 0xf4a   :  { %v3813_v14 = vcombine.low %v3784_v63, %v3785_v11  ;;  %v3814_v62 = vcombine.low %v3786_v3, %v3787_v9  ;;  %v3971_v34 = vrot.slane %v3957_v6, %v9963_v19  ;;  %v3938_v38 = vcombine.high %v3930_v56, %v3930_v56 }
 0xf4b   :  { %v3812_v33 = vcombine.low %v3804_v28, %v3811_v17  ;;  %v3939_v40 = vcombine.high %v3937_v15, %v3937_v15  ;;  %v3972_v63 = vcombine.high %v3964_v18, %v3964_v18 }
 0xf4c   :  { %v3821_v59 = vrot.slane %v3813_v14, %v9963_v19  ;;  %v3828_v0 = vrot.slane %v3814_v62, %v9963_v19  ;;  %4107 = vmatpush1.bf16.msra.mxu0 %v9566_v5  ;;  %v3973_v11 = vcombine.high %v3971_v34, %v3971_v34 }
 0xf4d   :  { %v3832_v1 = vsel %vm172_vm0, %v3812_v33, 0.0  ;;  %4108 = vmatprep.subr.bf16.mxu0 %v9571_v24 }
 0xf4e   :  { %3833 = vadd.xlane.f32.xlu0 %v3832_v1  ;;  %v3829_v21 = vcombine.low %v3821_v59, %v3828_v0 }
 0xf50   :  { %v3835_v57 = vsel %vm172_vm0, %v3829_v21, 0.0  ;;  %4109 = vmatpush1.bf16.msra.mxu0 %v9569_v7 }
 0xf51   :  { %3836 = vadd.xlane.f32.xlu1 %v3835_v57  ;;  %4110 = vmatprep.subr.bf16.mxu0 %v9574_v13 }
 0xf54   :  { %4111 = vmatpush1.bf16.msra.mxu0 %v9572_v26 }
 0xf55   :  { %9341 = vmatprep.subr.bf16.mxu0 %v9821_v35 }
 0xfd7   :  { %v3834_v27 = vpop.xlane.xlu0 %3833 }
 0xfd8   :  { %v3838_v10 = vmul.f32 0.015625, %v3834_v27 }
 0xfda   :  { %v3840_v12 = vadd.f32 1e-05, %v3838_v10  ;;  %v3837_v31 = vpop.xlane.xlu1 %3836 }
 0xfdb   :  { %v3839_v61 = vmul.f32 0.015625, %v3837_v31 }
 0xfdc   :  { %9743 = vrsqrt.f32 %v3840_v12 }
 0xfdd   :  { %v3841_v29 = vadd.f32 1e-05, %v3839_v61 }
 0xfdf   :  { %9745 = vrsqrt.f32 %v3841_v29 }
 0xfe9   :  { %v9744_v37 = vpop.eup %9743 }
 0xfea   :  { %v3852_v39 = vrot.slane %v9744_v37, %v10166_v41  ;;  %v3859_v47 = vrot.slane %v9744_v37, %v10169_v42  ;;  %v3866_v44 = vrot.slane %v9744_v37, %v10172_v43  ;;  %v3873_v53 = vrot.slane %v9744_v37, %v10175_v46 }
 0xfec   :  { %v9746_v3 = vpop.eup %9745  ;;  %v3910_v9 = vmul.f32 %v3852_v39, %v11008_v20  ;;  %v3911_v28 = vmul.f32 %v3859_v47, %v11010_v32  ;;  %v3912_v17 = vmul.f32 %v3866_v44, %v11012_v54  ;;  %v3913_v14 = vmul.f32 %v3873_v53, %v11014_v48 }
 0xfed   :  { %v3880_v62 = vrot.slane %v9746_v3, %v10166_v41  ;;  %v3887_v33 = vrot.slane %v9746_v3, %v10169_v42  ;;  %v3894_v59 = vrot.slane %v9746_v3, %v10172_v43  ;;  %v3901_v0 = vrot.slane %v9746_v3, %v10175_v46 }
 0xfee   :  { %v3944_v1 = vmul.f32 %v3930_v56, %v3910_v9  ;;  %v3945_v21 = vmul.f32 %v3938_v38, %v3911_v28  ;;  %v3946_v57 = vmul.f32 %v3937_v15, %v3912_v17  ;;  %v3947_v58 = vmul.f32 %v3939_v40, %v3913_v14 }
 0xfef   :  { %v3914_v20 = vmul.f32 %v3880_v62, %v11028_v49  ;;  %v3915_v32 = vmul.f32 %v3887_v33, %v11030_v50  ;;  %v3916_v54 = vmul.f32 %v3894_v59, %v11032_v51  ;;  %v3917_v48 = vmul.f32 %v3901_v0, %v11034_v52  ;;  %v11163_v0 = vld [vmem:[%s12191_s1] sm:$0xff] }
 0xff0   :  { %v11101_v22 = vadd.f32 %v3964_v18, %v3944_v1  ;;  %v11103_v23 = vadd.f32 %v3972_v63, %v3945_v21  ;;  %v11105_v5 = vadd.f32 %v3971_v34, %v3946_v57  ;;  %v11107_v24 = vadd.f32 %v3973_v11, %v3947_v58 }
 0xff1   :  { %v3948_v7 = vmul.f32 %v3930_v56, %v3914_v20  ;;  %v3949_v13 = vmul.f32 %v3938_v38, %v3915_v32  ;;  %v3950_v26 = vmul.f32 %v3937_v15, %v3916_v54  ;;  %v3951_v27 = vmul.f32 %v3939_v40, %v3917_v48  ;;  %v11170_v32 = vld [vmem:[%s12191_s1 + $0x8] sm:$0xff]  ;;  %s12215_s1 = smov 96  }
 0xff2   :  { %v3994_v49 = vcombine.low %v11101_v22, %v11103_v23  ;;  %v3995_v50 = vcombine.low %v11105_v5, %v11107_v24 }
 0xff3   :  { %v11113_v51 = vadd.f32 %v3964_v18, %v3948_v7  ;;  %v11115_v52 = vadd.f32 %v3972_v63, %v3949_v13  ;;  %v11117_v10 = vadd.f32 %v3971_v34, %v3950_v26  ;;  %v11119_v12 = vadd.f32 %v3973_v11, %v3951_v27  ;;  %v8285_v18 = vld [vmem:[%s12193_s3 + $0x2] sm:$0x3] }
 0xff4   :  { %v4002_v31 = vrot.slane %v3994_v49, %v9963_v19  ;;  %v4009_v61 = vrot.slane %v3995_v50, %v9963_v19  ;;  %v4046_v37 = vrot.slane %v8285_v18, %v9988_v36  ;;  %v4050_v3 = vrot.slane %v8285_v18, %v10007_v45 }
 0xff5   :  { %v4011_v29 = vcombine.low %v11113_v51, %v11115_v52  ;;  %v4012_v30 = vcombine.low %v11117_v10, %v11119_v12 }
 0xff6   :  { %v4010_v6 = vcombine.low %v4002_v31, %v4009_v61 }
 0xff7   :  { %v4019_v16 = vrot.slane %v4011_v29, %v9963_v19  ;;  %v4026_v25 = vrot.slane %v4012_v30, %v9963_v19 }
 0xff9   :  { %v4027_v56 = vcombine.low %v4019_v16, %v4026_v25 }
 0xffb   :  { %v4030_v15 = vpack.c.bf16 %v4027_v56, %v4010_v6 }
 0xffd   :  { %8294 = vmatmul.mubr.msk.bf16.vlgmr.msra.gmra.mxu0 %vm172_vm0, %v4030_v15 }
 0xffe   :  { %9343 = vmatprep.mubr.msk.bf16.mxu0 %vm9822_vm1, %v9821_v35 }
0x10bd   :  { %v4130_v34 = vpop.f32.mrf.mxu0 }
0x10be   :  { %v4131_v39 = vadd.f32 %v4130_v34, %v4046_v37 }
0x10bf   :  { %v4132_v38 = vpop.f32.mrf.mxu0 }
0x10c0   :  { %v4133_v14 = vadd.f32 %v4132_v38, %v4050_v3 }
0x10c1   :  { %v4134_v40 = vpop.f32.mrf.mxu0 }
0x10c2   :  { %v4135_v47 = vadd.f32 %v4134_v40, %v4046_v37 }
0x10c3   :  { %v4136_v63 = vpop.f32.mrf.mxu0 }
0x10c4   :  { %v11136_v44 = vpack.c.bf16 %v4135_v47, %v4131_v39  ;;  %v4137_v9 = vadd.f32 %v4136_v63, %v4050_v3 }
0x10c6   :  { %4142 = vrot.lane.b32.xlu1 %v11136_v44, %s9824_s28  ;;  %v11149_v62 = vpack.c.bf16 %v4137_v9, %v4133_v14 }
0x10ca   :  { %4266 = vrot.lane.b32.xlu1 %v11136_v44, %s9825_s15 }
0x10ce   :  { %4264 = vrot.lane.b32.xlu1 %v11136_v44, %s9823_s27 }
0x1138   :  { %v4143_v53 = vpop.permute.xlu1 %4142 }
0x1139   :  { %v4148_v11 = vsel %vm224_vm2, %v4143_v53, 0 }
0x113a   :  { %9330 = vmatpush3.bf16.xpose.msra.mxu1 %v4148_v11 }
0x113b   :  { %9335 = vmatprep.subr.bf16.mxu1 %v9821_v35 }
0x113c   :  { %v4267_v28 = vpop.permute.xlu1 %4266 }
0x113d   :  { %v4272_v17 = vsel %vm224_vm2, %v4267_v28, 0 }
0x113e   :  { %9342 = vmatpush3.bf16.xpose.msra.mxu0 %v4272_v17 }
0x113f   :  { %9353 = vmatprep.subr.bf16.mxu0 %v9821_v35 }
0x1140   :  { %v4265_v33 = vpop.permute.xlu1 %4264 }
0x1141   :  { %9332 = vmatmul.mubr.msk.bf16.vlgmr.msra.gmra.mxu1 %vm224_vm2, %v11136_v44 }
0x1142   :  { %9336 = vmatpush3.bf16.msra.mxu1 %v11149_v62  ;;  %9337 = vmatprep.mubr.msk.bf16.mxu1 %vm9822_vm1, %v9821_v35 }
0x1143   :  { %9347 = vmatprep.subr.bf16.mxu1 %v9821_v35 }
0x1145   :  { %9344 = vmatmul.mubr.msk.bf16.vlgmr.msra.gmra.mxu0 %vm224_vm2, %v4265_v33 }
0x1146   :  { %9355 = vmatprep.mubr.msk.bf16.mxu0 %vm9822_vm1, %v9821_v35 }
0x1201   :  { %v4184_v59 = vpop.f32.mrf.mxu1 }
0x1202   :  { %v4185_v1 = vadd.f32 %v11163_v0, %v4184_v59 }
0x1203   :  { %v9333_v21 = vpop.f32.mrf.mxu1 }
0x1204   :  { %v4191_v57 = vsel %vm224_vm2, %v4185_v1, -inf }
0x1205   :  { %4192 = vmax.xlane.f32.xlu0 %v4191_v57  ;;  %v4187_v58 = vpop.f32.mrf.mxu1  ;;  %v4308_v20 = vpop.f32.mrf.mxu0 }
0x1206   :  { %v4188_v54 = vadd.f32 %v11170_v32, %v4187_v58  ;;  %v4309_v48 = vadd.f32 %v11163_v0, %v4308_v20 }
0x1207   :  { %v9334_v7 = vpop.f32.mrf.mxu1  ;;  %v9345_v13 = vpop.f32.mrf.mxu0 }
0x1208   :  { %v4194_v26 = vsel %vm224_vm2, %v4188_v54, -inf  ;;  %v4315_v27 = vsel %vm224_vm2, %v4309_v48, -inf }
0x1209   :  { %4195 = vmax.xlane.f32.xlu1 %v4194_v26  ;;  %4316 = vmax.xlane.f32.xlu0 %v4315_v27  ;;  %v4311_v49 = vpop.f32.mrf.mxu0 }
0x120a   :  { %v4312_v50 = vadd.f32 %v11170_v32, %v4311_v49  ;;  %v9575_v49 = vld [vmem:[%s12194_s4 + $0x20] sm:$0xff]  }
0x120b   :  { %v9346_v31 = vpop.f32.mrf.mxu0 }
0x120c   :  { %v4318_v61 = vsel %vm224_vm2, %v4312_v50, -inf }
0x120d   :  { %4319 = vmax.xlane.f32.xlu0 %v4318_v61 }
0x121a   :  { %4493 = vrot.lane.b32.xlu1 %v11136_v44, %s9826_s18 }
0x128e   :  { %v4193_v29 = vpop.xlane.xlu0 %4192 }
0x128f   :  { %v4197_v30 = vsub.f32 %v4185_v1, %v4193_v29 }
0x1291   :  { %v4199_v16 = vmul.f32 1.442695, %v4197_v30 }
0x1292   :  { %v4317_v25 = vpop.xlane.xlu0 %4316  ;;  %v4196_v6 = vpop.xlane.xlu1 %4195 }
0x1293   :  { %9747 = vpow2.f32 %v4199_v16  ;;  %v4321_v56 = vsub.f32 %v4309_v48, %v4317_v25  ;;  %v4198_v15 = vsub.f32 %v4188_v54, %v4196_v6 }
0x1295   :  { %v4323_v18 = vmul.f32 1.442695, %v4321_v56  ;;  %v4201_v34 = vmul.f32 1.442695, %v4198_v15 }
0x1296   :  { %v4320_v37 = vpop.xlane.xlu0 %4319  ;;  %v4494_v56 = vpop.permute.xlu1 %4493 }
0x1297   :  { %9749 = vpow2.f32 %v4323_v18  ;;  %v4322_v38 = vsub.f32 %v4312_v50, %v4320_v37  ;;  %v9576_v50 = vld [vmem:[%s12194_s4 + $0x28] sm:$0xff]   ;;  %v4499_v37 = vsel %vm224_vm2, %v4494_v56, 0 }
0x1298   :  { %9751 = vpow2.f32 %v4201_v34  ;;  %9354 = vmatpush3.bf16.msra.mxu0 %v9576_v50 }
0x1299   :  { %v4325_v40 = vmul.f32 1.442695, %v4322_v38  ;;  %9365 = vmatprep.subr.bf16.mxu0 %v9821_v35 }
0x129b   :  { %9753 = vpow2.f32 %v4325_v40 }
0x12a0   :  { %v9748_v39 = vpop.eup %9747 }
0x12a1   :  { %v4203_v47 = vsel %vm224_vm2, %v9748_v39, 0.0 }
0x12a2   :  { %4204 = vadd.xlane.f32.xlu0 %v4203_v47 }
0x12a4   :  { %v9750_v53 = vpop.eup %9749 }
0x12a5   :  { %v4327_v63 = vsel %vm224_vm2, %v9750_v53, 0.0  ;;  %v9752_v11 = vpop.eup %9751 }
0x12a6   :  { %4328 = vadd.xlane.f32.xlu0 %v4327_v63  ;;  %v4206_v3 = vsel %vm224_vm2, %v9752_v11, 0.0 }
0x12a8   :  { %v9754_v9 = vpop.eup %9753 }
0x12a9   :  { %v4330_v28 = vsel %vm224_vm2, %v9754_v9, 0.0 }
0x12aa   :  { %4207 = vadd.xlane.f32.xlu0 %v4206_v3 }
0x12ae   :  { %4331 = vadd.xlane.f32.xlu0 %v4330_v28 }
0x12c4   :  { %4341 = vrot.lane.b32.xlu0 %v11149_v62, %s9823_s27 }
0x12c8   :  { %4491 = vrot.lane.b32.xlu0 %v11136_v44, %s12215_s1 }
0x132b   :  { %v4205_v17 = vpop.xlane.xlu0 %4204 }
0x132c   :  { %9755 = vrcp.f32 %v4205_v17 }
0x132f   :  { %v4329_v14 = vpop.xlane.xlu0 %4328 }
0x1333   :  { %v4208_v33 = vpop.xlane.xlu0 %4207 }
0x1334   :  { %9757 = vrcp.f32 %v4208_v33 }
0x1337   :  { %v4332_v59 = vpop.xlane.xlu0 %4331 }
0x1338   :  { %9759 = vrcp.f32 %v4332_v59 }
0x1339   :  { %9761 = vrcp.f32 %v4329_v14  ;;  %v9756_v1 = vpop.eup %9755 }
0x133a   :  { %v4213_v57 = vmul.f32 %v9756_v1, %v9748_v39 }
0x133b   :  { %v4342_v48 = vpop.permute.xlu0 %4341 }
0x133f   :  { %v4492_v38 = vpop.permute.xlu0 %4491 }
0x1341   :  { %v9758_v21 = vpop.eup %9757 }
0x1342   :  { %v4214_v58 = vmul.f32 %v9758_v21, %v9752_v11 }
0x1344   :  { %v4215_v20 = vpack.c.bf16 %v4214_v58, %v4213_v57 }
0x1345   :  { %v9760_v54 = vpop.eup %9759 }
0x1346   :  { %9338 = vmatmul.mubr.msk.bf16.vlgmr.msra.gmra.mxu1 %vm224_vm2, %v4215_v20  ;;  %v9762_v7 = vpop.eup %9761  ;;  %v4338_v13 = vmul.f32 %v9760_v54, %v9754_v9 }
0x1347   :  { %9348 = vmatpush3.bf16.msra.mxu1 %v4342_v48  ;;  %9349 = vmatprep.mubr.msk.bf16.mxu1 %vm9822_vm1, %v9821_v35  ;;  %v4337_v26 = vmul.f32 %v9762_v7, %v9750_v53 }
0x1348   :  { %9359 = vmatprep.subr.bf16.mxu1 %v9821_v35 }
0x1349   :  { %v4339_v27 = vpack.c.bf16 %v4338_v13, %v4337_v26 }
0x134e   :  { %9350 = vmatmul.mubr.msk.bf16.vlgmr.msra.gmra.mxu1 %vm224_vm2, %v4339_v27 }
0x134f   :  { %9361 = vmatprep.mubr.msk.bf16.mxu1 %vm9822_vm1, %v9821_v35  ;;  %9360 = vmatpush3.bf16.msra.mxu1 %v9575_v49 }
0x1350   :  { %9371 = vmatprep.subr.bf16.mxu1 %v9821_v35 }
0x1406   :  { %v4253_v31 = vpop.f32.mrf.mxu1 }
0x1408   :  { %v9339_v61 = vpop.f32.mrf.mxu1 }
0x140a   :  { %v4256_v29 = vpop.f32.mrf.mxu1 }
0x140b   :  { %v4260_v30 = vpack.c.bf16 %v4256_v29, %v4253_v31 }
0x140c   :  { %v9340_v16 = vpop.f32.mrf.mxu1 }
0x140d   :  { %9362 = vmatmul.mubr.msk.bf16.vlgmr.msra.gmra.mxu1 %vm224_vm2, %v4260_v30 }
0x140e   :  { %v4381_v25 = vpop.f32.mrf.mxu1  ;;  %9373 = vmatprep.mubr.msk.bf16.mxu1 %vm9822_vm1, %v9821_v35 }
0x1410   :  { %v9351_v6 = vpop.f32.mrf.mxu1 }
0x1412   :  { %v4384_v15 = vpop.f32.mrf.mxu1 }
0x1413   :  { %v4388_v18 = vpack.c.bf16 %v4384_v15, %v4381_v25 }
0x1414   :  { %v9352_v34 = vpop.f32.mrf.mxu1 }
0x1415   :  { %9356 = vmatmul.mubr.msk.bf16.vlgmr.msra.gmra.mxu0 %vm224_vm2, %v4388_v18 }
0x1416   :  { %9366 = vmatpush3.bf16.xpose.msra.mxu0 %v4499_v37  ;;  %9367 = vmatprep.mubr.msk.bf16.mxu0 %vm9822_vm1, %v9821_v35 }
0x1417   :  { %9377 = vmatprep.subr.bf16.mxu0 %v9821_v35 }
0x141d   :  { %9368 = vmatmul.mubr.msk.bf16.vlgmr.msra.gmra.mxu0 %vm224_vm2, %v4492_v38  ;;  %v9577_v38 = vld [vmem:[%s12194_s4 + $0x30] sm:$0xff]  }
0x141e   :  { %9379 = vmatprep.mubr.msk.bf16.mxu0 %vm9822_vm1, %v9821_v35  ;;  %9378 = vmatpush3.bf16.msra.mxu0 %v9577_v38 }
0x141f   :  { %9389 = vmatprep.subr.bf16.mxu0 %v9821_v35 }
0x14cd   :  { %v4484_v40 = vpop.f32.mrf.mxu1 }
0x14cf   :  { %v9363_v39 = vpop.f32.mrf.mxu1 }
0x14d1   :  { %v4487_v47 = vpop.f32.mrf.mxu1 }
0x14d3   :  { %v9364_v53 = vpop.f32.mrf.mxu1 }
0x14d5   :  { %v4434_v63 = vpop.f32.mrf.mxu0 }
0x14d6   :  { %v11214_v11 = vadd.f32 %v4484_v40, %v4434_v63 }
0x14d7   :  { %v9357_v3 = vpop.f32.mrf.mxu0 }
0x14d9   :  { %v4437_v9 = vpop.f32.mrf.mxu0 }
0x14da   :  { %v11216_v28 = vadd.f32 %v4487_v47, %v4437_v9 }
0x14db   :  { %v9358_v17 = vpop.f32.mrf.mxu0 }
0x14dd   :  { %v4535_v14 = vpop.f32.mrf.mxu0 }
0x14de   :  { %v4536_v33 = vadd.f32 %v11163_v0, %v4535_v14 }
0x14df   :  { %v9369_v59 = vpop.f32.mrf.mxu0 }
0x14e0   :  { %v4542_v1 = vsel %vm224_vm2, %v4536_v33, -inf }
0x14e1   :  { %4543 = vmax.xlane.f32.xlu0 %v4542_v1  ;;  %v4538_v21 = vpop.f32.mrf.mxu0 }
0x14e2   :  { %v4539_v57 = vadd.f32 %v11170_v32, %v4538_v21 }
0x14e3   :  { %v9370_v58 = vpop.f32.mrf.mxu0 }
0x14e4   :  { %v4545_v20 = vsel %vm224_vm2, %v4539_v57, -inf }
0x14e5   :  { %4546 = vmax.xlane.f32.xlu1 %v4545_v20 }
0x14f6   :  { %4567 = vrot.lane.b32.xlu1 %v11149_v62, %s12215_s1 }
0x14fa   :  { %4669 = vrot.lane.b32.xlu1 %v11136_v44, %s12216_s30 }
0x156a   :  { %v4544_v54 = vpop.xlane.xlu0 %4543 }
0x156b   :  { %v4548_v48 = vsub.f32 %v4536_v33, %v4544_v54 }
0x156d   :  { %v4550_v7 = vmul.f32 1.442695, %v4548_v48 }
0x156e   :  { %v4547_v13 = vpop.xlane.xlu1 %4546 }
0x156f   :  { %9763 = vpow2.f32 %v4550_v7  ;;  %v4549_v26 = vsub.f32 %v4539_v57, %v4547_v13 }
0x1571   :  { %v4552_v27 = vmul.f32 1.442695, %v4549_v26 }
0x1572   :  { %v4568_v49 = vpop.permute.xlu1 %4567 }
0x1573   :  { %9765 = vpow2.f32 %v4552_v27  ;;  %9372 = vmatpush3.bf16.msra.mxu1 %v4568_v49 }
0x1574   :  { %9383 = vmatprep.subr.bf16.mxu1 %v9821_v35 }
0x157c   :  { %v9764_v50 = vpop.eup %9763 }
0x157d   :  { %v4554_v31 = vsel %vm224_vm2, %v9764_v50, 0.0 }
0x157e   :  { %4555 = vadd.xlane.f32.xlu0 %v4554_v31 }
0x1580   :  { %v9766_v61 = vpop.eup %9765 }
0x1581   :  { %v4557_v29 = vsel %vm224_vm2, %v9766_v61, 0.0 }
0x1582   :  { %4558 = vadd.xlane.f32.xlu0 %v4557_v29 }
0x1598   :  { %4671 = vrot.lane.b32.xlu0 %v11136_v44, %s12217_s0  ;;  %v4670_v44 = vpop.permute.xlu1 %4669 }
0x1607   :  { %v4556_v30 = vpop.xlane.xlu0 %4555 }
0x1608   :  { %9767 = vrcp.f32 %v4556_v30 }
0x160b   :  { %v4559_v16 = vpop.xlane.xlu0 %4558 }
0x160c   :  { %9769 = vrcp.f32 %v4559_v16 }
0x160f   :  { %v4672_v18 = vpop.permute.xlu0 %4671 }
0x1610   :  { %v4677_v37 = vsel %vm224_vm2, %v4672_v18, 0 }
0x1615   :  { %v9768_v25 = vpop.eup %9767 }
0x1616   :  { %v4564_v56 = vmul.f32 %v9768_v25, %v9764_v50 }
0x1619   :  { %v9770_v6 = vpop.eup %9769 }
0x161a   :  { %v4565_v15 = vmul.f32 %v9770_v6, %v9766_v61 }
0x161c   :  { %v4566_v34 = vpack.c.bf16 %v4565_v15, %v4564_v56 }
0x161e   :  { %9374 = vmatmul.mubr.msk.bf16.vlgmr.msra.gmra.mxu1 %vm224_vm2, %v4566_v34 }
0x161f   :  { %9384 = vmatpush3.bf16.xpose.msra.mxu1 %v4677_v37  ;;  %9385 = vmatprep.mubr.msk.bf16.mxu1 %vm9822_vm1, %v9821_v35 }
0x1620   :  { %9395 = vmatprep.subr.bf16.mxu1 %v9821_v35 }
0x1626   :  { %9386 = vmatmul.mubr.msk.bf16.vlgmr.msra.gmra.mxu1 %vm224_vm2, %v4670_v44 }
0x1627   :  { %9397 = vmatprep.mubr.msk.bf16.mxu1 %vm9822_vm1, %v9821_v35 }
0x16de   :  { %v4607_v40 = vpop.f32.mrf.mxu1 }
0x16e0   :  { %v9375_v39 = vpop.f32.mrf.mxu1 }
0x16e2   :  { %v4610_v47 = vpop.f32.mrf.mxu1 }
0x16e3   :  { %v4614_v53 = vpack.c.bf16 %v4610_v47, %v4607_v40  ;;  %v8320_v40 = vld [vmem:[%s12195_s5 + $0x1] ss:$0 sm:$0xff] }
0x16e4   :  { %v9376_v63 = vpop.f32.mrf.mxu1 }
0x16e5   :  { %9380 = vmatmul.mubr.msk.bf16.vlgmr.msra.gmra.mxu0 %vm224_vm2, %v4614_v53 }
0x16e6   :  { %v4713_v3 = vpop.f32.mrf.mxu1  ;;  %9391 = vmatprep.mubr.msk.bf16.mxu0 %vm9822_vm1, %v9821_v35 }
0x16e7   :  { %v4714_v9 = vadd.f32 %v11163_v0, %v4713_v3 }
0x16e8   :  { %v9387_v17 = vpop.f32.mrf.mxu1 }
0x16e9   :  { %v4720_v14 = vsel %vm224_vm2, %v4714_v9, -inf }
0x16ea   :  { %4721 = vmax.xlane.f32.xlu1 %v4720_v14  ;;  %v4716_v33 = vpop.f32.mrf.mxu1 }
0x16eb   :  { %v4717_v59 = vadd.f32 %v11170_v32, %v4716_v33 }
0x16ec   :  { %v9388_v1 = vpop.f32.mrf.mxu1 }
0x16ed   :  { %v4723_v21 = vsel %vm224_vm2, %v4717_v59, -inf }
0x16ee   :  { %4724 = vmax.xlane.f32.xlu0 %v4723_v21 }
0x1773   :  { %v4722_v57 = vpop.xlane.xlu1 %4721 }
0x1774   :  { %v4726_v58 = vsub.f32 %v4714_v9, %v4722_v57 }
0x1776   :  { %v4728_v20 = vmul.f32 1.442695, %v4726_v58 }
0x1777   :  { %v4725_v54 = vpop.xlane.xlu0 %4724 }
0x1778   :  { %9771 = vpow2.f32 %v4728_v20  ;;  %v4727_v48 = vsub.f32 %v4717_v59, %v4725_v54 }
0x177a   :  { %v4730_v35 = vmul.f32 1.442695, %v4727_v48 }
0x177c   :  { %9773 = vpow2.f32 %v4730_v35 }
0x1785   :  { %v9772_v0 = vpop.eup %9771 }
0x1786   :  { %v4732_v7 = vsel %vm224_vm2, %v9772_v0, 0.0 }
0x1787   :  { %4733 = vadd.xlane.f32.xlu0 %v4732_v7 }
0x1789   :  { %v9774_v13 = vpop.eup %9773 }
0x178a   :  { %v4735_v26 = vsel %vm224_vm2, %v9774_v13, 0.0 }
0x178b   :  { %4736 = vadd.xlane.f32.xlu1 %v4735_v26 }
0x179d   :  { %4745 = vrot.lane.b32.xlu0 %v11149_v62, %s12216_s30  ;;  %v9578_v62 = vld [vmem:[%s12194_s4 + $0x38] sm:$0xff]  }
0x179e   :  { %9396 = vmatpush3.bf16.msra.mxu1 %v9578_v62 }
0x17a5   :  { %v4660_v32 = vpop.f32.mrf.mxu0 }
0x17a6   :  { %v4667_v27 = vadd.f32 %v4660_v32, %v11214_v11 }
0x17a7   :  { %v9381_v49 = vpop.f32.mrf.mxu0 }
0x17a9   :  { %v4663_v50 = vpop.f32.mrf.mxu0 }
0x17aa   :  { %v4668_v31 = vadd.f32 %v4663_v50, %v11216_v28 }
0x17ab   :  { %v9382_v61 = vpop.f32.mrf.mxu0 }
0x1810   :  { %v4734_v29 = vpop.xlane.xlu0 %4733 }
0x1811   :  { %9775 = vrcp.f32 %v4734_v29 }
0x1814   :  { %v4737_v30 = vpop.xlane.xlu1 %4736  ;;  %v4746_v16 = vpop.permute.xlu0 %4745 }
0x1815   :  { %9777 = vrcp.f32 %v4737_v30  ;;  %9390 = vmatpush3.bf16.msra.mxu0 %v4746_v16 }
0x181e   :  { %v9776_v25 = vpop.eup %9775 }
0x181f   :  { %v4742_v56 = vmul.f32 %v9776_v25, %v9772_v0 }
0x1822   :  { %v9778_v6 = vpop.eup %9777 }
0x1823   :  { %v4743_v15 = vmul.f32 %v9778_v6, %v9774_v13 }
0x1825   :  { %v4744_v18 = vpack.c.bf16 %v4743_v15, %v4742_v56 }
0x1827   :  { %9392 = vmatmul.mubr.msk.bf16.vlgmr.msra.gmra.mxu0 %vm224_vm2, %v4744_v18 }
0x1828   :  { %5445 = vmatprep.mubr.bf16.mxu0 %v9819_v4 }
0x18e7   :  { %v4785_v11 = vpop.f32.mrf.mxu0 }
0x18e9   :  { %v9393_v28 = vpop.f32.mrf.mxu0 }
0x18eb   :  { %v4788_v34 = vpop.f32.mrf.mxu0 }
0x18ec   :  { %v4792_v37 = vpack.c.bf16 %v4788_v34, %v4785_v11 }
0x18ed   :  { %v9394_v44 = vpop.f32.mrf.mxu0 }
0x18ee   :  { %9398 = vmatmul.mubr.msk.bf16.vlgmr.msra.gmra.mxu1 %vm224_vm2, %v4792_v37 }
0x18ef   :  { %5488 = vmatprep.mubr.bf16.mxu1 %v9819_v4 }
0x19ae   :  { %v4838_v38 = vpop.f32.mrf.mxu1 }
0x19af   :  { %v4845_v39 = vadd.f32 %v4838_v38, %v4667_v27 }
0x19b0   :  { %v9399_v47 = vpop.f32.mrf.mxu1 }
0x19b1   :  { %v4855_v53 = vadd.f32 %v8320_v40, %v4845_v39 }
0x19b2   :  { %v4841_v63 = vpop.f32.mrf.mxu1 }
0x19b3   :  { %v4859_v3 = vcombine.high %v4855_v53, %v4855_v53  ;;  %v4866_v9 = vrot.slane %v4855_v53, %v9963_v19  ;;  %v4846_v17 = vadd.f32 %v4841_v63, %v4668_v31 }
0x19b4   :  { %v9400_v14 = vpop.f32.mrf.mxu1 }
0x19b5   :  { %v4873_v33 = vrot.slane %v4859_v3, %v9963_v19  ;;  %v4874_v59 = vcombine.high %v4866_v9, %v4866_v9  ;;  %v4856_v1 = vadd.f32 %v8320_v40, %v4846_v17  ;;  %v4901_v54 = vadd.f32 %v4866_v9, %v11101_v22 }
0x19b7   :  { %v4875_v21 = vcombine.high %v4873_v33, %v4873_v33  ;;  %v4876_v57 = vcombine.high %v4856_v1, %v4856_v1  ;;  %v4883_v58 = vrot.slane %v4856_v1, %v9963_v19  ;;  %v4902_v20 = vadd.f32 %v4874_v59, %v11103_v23 }
0x19b8   :  { %v4903_v0 = vadd.f32 %v4873_v33, %v11105_v5 }
0x19b9   :  { %v4890_v48 = vrot.slane %v4876_v57, %v9963_v19  ;;  %v4891_v35 = vcombine.high %v4883_v58, %v4883_v58  ;;  %v4904_v7 = vadd.f32 %v4875_v21, %v11107_v24  ;;  %v4921_v13 = vcombine.low %v4901_v54, %v4902_v20 }
0x19ba   :  { %v4905_v32 = vadd.f32 %v4883_v58, %v11113_v51 }
0x19bb   :  { %v4892_v26 = vcombine.high %v4890_v48, %v4890_v48  ;;  %v4922_v27 = vcombine.low %v4903_v0, %v4904_v7  ;;  %v4906_v49 = vadd.f32 %v4891_v35, %v11115_v52  ;;  %v4907_v50 = vadd.f32 %v4890_v48, %v11117_v10 }
0x19bc   :  { %v4929_v23 = vrot.slane %v4921_v13, %v9963_v19 }
0x19bd   :  { %v4936_v22 = vrot.slane %v4922_v27, %v9963_v19  ;;  %v4908_v31 = vadd.f32 %v4892_v26, %v11119_v12  ;;  %v4938_v61 = vcombine.low %v4905_v32, %v4906_v49 }
0x19bf   :  { %v4937_v29 = vcombine.low %v4929_v23, %v4936_v22  ;;  %v4939_v5 = vcombine.low %v4907_v50, %v4908_v31  ;;  %v4946_v30 = vrot.slane %v4938_v61, %v9963_v19  ;;  %v8339_v23 = vld [vmem:[%s12196_s6 + $0x3c0] sm:$0xff]  ;;  %v8338_v22 = vld [vmem:[%s12196_s6 + $0x388] sm:$0xff] }
0x19c1   :  { %v4957_v24 = vsel %vm172_vm0, %v4937_v29, 0.0  ;;  %v4953_v51 = vrot.slane %v4939_v5, %v9963_v19  ;;  %v8340_v29 = vld [vmem:[%s12196_s6 + $0x3c8] sm:$0xff]  ;;  %v8333_v5 = vld [vmem:[%s12196_s6 + $0x300] sm:$0xff] }
0x19c2   :  { %4958 = vadd.xlane.f32.xlu1 %v4957_v24  ;;  %v8335_v24 = vld [vmem:[%s12196_s6 + $0x340] sm:$0xff] }
0x19c3   :  { %v4954_v16 = vcombine.low %v4946_v30, %v4953_v51  ;;  %v8356_v30 = vcombine.low %v8338_v22, %v8340_v29  ;;  %v8357_v51 = vcombine.high %v8338_v22, %v8340_v29  ;;  %v8323_v22 = vld [vmem:[%s12200_s10 + $0x1] ss:$0 sm:$0xff] }
0x19c5   :  { %v4960_v52 = vsel %vm172_vm0, %v4954_v16, 0.0  ;;  %v8351_v16 = vcombine.high %v8333_v5, %v8335_v24  ;;  %5464 = vmatprep.subr.bf16.mxu1 %v8357_v51 }
0x19c6   :  { %4961 = vadd.xlane.f32.xlu1 %v4960_v52  ;;  %v8334_v52 = vld [vmem:[%s12196_s6 + $0x308] sm:$0xff]  ;;  %5465 = vmatpush1.bf16.msra.mxu1 %v8356_v30 }
0x1a4b   :  { %v4959_v10 = vpop.xlane.xlu1 %4958 }
0x1a4c   :  { %v4963_v25 = vmul.f32 0.015625, %v4959_v10  ;;  %v8336_v10 = vld [vmem:[%s12196_s6 + $0x348] sm:$0xff] }
0x1a4e   :  { %v4973_v6 = vrot.slane %v4963_v25, %v10166_v41  ;;  %v4980_v12 = vrot.slane %v4963_v25, %v10169_v42  ;;  %v4987_v56 = vrot.slane %v4963_v25, %v10172_v43  ;;  %v4994_v15 = vrot.slane %v4963_v25, %v10175_v46  ;;  %v8329_v25 = vld [vmem:[%s12196_s6 + $0x280] sm:$0xff] }
0x1a4f   :  { %v4962_v18 = vpop.xlane.xlu1 %4961 }
0x1a50   :  { %v4964_v62 = vmul.f32 0.015625, %v4962_v18  ;;  %v11288_v11 = vsub.f32 %v4901_v54, %v4973_v6  ;;  %v11290_v28 = vsub.f32 %v4902_v20, %v4980_v12  ;;  %v11292_v34 = vsub.f32 %v4903_v0, %v4987_v56  ;;  %v8331_v12 = vld [vmem:[%s12196_s6 + $0x2c0] sm:$0xff]  ;;  %v8330_v56 = vld [vmem:[%s12196_s6 + $0x288] sm:$0xff] }
0x1a51   :  { %v11294_v37 = vsub.f32 %v4904_v7, %v4994_v15  ;;  %v8353_v6 = vcombine.high %v8334_v52, %v8336_v10  ;;  %v8332_v15 = vld [vmem:[%s12196_s6 + $0x2c8] sm:$0xff]  ;;  %v8350_v18 = vcombine.low %v8333_v5, %v8335_v24  ;;  %v5189_v5 = vrot.slane %v8323_v22, %v9963_v19 }
0x1a52   :  { %v5001_v44 = vrot.slane %v4964_v62, %v10166_v41  ;;  %v5008_v38 = vrot.slane %v4964_v62, %v10169_v42  ;;  %v5015_v40 = vrot.slane %v4964_v62, %v10172_v43  ;;  %v5022_v39 = vrot.slane %v4964_v62, %v10175_v46 }
0x1a53   :  { %v5039_v47 = vmul.f32 %v11288_v11, %v11288_v11  ;;  %v5040_v53 = vmul.f32 %v11290_v28, %v11290_v28  ;;  %v5041_v63 = vmul.f32 %v11292_v34, %v11292_v34  ;;  %v5042_v3 = vmul.f32 %v11294_v37, %v11294_v37  ;;  %5466 = vmatprep.subr.bf16.mxu1 %v8353_v6 }
0x1a54   :  { %v11308_v9 = vsub.f32 %v4905_v32, %v5001_v44  ;;  %v11310_v17 = vsub.f32 %v4906_v49, %v5008_v38  ;;  %v11312_v14 = vsub.f32 %v4907_v50, %v5015_v40  ;;  %v11314_v33 = vsub.f32 %v4908_v31, %v5022_v39  ;;  %v8337_v50 = vld [vmem:[%s12196_s6 + $0x380] sm:$0xff]  ;;  %v11372_v40 = vld [vmem:[%s12196_s6 + $0x390] sm:$0xff] }
0x1a55   :  { %v5055_v59 = vcombine.low %v5039_v47, %v5040_v53  ;;  %v5056_v1 = vcombine.low %v5041_v63, %v5042_v3  ;;  %v8354_v31 = vcombine.low %v8337_v50, %v8339_v23  ;;  %v8355_v61 = vcombine.high %v8337_v50, %v8339_v23  ;;  %v8325_v38 = vld [vmem:[%s12196_s6 + $0x200] sm:$0xff]  ;;  %v11377_v39 = vld [vmem:[%s12196_s6 + $0x3d0] sm:$0xff]  ;;  %v11387_v3 = vld [vmem:[%s12196_s6 + $0x398] sm:$0xff] }
0x1a56   :  { %v5043_v21 = vmul.f32 %v11308_v9, %v11308_v9  ;;  %v5044_v57 = vmul.f32 %v11310_v17, %v11310_v17  ;;  %v5045_v58 = vmul.f32 %v11312_v14, %v11312_v14  ;;  %v5046_v20 = vmul.f32 %v11314_v33, %v11314_v33  ;;  %v8327_v53 = vld [vmem:[%s12196_s6 + $0x240] sm:$0xff] }
0x1a57   :  { %v5063_v54 = vrot.slane %v5055_v59, %v9963_v19  ;;  %v5070_v48 = vrot.slane %v5056_v1, %v9963_v19  ;;  %5421 = vmatprep.subr.bf16.mxu0 %v8355_v61  ;;  %v8352_v62 = vcombine.low %v8334_v52, %v8336_v10  ;;  %v8347_v44 = vcombine.high %v8329_v25, %v8331_v12  ;;  %v11392_v59 = vld [vmem:[%s12196_s6 + $0x3d8] sm:$0xff]  ;;  %v8326_v1 = vld [vmem:[%s12196_s6 + $0x208] sm:$0xff] }
0x1a58   :  { %v5072_v35 = vcombine.low %v5043_v21, %v5044_v57  ;;  %v5073_v0 = vcombine.low %v5045_v58, %v5046_v20  ;;  %5422 = vmatpush1.bf16.msra.mxu0 %v8354_v31  ;;  %v8349_v47 = vcombine.high %v8330_v56, %v8332_v15  ;;  %v8453_v63 = vcombine.low %v11372_v40, %v11377_v39  ;;  %v8328_v21 = vld [vmem:[%s12196_s6 + $0x248] sm:$0xff]  ;;  %v8324_v31 = vld [vmem:[%s12201_s11 + $0x1] ss:$0 sm:$0xff] }
0x1a59   :  { %v5071_v7 = vcombine.low %v5063_v54, %v5070_v48  ;;  %5423 = vmatprep.subr.bf16.mxu0 %v8351_v16  ;;  %v8455_v57 = vcombine.low %v11387_v3, %v11392_v59  ;;  %v8346_v58 = vcombine.low %v8329_v25, %v8331_v12  ;;  %5467 = vmatpush1.bf16.msra.mxu1 %v8352_v62 }
0x1a5a   :  { %v5080_v13 = vrot.slane %v5072_v35, %v9963_v19  ;;  %v5087_v26 = vrot.slane %v5073_v0, %v9963_v19  ;;  %v8348_v20 = vcombine.low %v8330_v56, %v8332_v15  ;;  %v8343_v54 = vcombine.high %v8325_v38, %v8327_v53  ;;  %5468 = vmatprep.subr.bf16.mxu1 %v8349_v47 }
0x1a5b   :  { %v5091_v32 = vsel %vm172_vm0, %v5071_v7, 0.0  ;;  %v8345_v48 = vcombine.high %v8326_v1, %v8328_v21  ;;  %v8342_v35 = vcombine.low %v8325_v38, %v8327_v53  ;;  %v8344_v0 = vcombine.low %v8326_v1, %v8328_v21 }
0x1a5c   :  { %5092 = vadd.xlane.f32.xlu1 %v5091_v32  ;;  %v5088_v27 = vcombine.low %v5080_v13, %v5087_v26  ;;  %5424 = vmatpush1.bf16.msra.mxu0 %v8350_v18  ;;  %v8454_v7 = vcombine.high %v11372_v40, %v11377_v39  ;;  %v8456_v13 = vcombine.high %v11387_v3, %v11392_v59  ;;  %v8425_v40 = vld [vmem:[%s12196_s6 + $0x218] sm:$0xff] }
0x1a5d   :  { %5425 = vmatprep.subr.bf16.mxu0 %v8347_v44  ;;  %5469 = vmatpush1.bf16.msra.mxu1 %v8348_v20  ;;  %v5182_v61 = vcombine.high %v8323_v22, %v8323_v22  ;;  %v5216_v29 = vcombine.high %v8324_v31, %v8324_v31  ;;  %v5223_v51 = vrot.slane %v8324_v31, %v9963_v19  ;;  %v8427_v39 = vld [vmem:[%s12196_s6 + $0x258] sm:$0xff] }
0x1a5e   :  { %v5094_v49 = vsel %vm172_vm0, %v5088_v27, 0.0  ;;  %5470 = vmatprep.subr.bf16.mxu1 %v8345_v48  ;;  %v5197_v12 = vcombine.high %v5189_v5, %v5189_v5 }
0x1a5f   :  { %v5196_v24 = vrot.slane %v5182_v61, %v9963_v19  ;;  %v5230_v16 = vrot.slane %v5216_v29, %v9963_v19  ;;  %v5231_v47 = vcombine.high %v5223_v51, %v5223_v51 }
0x1a60   :  { %5095 = vadd.xlane.f32.xlu1 %v5094_v49  ;;  %5426 = vmatpush1.bf16.msra.mxu0 %v8346_v58 }
0x1a61   :  { %5427 = vmatprep.subr.bf16.mxu0 %v8343_v54  ;;  %5471 = vmatpush1.bf16.msra.mxu1 %v8344_v0  ;;  %v5198_v56 = vcombine.high %v5196_v24, %v5196_v24  ;;  %v5232_v53 = vcombine.high %v5230_v16, %v5230_v16 }
0x1a62   :  { %5745 = vmatprep.subr.bf16.mxu1 %v8456_v13 }
0x1a64   :  { %5428 = vmatpush1.bf16.msra.mxu0 %v8342_v35 }
0x1a65   :  { %5702 = vmatprep.subr.bf16.mxu0 %v8454_v7 }
0x1ae5   :  { %v5093_v26 = vpop.xlane.xlu1 %5092 }
0x1ae6   :  { %v5097_v32 = vmul.f32 0.015625, %v5093_v26 }
0x1ae8   :  { %v5099_v27 = vadd.f32 1e-05, %v5097_v32 }
0x1ae9   :  { %v5096_v49 = vpop.xlane.xlu1 %5095 }
0x1aea   :  { %9779 = vrsqrt.f32 %v5099_v27  ;;  %v5098_v50 = vmul.f32 0.015625, %v5096_v49 }
0x1aec   :  { %v5100_v23 = vadd.f32 1e-05, %v5098_v50 }
0x1aee   :  { %9781 = vrsqrt.f32 %v5100_v23 }
0x1af7   :  { %v9780_v30 = vpop.eup %9779 }
0x1af8   :  { %v5111_v52 = vrot.slane %v9780_v30, %v10166_v41  ;;  %v5118_v10 = vrot.slane %v9780_v30, %v10169_v42  ;;  %v5125_v25 = vrot.slane %v9780_v30, %v10172_v43  ;;  %v5132_v6 = vrot.slane %v9780_v30, %v10175_v46 }
0x1afa   :  { %v5169_v15 = vmul.f32 %v5111_v52, %v11288_v11  ;;  %v5170_v18 = vmul.f32 %v5118_v10, %v11290_v28  ;;  %v5171_v62 = vmul.f32 %v5125_v25, %v11292_v34  ;;  %v5172_v44 = vmul.f32 %v5132_v6, %v11294_v37  ;;  %v8434_v52 = vld [vmem:[%s12196_s6 + $0x350] sm:$0xff]  ;;  %v8433_v10 = vld [vmem:[%s12196_s6 + $0x318] sm:$0xff] }
0x1afb   :  { %v9782_v38 = vpop.eup %9781  ;;  %v8435_v25 = vld [vmem:[%s12196_s6 + $0x358] sm:$0xff] }
0x1afc   :  { %v5139_v1 = vrot.slane %v9782_v38, %v10166_v41  ;;  %v5146_v21 = vrot.slane %v9782_v38, %v10169_v42  ;;  %v5153_v58 = vrot.slane %v9782_v38, %v10172_v43  ;;  %v5160_v20 = vrot.slane %v9782_v38, %v10175_v46  ;;  %v8429_v38 = vld [vmem:[%s12196_s6 + $0x298] sm:$0xff] }
0x1afd   :  { %v5203_v54 = vmul.f32 %v5189_v5, %v5169_v15  ;;  %v5204_v48 = vmul.f32 %v5197_v12, %v5170_v18  ;;  %v5205_v11 = vmul.f32 %v5196_v24, %v5171_v62  ;;  %v5206_v35 = vmul.f32 %v5198_v56, %v5172_v44  ;;  %v8428_v62 = vld [vmem:[%s12196_s6 + $0x290] sm:$0xff] }
0x1afe   :  { %v5173_v28 = vmul.f32 %v5139_v1, %v11308_v9  ;;  %v5174_v34 = vmul.f32 %v5146_v21, %v11310_v17  ;;  %v5175_v37 = vmul.f32 %v5153_v58, %v11312_v14  ;;  %v5176_v0 = vmul.f32 %v5160_v20, %v11314_v33  ;;  %v8430_v44 = vld [vmem:[%s12196_s6 + $0x2d0] sm:$0xff] }
0x1aff   :  { %v11432_v7 = vadd.f32 %v5223_v51, %v5203_v54  ;;  %v11434_v13 = vadd.f32 %v5231_v47, %v5204_v48  ;;  %v11436_v26 = vadd.f32 %v5230_v16, %v5205_v11  ;;  %v11438_v32 = vadd.f32 %v5232_v53, %v5206_v35  ;;  %v8424_v20 = vld [vmem:[%s12196_s6 + $0x210] sm:$0xff]  ;;  %v9579_v35 = vld [vmem:[%s12198_s8 + $0x578] sm:$0xff]  }
0x1b00   :  { %v5207_v27 = vmul.f32 %v5189_v5, %v5173_v28  ;;  %v5208_v49 = vmul.f32 %v5197_v12, %v5174_v34  ;;  %v5209_v50 = vmul.f32 %v5196_v24, %v5175_v37  ;;  %v5210_v23 = vmul.f32 %v5198_v56, %v5176_v0  ;;  %v8426_v54 = vld [vmem:[%s12196_s6 + $0x250] sm:$0xff]  ;;  %v9580_v28 = vld [vmem:[%s12198_s8 + $0x5f8] sm:$0xff]  }
0x1b01   :  { %v5253_v9 = vcombine.low %v11432_v7, %v11434_v13  ;;  %v5254_v17 = vcombine.low %v11436_v26, %v11438_v32  ;;  %v8452_v18 = vcombine.high %v8433_v10, %v8435_v25  ;;  %v8451_v1 = vcombine.low %v8433_v10, %v8435_v25  ;;  %v9581_v34 = vld [vmem:[%s12198_s8 + $0x538] sm:$0xff]   ;;  %v9583_v0 = vld [vmem:[%s12198_s8 + $0x570] sm:$0xff]  }
0x1b02   :  { %v11444_v14 = vadd.f32 %v5223_v51, %v5207_v27  ;;  %v11446_v33 = vadd.f32 %v5231_v47, %v5208_v49  ;;  %v11448_v22 = vadd.f32 %v5230_v16, %v5209_v50  ;;  %v11450_v31 = vadd.f32 %v5232_v53, %v5210_v23  ;;  %v8432_v16 = vld [vmem:[%s12196_s6 + $0x310] sm:$0xff]  ;;  %v8431_v47 = vld [vmem:[%s12196_s6 + $0x2d8] sm:$0xff]  ;;  %v9587_v23 = vld [vmem:[%s12198_s8 + $0x568] sm:$0xff]  }
0x1b03   :  { %v5261_v61 = vrot.slane %v5253_v9, %v9963_v19  ;;  %v5268_v29 = vrot.slane %v5254_v17, %v9963_v19  ;;  %v8450_v15 = vcombine.high %v8432_v16, %v8434_v52  ;;  %v8449_v53 = vcombine.low %v8432_v16, %v8434_v52  ;;  %v9582_v37 = vld [vmem:[%s12198_s8 + $0x5b8] sm:$0xff]   ;;  %v9584_v27 = vld [vmem:[%s12198_s8 + $0x5f0] sm:$0xff]   ;;  %v9588_v9 = vld [vmem:[%s12198_s8 + $0x5e8] sm:$0xff]  }
0x1b04   :  { %v5270_v5 = vcombine.low %v11444_v14, %v11446_v33  ;;  %v5271_v24 = vcombine.low %v11448_v22, %v11450_v31  ;;  %v8446_v21 = vcombine.high %v8428_v62, %v8430_v44  ;;  %v8448_v58 = vcombine.high %v8429_v38, %v8431_v47  ;;  %v9585_v49 = vld [vmem:[%s12198_s8 + $0x530] sm:$0xff]   ;;  %v9589_v17 = vld [vmem:[%s12198_s8 + $0x528] sm:$0xff]   ;;  %v9596_v16 = vld [vmem:[%s12198_s8 + $0x5d8] sm:$0xff]  }
0x1b05   :  { %v5269_v6 = vcombine.low %v5261_v61, %v5268_v29  ;;  %v8447_v3 = vcombine.low %v8429_v38, %v8431_v47  ;;  %v8442_v59 = vcombine.high %v8424_v20, %v8426_v54  ;;  %v8441_v48 = vcombine.low %v8424_v20, %v8426_v54  ;;  %v9586_v50 = vld [vmem:[%s12198_s8 + $0x5b0] sm:$0xff]   ;;  %v9590_v61 = vld [vmem:[%s12198_s8 + $0x5a8] sm:$0xff]   ;;  %v9591_v29 = vld [vmem:[%s12198_s8 + $0x560] sm:$0xff]  }
0x1b06   :  { %v5278_v30 = vrot.slane %v5270_v5, %v9963_v19  ;;  %v5285_v51 = vrot.slane %v5271_v24, %v9963_v19  ;;  %v8443_v11 = vcombine.low %v8425_v40, %v8427_v39  ;;  %v9592_v5 = vld [vmem:[%s12198_s8 + $0x5e0] sm:$0xff]   ;;  %v9597_v52 = vld [vmem:[%s12198_s8 + $0x518] sm:$0xff]   ;;  %v9599_v25 = vld [vmem:[%s12198_s8 + $0x550] sm:$0xff]  }
0x1b07   :  { %v9593_v24 = vld [vmem:[%s12198_s8 + $0x520] sm:$0xff]   ;;  %v9598_v10 = vld [vmem:[%s12198_s8 + $0x598] sm:$0xff]   ;;  %v9606_v38 = vld [vmem:[%s12198_s8 + $0x588] sm:$0xff]  }
0x1b08   :  { %v5286_v12 = vcombine.low %v5278_v30, %v5285_v51  ;;  %v9594_v30 = vld [vmem:[%s12198_s8 + $0x5a0] sm:$0xff]   ;;  %v9595_v51 = vld [vmem:[%s12198_s8 + $0x558] sm:$0xff]  }
0x1b09   :  { %v9607_v47 = vld [vmem:[%s12198_s8 + $0x540] sm:$0xff]   ;;  %v9612_v20 = vld [vmem:[%s12198_s8 + $0x4f8] sm:$0xff]  }
0x1b0a   :  { %v11472_v56 = vpack.c.bf16 %v5286_v12, %v5269_v6  ;;  %v9600_v6 = vld [vmem:[%s12198_s8 + $0x5d0] sm:$0xff]  }
0x1b0b   :  { %v9601_v12 = vld [vmem:[%s12198_s8 + $0x510] sm:$0xff]  }
0x1b0c   :  { %8358 = vmatmul.mubr.msk.bf16.vlgmr.msra.gmra.mxu0 %vm172_vm0, %v11472_v56  ;;  %8359 = vmatmul.mubr.msk.bf16.vlgmr.msra.gmra.mxu1 %vm172_vm0, %v11472_v56 }
0x1b0d   :  { %5703 = vmatpush1.bf16.msra.mxu0 %v8453_v63  ;;  %5746 = vmatpush1.bf16.msra.mxu1 %v8455_v57  ;;  %v8445_v63 = vcombine.low %v8428_v62, %v8430_v44  ;;  %v8444_v57 = vcombine.high %v8425_v40, %v8427_v39  ;;  %v9604_v62 = vld [vmem:[%s12198_s8 + $0x5c8] sm:$0xff]  }
0x1b0e   :  { %5704 = vmatprep.subr.bf16.mxu0 %v8450_v15  ;;  %5747 = vmatprep.subr.bf16.mxu1 %v8452_v18  ;;  %v9602_v15 = vld [vmem:[%s12198_s8 + $0x590] sm:$0xff]   ;;  %v9603_v18 = vld [vmem:[%s12198_s8 + $0x548] sm:$0xff]  }
0x1b0f   :  { %5726 = vmatprep.mubr.bf16.mxu0 %v9819_v4  ;;  %5769 = vmatprep.mubr.bf16.mxu1 %v9819_v4  ;;  %v9605_v44 = vld [vmem:[%s12198_s8 + $0x508] sm:$0xff]  }
0x1b11   :  { %5705 = vmatpush1.bf16.msra.mxu0 %v8449_v53  ;;  %5748 = vmatpush1.bf16.msra.mxu1 %v8451_v1  ;;  %v9608_v53 = vld [vmem:[%s12198_s8 + $0x5c0] sm:$0xff]  }
0x1b12   :  { %5706 = vmatprep.subr.bf16.mxu0 %v8446_v21  ;;  %5749 = vmatprep.subr.bf16.mxu1 %v8448_v58  ;;  %v9609_v1 = vld [vmem:[%s12198_s8 + $0x500] sm:$0xff]   ;;  %v9611_v58 = vld [vmem:[%s12198_s8 + $0x478] sm:$0xff]  }
0x1b13   :  { %v9610_v21 = vld [vmem:[%s12198_s8 + $0x580] sm:$0xff]  }
0x1b15   :  { %5707 = vmatpush1.bf16.msra.mxu0 %v8445_v63  ;;  %5750 = vmatpush1.bf16.msra.mxu1 %v8447_v3 }
0x1b16   :  { %5708 = vmatprep.subr.bf16.mxu0 %v8442_v59  ;;  %5751 = vmatprep.subr.bf16.mxu1 %v8444_v57 }
0x1b19   :  { %5709 = vmatpush1.bf16.msra.mxu0 %v8441_v48  ;;  %5752 = vmatpush1.bf16.msra.mxu1 %v8443_v11  ;;  %v8440_v11 = vld [vmem:[%s12197_s7 + $0x14] sm:$0xf] }
0x1b1a   :  { %9081 = vmatprep.subr.bf16.mxu0 %v9579_v35  ;;  %9103 = vmatprep.subr.bf16.mxu1 %v9580_v28 }
0x1b1c   :  { %8457 = vmatmul.mubr.msk.bf16.vlgmr.msra.gmra.mxu0 %vm172_vm0, %v11472_v56  ;;  %8458 = vmatmul.mubr.msk.bf16.vlgmr.msra.gmra.mxu1 %vm172_vm0, %v11472_v56 }
0x1b1d   :  { %9082 = vmatpush3.bf16.msra.mxu0 %v9581_v34  ;;  %9104 = vmatpush3.bf16.msra.mxu1 %v9582_v37  ;;  %v5601_v34 = vrot.slane %v8440_v11, %v10007_v45  ;;  %v5609_v37 = vrot.slane %v8440_v11, %v10518_v60 }
0x1b1e   :  { %9083 = vmatprep.subr.bf16.mxu0 %v9583_v0  ;;  %9105 = vmatprep.subr.bf16.mxu1 %v9584_v27  ;;  %v5597_v0 = vrot.slane %v8440_v11, %v9988_v36  ;;  %v5605_v27 = vrot.slane %v8440_v11, %v10524_v55 }
0x1b21   :  { %9084 = vmatpush3.bf16.msra.mxu0 %v9585_v49  ;;  %9106 = vmatpush3.bf16.msra.mxu1 %v9586_v50 }
0x1b22   :  { %9085 = vmatprep.subr.bf16.mxu0 %v9587_v23  ;;  %9107 = vmatprep.subr.bf16.mxu1 %v9588_v9  ;;  %v11634_v23 = vld [vmem:[%s12197_s7 + $0x10] sm:$0xf] }
0x1b23   :  { %v5317_v9 = vrot.slane %v11634_v23, %v10007_v45 }
0x1b25   :  { %9086 = vmatpush3.bf16.msra.mxu0 %v9589_v17  ;;  %9108 = vmatpush3.bf16.msra.mxu1 %v9590_v61  ;;  %v5325_v17 = vrot.slane %v11634_v23, %v10518_v60 }
0x1b26   :  { %9087 = vmatprep.subr.bf16.mxu0 %v9591_v29  ;;  %9109 = vmatprep.subr.bf16.mxu1 %v9592_v5 }
0x1b29   :  { %9088 = vmatpush3.bf16.msra.mxu0 %v9593_v24  ;;  %9110 = vmatpush3.bf16.msra.mxu1 %v9594_v30 }
0x1b2a   :  { %9089 = vmatprep.subr.bf16.mxu0 %v9595_v51  ;;  %9111 = vmatprep.subr.bf16.mxu1 %v9596_v16 }
0x1b2d   :  { %9090 = vmatpush3.bf16.msra.mxu0 %v9597_v52  ;;  %9112 = vmatpush3.bf16.msra.mxu1 %v9598_v10 }
0x1b2e   :  { %9091 = vmatprep.subr.bf16.mxu0 %v9599_v25  ;;  %9113 = vmatprep.subr.bf16.mxu1 %v9600_v6 }
0x1b31   :  { %9092 = vmatpush3.bf16.msra.mxu0 %v9601_v12  ;;  %9114 = vmatpush3.bf16.msra.mxu1 %v9602_v15 }
0x1b32   :  { %9093 = vmatprep.subr.bf16.mxu0 %v9603_v18  ;;  %9115 = vmatprep.subr.bf16.mxu1 %v9604_v62 }
0x1b35   :  { %9094 = vmatpush3.bf16.msra.mxu0 %v9605_v44  ;;  %9116 = vmatpush3.bf16.msra.mxu1 %v9606_v38 }
0x1b36   :  { %9095 = vmatprep.subr.bf16.mxu0 %v9607_v47  ;;  %9117 = vmatprep.subr.bf16.mxu1 %v9608_v53 }
0x1b39   :  { %9096 = vmatpush3.bf16.msra.mxu0 %v9609_v1  ;;  %9118 = vmatpush3.bf16.msra.mxu1 %v9610_v21 }
0x1b3a   :  { %9125 = vmatprep.subr.bf16.mxu0 %v9611_v58  ;;  %9147 = vmatprep.subr.bf16.mxu1 %v9612_v20 }
0x1bcc   :  { %v11616_v54 = vpop.f32.mrf.mxu0  ;;  %v11618_v40 = vpop.f32.mrf.mxu1 }
0x1bce   :  { %v5449_v39 = vpop.f32.mrf.mxu0  ;;  %v5492_v63 = vpop.f32.mrf.mxu1 }
0x1bcf   :  { %v5450_v62 = vadd.f32 %v5449_v39, %v5317_v9  ;;  %v5493_v44 = vadd.f32 %v5492_v63, %v5325_v17  ;;  %v9614_v39 = vld [vmem:[%s12198_s8 + $0x4b8] sm:$0xff]  }
0x1bd0   :  { %v11620_v3 = vpop.f32.mrf.mxu0  ;;  %v11622_v59 = vpop.f32.mrf.mxu1 }
0x1bd1   :  { %v5500_v63 = vmax.f32 %v5450_v62, 0.0  ;;  %v9631_v62 = vld [vmem:[%s12198_s8 + $0x450] sm:$0xff]  }
0x1bd2   :  { %v5453_v57 = vpop.f32.mrf.mxu0  ;;  %v5496_v48 = vpop.f32.mrf.mxu1 }
0x1bd3   :  { %v5454_v16 = vadd.f32 %v5453_v57, %v5317_v9  ;;  %v5497_v52 = vadd.f32 %v5496_v48, %v5325_v17 }
0x1bd5   :  { %v5504_v20 = vmax.f32 %v5454_v16, 0.0  ;;  %v5506_v11 = vmax.f32 %v5497_v52, 0.0  ;;  %v9623_v16 = vld [vmem:[%s12198_s8 + $0x460] sm:$0xff]  }
0x1bd6   :  { %v9624_v52 = vld [vmem:[%s12198_s8 + $0x4e0] sm:$0xff]  }
0x1bd7   :  { %v5508_v9 = vpack.c.bf16 %v5504_v20, %v5500_v63  ;;  %v9637_v20 = vld [vmem:[%s12198_s8 + $0x408] sm:$0xff]  }
0x1bdc   :  { %v5728_v35 = vpop.f32.mrf.mxu0  ;;  %v5771_v28 = vpop.f32.mrf.mxu1 }
0x1bdd   :  { %v5729_v10 = vadd.f32 %v5728_v35, %v5597_v0  ;;  %v5772_v25 = vadd.f32 %v5771_v28, %v5605_v27  ;;  %v9613_v35 = vld [vmem:[%s12198_s8 + $0x438] sm:$0xff]   ;;  %v5502_v28 = vmax.f32 %v5493_v44, 0.0  ;;  %v9632_v44 = vld [vmem:[%s12198_s8 + $0x4d0] sm:$0xff]  }
0x1bde   :  { %v5730_v49 = vpop.f32.mrf.mxu0  ;;  %v5773_v50 = vpop.f32.mrf.mxu1 }
0x1bdf   :  { %v5731_v5 = vadd.f32 %v5730_v49, %v5601_v34  ;;  %v5774_v24 = vadd.f32 %v5773_v50, %v5609_v37  ;;  %v5780_v49 = vmax.f32 %v5729_v10, 0.0  ;;  %v5782_v50 = vmax.f32 %v5772_v25, 0.0  ;;  %v9625_v10 = vld [vmem:[%s12198_s8 + $0x420] sm:$0xff]  }
0x1be0   :  { %v5732_v61 = vpop.f32.mrf.mxu0  ;;  %v5775_v29 = vpop.f32.mrf.mxu1  ;;  %v5510_v17 = vpack.c.bf16 %v5506_v11, %v5502_v28  ;;  %v9626_v25 = vld [vmem:[%s12198_s8 + $0x4a0] sm:$0xff]   ;;  %v9638_v11 = vld [vmem:[%s12198_s8 + $0x488] sm:$0xff]  }
0x1be1   :  { %v5733_v30 = vadd.f32 %v5732_v61, %v5597_v0  ;;  %v5776_v51 = vadd.f32 %v5775_v29, %v5605_v27  ;;  %v5781_v53 = vmax.f32 %v5731_v5, 0.0  ;;  %v5783_v1 = vmax.f32 %v5774_v24, 0.0  ;;  %v9615_v0 = vld [vmem:[%s12198_s8 + $0x470] sm:$0xff]   ;;  %v9619_v5 = vld [vmem:[%s12198_s8 + $0x468] sm:$0xff]   ;;  %v9641_v28 = vld [vmem:[%s12198_s8 + $0x400] sm:$0xff]  }
0x1be2   :  { %v5734_v6 = vpop.f32.mrf.mxu0  ;;  %v5777_v12 = vpop.f32.mrf.mxu1  ;;  %v9616_v27 = vld [vmem:[%s12198_s8 + $0x4f0] sm:$0xff]   ;;  %v9620_v24 = vld [vmem:[%s12198_s8 + $0x4e8] sm:$0xff]  }
0x1be3   :  { %v5735_v15 = vadd.f32 %v5734_v6, %v5601_v34  ;;  %v5778_v18 = vadd.f32 %v5777_v12, %v5609_v37  ;;  %v5784_v38 = vmax.f32 %v5733_v30, 0.0  ;;  %v5786_v47 = vmax.f32 %v5776_v51, 0.0  ;;  %v9617_v61 = vld [vmem:[%s12198_s8 + $0x430] sm:$0xff]   ;;  %v9621_v30 = vld [vmem:[%s12198_s8 + $0x428] sm:$0xff]   ;;  %v9627_v6 = vld [vmem:[%s12198_s8 + $0x458] sm:$0xff]  }
0x1be4   :  { %v9618_v29 = vld [vmem:[%s12198_s8 + $0x4b0] sm:$0xff]   ;;  %v9622_v51 = vld [vmem:[%s12198_s8 + $0x4a8] sm:$0xff]   ;;  %v9628_v12 = vld [vmem:[%s12198_s8 + $0x4d8] sm:$0xff]  }
0x1be5   :  { %v5785_v21 = vmax.f32 %v5735_v15, 0.0  ;;  %v5787_v58 = vmax.f32 %v5778_v18, 0.0  ;;  %v5788_v34 = vpack.c.bf16 %v5784_v38, %v5780_v49  ;;  %v5790_v37 = vpack.c.bf16 %v5786_v47, %v5782_v50  ;;  %v9629_v15 = vld [vmem:[%s12198_s8 + $0x418] sm:$0xff]   ;;  %v9633_v38 = vld [vmem:[%s12198_s8 + $0x410] sm:$0xff]  }
0x1be6   :  { %v9630_v18 = vld [vmem:[%s12198_s8 + $0x498] sm:$0xff]   ;;  %v9634_v47 = vld [vmem:[%s12198_s8 + $0x490] sm:$0xff]  }
0x1be7   :  { %v5789_v57 = vpack.c.bf16 %v5785_v21, %v5781_v53  ;;  %v5791_v48 = vpack.c.bf16 %v5787_v58, %v5783_v1  ;;  %v9635_v53 = vld [vmem:[%s12198_s8 + $0x448] sm:$0xff]   ;;  %v5313_v21 = vrot.slane %v11634_v23, %v9988_v36  ;;  %v5321_v58 = vrot.slane %v11634_v23, %v10524_v55  ;;  %v9639_v23 = vld [vmem:[%s12198_s8 + $0x440] sm:$0xff]  }
0x1be8   :  { %v9636_v1 = vld [vmem:[%s12198_s8 + $0x4c8] sm:$0xff]  }
0x1be9   :  { %6080 = vmatprep.mubr.bf16.mxu0 %v5789_v57  ;;  %6121 = vmatprep.mubr.bf16.mxu1 %v5791_v48  ;;  %v5452_v49 = vadd.f32 %v11620_v3, %v5313_v21  ;;  %v5495_v50 = vadd.f32 %v11622_v59, %v5321_v58  ;;  %v9640_v57 = vld [vmem:[%s12198_s8 + $0x4c0] sm:$0xff]   ;;  %v8600_v59 = vld [vmem:[%s12196_s6 + $0x3a8] sm:$0xff]  ;;  %v5491_v63 = vadd.f32 %v11618_v40, %v5321_v58 }
0x1bea   :  { %6081 = vmatmul.mubr.bf16.vlgmr.msra.gmra.mxu0 %v5788_v34  ;;  %6122 = vmatmul.mubr.bf16.vlgmr.msra.gmra.mxu1 %v5790_v37  ;;  %v8599_v48 = vld [vmem:[%s12196_s6 + $0x3a0] sm:$0xff] }
0x1beb   :  { %9126 = vmatpush3.bf16.msra.mxu0 %v9613_v35  ;;  %9148 = vmatpush3.bf16.msra.mxu1 %v9614_v39  ;;  %v8601_v3 = vld [vmem:[%s12196_s6 + $0x3e0] sm:$0xff]  ;;  %v8602_v35 = vld [vmem:[%s12196_s6 + $0x3e8] sm:$0xff]  ;;  %v5448_v39 = vadd.f32 %v11616_v54, %v5313_v21  ;;  %v5503_v37 = vmax.f32 %v5452_v49, 0.0 }
0x1bec   :  { %6354 = vmatprep.mubr.bf16.mxu0 %v5508_v9  ;;  %6395 = vmatprep.mubr.bf16.mxu1 %v5510_v17  ;;  %v9642_v34 = vld [vmem:[%s12198_s8 + $0x480] sm:$0xff]   ;;  %v8619_v9 = vcombine.high %v8600_v59, %v8602_v35  ;;  %v8596_v17 = vld [vmem:[%s12196_s6 + $0x328] sm:$0xff] }
0x1bed   :  { %9127 = vmatprep.subr.bf16.mxu0 %v9615_v0  ;;  %9149 = vmatprep.subr.bf16.mxu1 %v9616_v27  ;;  %v5505_v0 = vmax.f32 %v5495_v50, 0.0  ;;  %v8617_v27 = vcombine.high %v8599_v48, %v8601_v3  ;;  %v8595_v54 = vld [vmem:[%s12196_s6 + $0x320] sm:$0xff]  ;;  %v8590_v21 = vld [vmem:[%s12196_s6 + $0x268] sm:$0xff] }
0x1bee   :  { %v8597_v40 = vld [vmem:[%s12196_s6 + $0x360] sm:$0xff] }
0x1bef   :  { %9128 = vmatpush3.bf16.msra.mxu0 %v9617_v61  ;;  %9150 = vmatpush3.bf16.msra.mxu1 %v9618_v29  ;;  %v8598_v61 = vld [vmem:[%s12196_s6 + $0x368] sm:$0xff]  ;;  %v5499_v29 = vmax.f32 %v5448_v39, 0.0  ;;  %v9648_v39 = vld [vmem:[%s12198_s8 + $0x6f0] sm:$0xff]  }
0x1bf0   :  { %9129 = vmatprep.subr.bf16.mxu0 %v9619_v5  ;;  %9151 = vmatprep.subr.bf16.mxu1 %v9620_v24  ;;  %v5501_v5 = vmax.f32 %v5491_v63, 0.0  ;;  %v8616_v24 = vcombine.low %v8599_v48, %v8601_v3  ;;  %v9644_v48 = vld [vmem:[%s12198_s8 + $0x6f8] sm:$0xff]   ;;  %v9649_v63 = vld [vmem:[%s12198_s8 + $0x630] sm:$0xff]  }
0x1bf1   :  { %v9645_v3 = vld [vmem:[%s12198_s8 + $0x638] sm:$0xff]  }
0x1bf3   :  { %9130 = vmatpush3.bf16.msra.mxu0 %v9621_v30  ;;  %9152 = vmatpush3.bf16.msra.mxu1 %v9622_v51  ;;  %v8618_v30 = vcombine.low %v8600_v59, %v8602_v35  ;;  %v8613_v51 = vcombine.high %v8595_v54, %v8597_v40  ;;  %v9646_v59 = vld [vmem:[%s12198_s8 + $0x6b8] sm:$0xff]   ;;  %v9647_v35 = vld [vmem:[%s12198_s8 + $0x670] sm:$0xff]  }
0x1bf4   :  { %9131 = vmatprep.subr.bf16.mxu0 %v9623_v16  ;;  %9153 = vmatprep.subr.bf16.mxu1 %v9624_v52  ;;  %v5507_v16 = vpack.c.bf16 %v5503_v37, %v5499_v29  ;;  %v5509_v52 = vpack.c.bf16 %v5505_v0, %v5501_v5  ;;  %v9652_v37 = vld [vmem:[%s12198_s8 + $0x6e8] sm:$0xff]   ;;  %v9660_v29 = vld [vmem:[%s12198_s8 + $0x6d8] sm:$0xff]  }
0x1bf5   :  { %v9653_v0 = vld [vmem:[%s12198_s8 + $0x628] sm:$0xff]   ;;  %v9661_v5 = vld [vmem:[%s12198_s8 + $0x618] sm:$0xff]  }
0x1bf7   :  { %9132 = vmatpush3.bf16.msra.mxu0 %v9625_v10  ;;  %9154 = vmatpush3.bf16.msra.mxu1 %v9626_v25  ;;  %v8615_v10 = vcombine.high %v8596_v17, %v8598_v61  ;;  %v8591_v25 = vld [vmem:[%s12196_s6 + $0x2a0] sm:$0xff] }
0x1bf8   :  { %9133 = vmatprep.subr.bf16.mxu0 %v9627_v6  ;;  %9155 = vmatprep.subr.bf16.mxu1 %v9628_v12  ;;  %v8593_v6 = vld [vmem:[%s12196_s6 + $0x2e0] sm:$0xff]  ;;  %v8592_v12 = vld [vmem:[%s12196_s6 + $0x2a8] sm:$0xff] }
0x1bf9   :  { %v8608_v58 = vcombine.low %v8591_v25, %v8593_v6 }
0x1bfb   :  { %9134 = vmatpush3.bf16.msra.mxu0 %v9629_v15  ;;  %9156 = vmatpush3.bf16.msra.mxu1 %v9630_v18  ;;  %v8594_v15 = vld [vmem:[%s12196_s6 + $0x2e8] sm:$0xff]  ;;  %v8612_v18 = vcombine.low %v8595_v54, %v8597_v40  ;;  %v9656_v54 = vld [vmem:[%s12198_s8 + $0x6e0] sm:$0xff]  }
0x1bfc   :  { %9135 = vmatprep.subr.bf16.mxu0 %v9631_v62  ;;  %9157 = vmatprep.subr.bf16.mxu1 %v9632_v44  ;;  %v8614_v62 = vcombine.low %v8596_v17, %v8598_v61  ;;  %v8609_v44 = vcombine.high %v8591_v25, %v8593_v6  ;;  %v9657_v40 = vld [vmem:[%s12198_s8 + $0x620] sm:$0xff]   ;;  %v9659_v61 = vld [vmem:[%s12198_s8 + $0x658] sm:$0xff]   ;;  %v9668_v25 = vld [vmem:[%s12198_s8 + $0x6c8] sm:$0xff]  }
0x1bfd   :  { %v9658_v17 = vld [vmem:[%s12198_s8 + $0x6a0] sm:$0xff]   ;;  %v9669_v6 = vld [vmem:[%s12198_s8 + $0x608] sm:$0xff]  }
0x1bff   :  { %9136 = vmatpush3.bf16.msra.mxu0 %v9633_v38  ;;  %9158 = vmatpush3.bf16.msra.mxu1 %v9634_v47  ;;  %v8611_v38 = vcombine.high %v8592_v12, %v8594_v15  ;;  %v8587_v47 = vld [vmem:[%s12196_s6 + $0x220] sm:$0xff] }
0x1c00   :  { %9137 = vmatprep.subr.bf16.mxu0 %v9635_v53  ;;  %9159 = vmatprep.subr.bf16.mxu1 %v9636_v1  ;;  %v8589_v53 = vld [vmem:[%s12196_s6 + $0x260] sm:$0xff]  ;;  %v8588_v1 = vld [vmem:[%s12196_s6 + $0x228] sm:$0xff] }
0x1c01   :  { %v8607_v49 = vcombine.high %v8588_v1, %v8590_v21  ;;  %v8604_v50 = vcombine.low %v8587_v47, %v8589_v53 }
0x1c03   :  { %9138 = vmatpush3.bf16.msra.mxu0 %v9637_v20  ;;  %9160 = vmatpush3.bf16.msra.mxu1 %v9638_v11  ;;  %v8610_v20 = vcombine.low %v8592_v12, %v8594_v15  ;;  %v8605_v11 = vcombine.high %v8587_v47, %v8589_v53  ;;  %v9670_v12 = vld [vmem:[%s12198_s8 + $0x688] sm:$0xff]   ;;  %v9671_v15 = vld [vmem:[%s12198_s8 + $0x640] sm:$0xff]   ;;  %v11896_v47 = vld [vmem:[%s12196_s6 + $0x3f0] sm:$0xff] }
0x1c04   :  { %9139 = vmatprep.subr.bf16.mxu0 %v9639_v23  ;;  %9161 = vmatprep.subr.bf16.mxu1 %v9640_v57  ;;  %v8606_v23 = vcombine.low %v8588_v1, %v8590_v21  ;;  %v9643_v57 = vld [vmem:[%s12198_s8 + $0x678] sm:$0xff]  }
0x1c05   :  { %v11901_v53 = vld [vmem:[%s12196_s6 + $0x3b8] sm:$0xff] }
0x1c06   :  { %v11908_v21 = vld [vmem:[%s12196_s6 + $0x3f8] sm:$0xff] }
0x1c07   :  { %9140 = vmatpush3.bf16.msra.mxu0 %v9641_v28  ;;  %9162 = vmatpush3.bf16.msra.mxu1 %v9642_v34  ;;  %v9650_v28 = vld [vmem:[%s12198_s8 + $0x6b0] sm:$0xff]   ;;  %v9651_v34 = vld [vmem:[%s12198_s8 + $0x668] sm:$0xff]  }
0x1c08   :  { %6530 = vmatprep.subr.bf16.mxu0 %v8617_v27  ;;  %6573 = vmatprep.subr.bf16.mxu1 %v8619_v9  ;;  %v9654_v27 = vld [vmem:[%s12198_s8 + $0x6a8] sm:$0xff]   ;;  %v9655_v9 = vld [vmem:[%s12198_s8 + $0x660] sm:$0xff]  }
0x1c0a   :  { %6355 = vmatmul.mubr.bf16.vlgmr.msra.gmra.mxu0 %v5507_v16  ;;  %6396 = vmatmul.mubr.bf16.vlgmr.msra.gmra.mxu1 %v5509_v52  ;;  %v9665_v16 = vld [vmem:[%s12198_s8 + $0x610] sm:$0xff]  }
0x1c0b   :  { %6531 = vmatpush1.bf16.msra.mxu0 %v8616_v24  ;;  %6574 = vmatpush1.bf16.msra.mxu1 %v8618_v30  ;;  %v9662_v24 = vld [vmem:[%s12198_s8 + $0x698] sm:$0xff]   ;;  %v9663_v30 = vld [vmem:[%s12198_s8 + $0x650] sm:$0xff]  }
0x1c0c   :  { %6532 = vmatprep.subr.bf16.mxu0 %v8613_v51  ;;  %6575 = vmatprep.subr.bf16.mxu1 %v8615_v10  ;;  %v9664_v51 = vld [vmem:[%s12198_s8 + $0x6d0] sm:$0xff]   ;;  %v9667_v10 = vld [vmem:[%s12198_s8 + $0x648] sm:$0xff]  }
0x1c0d   :  { %6554 = vmatprep.mubr.bf16.mxu0 %v9819_v4  ;;  %6597 = vmatprep.mubr.bf16.mxu1 %v9819_v4  ;;  %v9666_v52 = vld [vmem:[%s12198_s8 + $0x690] sm:$0xff]  }
0x1c0f   :  { %6533 = vmatpush1.bf16.msra.mxu0 %v8612_v18  ;;  %6576 = vmatpush1.bf16.msra.mxu1 %v8614_v62  ;;  %v9672_v18 = vld [vmem:[%s12198_s8 + $0x6c0] sm:$0xff]  }
0x1c10   :  { %6534 = vmatprep.subr.bf16.mxu0 %v8609_v44  ;;  %6577 = vmatprep.subr.bf16.mxu1 %v8611_v38  ;;  %v9673_v62 = vld [vmem:[%s12198_s8 + $0x600] sm:$0xff]   ;;  %v11891_v38 = vld [vmem:[%s12196_s6 + $0x3b0] sm:$0xff] }
0x1c11   :  { %v9674_v44 = vld [vmem:[%s12198_s8 + $0x680] sm:$0xff]   ;;  %v8748_v1 = vcombine.high %v11891_v38, %v11896_v47 }
0x1c13   :  { %6535 = vmatpush1.bf16.msra.mxu0 %v8608_v58  ;;  %6578 = vmatpush1.bf16.msra.mxu1 %v8610_v20  ;;  %v8747_v58 = vcombine.low %v11891_v38, %v11896_v47  ;;  %v8749_v20 = vcombine.low %v11901_v53, %v11908_v21  ;;  %v8719_v38 = vld [vmem:[%s12196_s6 + $0x238] sm:$0xff] }
0x1c14   :  { %6536 = vmatprep.subr.bf16.mxu0 %v8605_v11  ;;  %6579 = vmatprep.subr.bf16.mxu1 %v8607_v49  ;;  %v8750_v11 = vcombine.high %v11901_v53, %v11908_v21  ;;  %v8721_v47 = vld [vmem:[%s12196_s6 + $0x278] sm:$0xff] }
0x1c17   :  { %6537 = vmatpush1.bf16.msra.mxu0 %v8604_v50  ;;  %6580 = vmatpush1.bf16.msra.mxu1 %v8606_v23 }
0x1c18   :  { %9169 = vmatprep.subr.bf16.mxu0 %v9643_v57  ;;  %9191 = vmatprep.subr.bf16.mxu1 %v9644_v48 }
0x1c1a   :  { %8620 = vmatmul.mubr.msk.bf16.vlgmr.msra.gmra.mxu0 %vm172_vm0, %v11472_v56  ;;  %8621 = vmatmul.mubr.msk.bf16.vlgmr.msra.gmra.mxu1 %vm172_vm0, %v11472_v56 }
0x1c1b   :  { %9170 = vmatpush3.bf16.msra.mxu0 %v9645_v3  ;;  %9192 = vmatpush3.bf16.msra.mxu1 %v9646_v59 }
0x1c1c   :  { %9171 = vmatprep.subr.bf16.mxu0 %v9647_v35  ;;  %9193 = vmatprep.subr.bf16.mxu1 %v9648_v39 }
0x1c1f   :  { %9172 = vmatpush3.bf16.msra.mxu0 %v9649_v63  ;;  %9194 = vmatpush3.bf16.msra.mxu1 %v9650_v28 }
0x1c20   :  { %9173 = vmatprep.subr.bf16.mxu0 %v9651_v34  ;;  %9195 = vmatprep.subr.bf16.mxu1 %v9652_v37 }
0x1c23   :  { %9174 = vmatpush3.bf16.msra.mxu0 %v9653_v0  ;;  %9196 = vmatpush3.bf16.msra.mxu1 %v9654_v27 }
0x1c24   :  { %9175 = vmatprep.subr.bf16.mxu0 %v9655_v9  ;;  %9197 = vmatprep.subr.bf16.mxu1 %v9656_v54 }
0x1c27   :  { %9176 = vmatpush3.bf16.msra.mxu0 %v9657_v40  ;;  %9198 = vmatpush3.bf16.msra.mxu1 %v9658_v17 }
0x1c28   :  { %9177 = vmatprep.subr.bf16.mxu0 %v9659_v61  ;;  %9199 = vmatprep.subr.bf16.mxu1 %v9660_v29 }
0x1c2b   :  { %9178 = vmatpush3.bf16.msra.mxu0 %v9661_v5  ;;  %9200 = vmatpush3.bf16.msra.mxu1 %v9662_v24 }
0x1c2c   :  { %9179 = vmatprep.subr.bf16.mxu0 %v9663_v30  ;;  %9201 = vmatprep.subr.bf16.mxu1 %v9664_v51 }
0x1c2f   :  { %9180 = vmatpush3.bf16.msra.mxu0 %v9665_v16  ;;  %9202 = vmatpush3.bf16.msra.mxu1 %v9666_v52 }
0x1c30   :  { %9181 = vmatprep.subr.bf16.mxu0 %v9667_v10  ;;  %9203 = vmatprep.subr.bf16.mxu1 %v9668_v25 }
0x1c33   :  { %9182 = vmatpush3.bf16.msra.mxu0 %v9669_v6  ;;  %9204 = vmatpush3.bf16.msra.mxu1 %v9670_v12  ;;  %v8603_v12 = vld [vmem:[%s12197_s7 + $0x18] sm:$0xf] }
0x1c34   :  { %9183 = vmatprep.subr.bf16.mxu0 %v9671_v15  ;;  %9205 = vmatprep.subr.bf16.mxu1 %v9672_v18 }
0x1c37   :  { %9184 = vmatpush3.bf16.msra.mxu0 %v9673_v62  ;;  %9206 = vmatpush3.bf16.msra.mxu1 %v9674_v44  ;;  %v6429_v62 = vrot.slane %v8603_v12, %v10007_v45  ;;  %v6437_v44 = vrot.slane %v8603_v12, %v10518_v60 }
0x1c38   :  { %7086 = vmatprep.subr.bf16.mxu0 %v8748_v1  ;;  %7129 = vmatprep.subr.bf16.mxu1 %v8750_v11  ;;  %v6425_v1 = vrot.slane %v8603_v12, %v9988_v36  ;;  %v6433_v11 = vrot.slane %v8603_v12, %v10524_v55 }
0x1caa   :  { %v9097_v49 = vpop.f32.mrf.mxu0  ;;  %v9119_v50 = vpop.f32.mrf.mxu1 }
0x1cac   :  { %v9098_v23 = vpop.f32.mrf.mxu0  ;;  %v9120_v57 = vpop.f32.mrf.mxu1 }
0x1cad   :  { %v9099_v48 = vadd.f32 %v9098_v23, %v9097_v49  ;;  %v9121_v3 = vadd.f32 %v9120_v57, %v9119_v50 }
0x1cae   :  { %v9100_v59 = vpop.f32.mrf.mxu0  ;;  %v9122_v35 = vpop.f32.mrf.mxu1 }
0x1caf   :  { %v6124_v39 = vadd.f32 %v9121_v3, %v9099_v48 }
0x1cb0   :  { %v9101_v63 = vpop.f32.mrf.mxu0  ;;  %v9123_v28 = vpop.f32.mrf.mxu1 }
0x1cb1   :  { %v9102_v34 = vadd.f32 %v9101_v63, %v9100_v59  ;;  %v9124_v37 = vadd.f32 %v9123_v28, %v9122_v35 }
0x1cb3   :  { %v6127_v0 = vadd.f32 %v9124_v37, %v9102_v34 }
0x1cca   :  { %v9141_v27 = vpop.f32.mrf.mxu0  ;;  %v9163_v9 = vpop.f32.mrf.mxu1 }
0x1ccc   :  { %v9142_v54 = vpop.f32.mrf.mxu0  ;;  %v9164_v40 = vpop.f32.mrf.mxu1 }
0x1ccd   :  { %v9143_v17 = vadd.f32 %v9142_v54, %v9141_v27  ;;  %v9165_v61 = vadd.f32 %v9164_v40, %v9163_v9  ;;  %v8726_v54 = vld [vmem:[%s12196_s6 + $0x330] sm:$0xff] }
0x1cce   :  { %v9144_v29 = vpop.f32.mrf.mxu0  ;;  %v9166_v5 = vpop.f32.mrf.mxu1  ;;  %v8728_v40 = vld [vmem:[%s12196_s6 + $0x370] sm:$0xff] }
0x1ccf   :  { %v6357_v24 = vadd.f32 %v9143_v17, %v6124_v39 }
0x1cd0   :  { %v9145_v30 = vpop.f32.mrf.mxu0  ;;  %v9167_v51 = vpop.f32.mrf.mxu1 }
0x1cd1   :  { %v11916_v16 = vadd.f32 %v9165_v61, %v6357_v24  ;;  %v9146_v52 = vadd.f32 %v9145_v30, %v9144_v29  ;;  %v9168_v10 = vadd.f32 %v9167_v51, %v9166_v5  ;;  %v8727_v24 = vld [vmem:[%s12196_s6 + $0x338] sm:$0xff] }
0x1cd2   :  { %v8729_v30 = vld [vmem:[%s12196_s6 + $0x378] sm:$0xff] }
0x1cd3   :  { %v6360_v25 = vadd.f32 %v9146_v52, %v6127_v0 }
0x1cd5   :  { %v11918_v6 = vadd.f32 %v9168_v10, %v6360_v25 }
0x1cda   :  { %v6556_v15 = vpop.f32.mrf.mxu0  ;;  %v6599_v18 = vpop.f32.mrf.mxu1 }
0x1cdb   :  { %v6557_v39 = vadd.f32 %v6556_v15, %v6425_v1  ;;  %v6600_v63 = vadd.f32 %v6599_v18, %v6433_v11  ;;  %v8744_v18 = vcombine.high %v8726_v54, %v8728_v40 }
0x1cdc   :  { %v6558_v49 = vpop.f32.mrf.mxu0  ;;  %v6601_v50 = vpop.f32.mrf.mxu1 }
0x1cdd   :  { %v6559_v48 = vadd.f32 %v6558_v49, %v6429_v62  ;;  %v6602_v3 = vadd.f32 %v6601_v50, %v6437_v44  ;;  %v6608_v51 = vmax.f32 %v6557_v39, 0.0  ;;  %v6610_v52 = vmax.f32 %v6600_v63, 0.0  ;;  %v8725_v49 = vld [vmem:[%s12196_s6 + $0x2f8] sm:$0xff] }
0x1cde   :  { %v6560_v23 = vpop.f32.mrf.mxu0  ;;  %v6603_v57 = vpop.f32.mrf.mxu1  ;;  %v8743_v50 = vcombine.low %v8726_v54, %v8728_v40  ;;  %v8737_v39 = vcombine.low %v8719_v38, %v8721_v47  ;;  %v9675_v63 = vld [vmem:[%s12198_s8 + $0x778] sm:$0xff]   ;;  %v9684_v54 = vld [vmem:[%s12198_s8 + $0x7e8] sm:$0xff]  }
0x1cdf   :  { %v6561_v59 = vadd.f32 %v6560_v23, %v6425_v1  ;;  %v6604_v35 = vadd.f32 %v6603_v57, %v6433_v11  ;;  %v6609_v17 = vmax.f32 %v6559_v48, 0.0  ;;  %v6611_v61 = vmax.f32 %v6602_v3, 0.0  ;;  %v8724_v1 = vld [vmem:[%s12196_s6 + $0x2f0] sm:$0xff]  ;;  %v8723_v11 = vld [vmem:[%s12196_s6 + $0x2b8] sm:$0xff]  ;;  %v9685_v40 = vld [vmem:[%s12198_s8 + $0x728] sm:$0xff]  }
0x1ce0   :  { %v6562_v28 = vpop.f32.mrf.mxu0  ;;  %v6605_v34 = vpop.f32.mrf.mxu1  ;;  %v8745_v23 = vcombine.low %v8727_v24, %v8729_v30  ;;  %v8742_v48 = vcombine.high %v8723_v11, %v8725_v49  ;;  %v8718_v3 = vld [vmem:[%s12196_s6 + $0x230] sm:$0xff]  ;;  %v8741_v21 = vcombine.low %v8723_v11, %v8725_v49  ;;  %v9702_v11 = vld [vmem:[%s12198_s8 + $0x788] sm:$0xff]   ;;  %v9703_v49 = vld [vmem:[%s12198_s8 + $0x740] sm:$0xff]  }
0x1ce1   :  { %v6563_v37 = vadd.f32 %v6562_v28, %v6429_v62  ;;  %v6606_v0 = vadd.f32 %v6605_v34, %v6437_v44  ;;  %v6612_v27 = vmax.f32 %v6561_v59, 0.0  ;;  %v6614_v9 = vmax.f32 %v6604_v35, 0.0  ;;  %v8722_v44 = vld [vmem:[%s12196_s6 + $0x2b0] sm:$0xff]  ;;  %v9677_v28 = vld [vmem:[%s12198_s8 + $0x738] sm:$0xff]  }
0x1ce2   :  { %v8746_v62 = vcombine.high %v8727_v24, %v8729_v30  ;;  %v8740_v57 = vcombine.high %v8722_v44, %v8724_v1  ;;  %v8720_v59 = vld [vmem:[%s12196_s6 + $0x270] sm:$0xff]  ;;  %v8739_v53 = vcombine.low %v8722_v44, %v8724_v1  ;;  %v9678_v34 = vld [vmem:[%s12198_s8 + $0x7b8] sm:$0xff]   ;;  %v9690_v24 = vld [vmem:[%s12198_s8 + $0x7a0] sm:$0xff]  }
0x1ce3   :  { %v6613_v29 = vmax.f32 %v6563_v37, 0.0  ;;  %v6615_v5 = vmax.f32 %v6606_v0, 0.0  ;;  %v6616_v12 = vpack.c.bf16 %v6612_v27, %v6608_v51  ;;  %v6618_v15 = vpack.c.bf16 %v6614_v9, %v6610_v52  ;;  %v9679_v37 = vld [vmem:[%s12198_s8 + $0x770] sm:$0xff]   ;;  %v9691_v30 = vld [vmem:[%s12198_s8 + $0x758] sm:$0xff]   ;;  %v9700_v44 = vld [vmem:[%s12198_s8 + $0x7c8] sm:$0xff]  }
0x1ce4   :  { %v8735_v35 = vcombine.low %v8718_v3, %v8720_v59  ;;  %v9680_v0 = vld [vmem:[%s12198_s8 + $0x7f0] sm:$0xff]   ;;  %v9692_v51 = vld [vmem:[%s12198_s8 + $0x7d8] sm:$0xff]   ;;  %v9701_v1 = vld [vmem:[%s12198_s8 + $0x708] sm:$0xff]  }
0x1ce5   :  { %v6617_v10 = vpack.c.bf16 %v6613_v29, %v6609_v17  ;;  %v6619_v25 = vpack.c.bf16 %v6615_v5, %v6611_v61  ;;  %v9681_v27 = vld [vmem:[%s12198_s8 + $0x730] sm:$0xff]   ;;  %v9686_v17 = vld [vmem:[%s12198_s8 + $0x7a8] sm:$0xff]   ;;  %v9687_v61 = vld [vmem:[%s12198_s8 + $0x760] sm:$0xff]  }
0x1ce6   :  { %v9682_v9 = vld [vmem:[%s12198_s8 + $0x7b0] sm:$0xff]   ;;  %v9688_v29 = vld [vmem:[%s12198_s8 + $0x7e0] sm:$0xff]   ;;  %v9693_v52 = vld [vmem:[%s12198_s8 + $0x718] sm:$0xff]  }
0x1ce7   :  { %6908 = vmatprep.mubr.bf16.mxu0 %v6617_v10  ;;  %6949 = vmatprep.mubr.bf16.mxu1 %v6619_v25  ;;  %v9689_v5 = vld [vmem:[%s12198_s8 + $0x720] sm:$0xff]   ;;  %v9694_v10 = vld [vmem:[%s12198_s8 + $0x798] sm:$0xff]   ;;  %v9695_v25 = vld [vmem:[%s12198_s8 + $0x750] sm:$0xff]  }
0x1ce8   :  { %6909 = vmatmul.mubr.bf16.vlgmr.msra.gmra.mxu0 %v6616_v12  ;;  %6950 = vmatmul.mubr.bf16.vlgmr.msra.gmra.mxu1 %v6618_v15  ;;  %v9696_v12 = vld [vmem:[%s12198_s8 + $0x7d0] sm:$0xff]  }
0x1ce9   :  { %7087 = vmatpush1.bf16.msra.mxu0 %v8747_v58  ;;  %7130 = vmatpush1.bf16.msra.mxu1 %v8749_v20  ;;  %v8736_v58 = vcombine.high %v8718_v3, %v8720_v59  ;;  %v8738_v20 = vcombine.high %v8719_v38, %v8721_v47  ;;  %v9697_v15 = vld [vmem:[%s12198_s8 + $0x710] sm:$0xff]  }
0x1cea   :  { %7088 = vmatprep.subr.bf16.mxu0 %v8744_v18  ;;  %7131 = vmatprep.subr.bf16.mxu1 %v8746_v62  ;;  %v9698_v18 = vld [vmem:[%s12198_s8 + $0x790] sm:$0xff]   ;;  %v9699_v62 = vld [vmem:[%s12198_s8 + $0x748] sm:$0xff]  }
0x1ceb   :  { %7110 = vmatprep.mubr.bf16.mxu0 %v9819_v4  ;;  %7153 = vmatprep.mubr.bf16.mxu1 %v9819_v4  ;;  %v9676_v4 = vld [vmem:[%s12198_s8 + $0x7f8] sm:$0xff]  }
0x1ced   :  { %7089 = vmatpush1.bf16.msra.mxu0 %v8743_v50  ;;  %7132 = vmatpush1.bf16.msra.mxu1 %v8745_v23  ;;  %v9704_v50 = vld [vmem:[%s12198_s8 + $0x7c0] sm:$0xff]  }
0x1cee   :  { %7090 = vmatprep.subr.bf16.mxu0 %v8740_v57  ;;  %7133 = vmatprep.subr.bf16.mxu1 %v8742_v48  ;;  %v9705_v23 = vld [vmem:[%s12198_s8 + $0x700] sm:$0xff]  }
0x1cef   :  { %v9706_v57 = vld [vmem:[%s12198_s8 + $0x780] sm:$0xff]  }
0x1cf1   :  { %7091 = vmatpush1.bf16.msra.mxu0 %v8739_v53  ;;  %7134 = vmatpush1.bf16.msra.mxu1 %v8741_v21 }
0x1cf2   :  { %7092 = vmatprep.subr.bf16.mxu0 %v8736_v58  ;;  %7135 = vmatprep.subr.bf16.mxu1 %v8738_v20 }
0x1cf5   :  { %7093 = vmatpush1.bf16.msra.mxu0 %v8735_v35  ;;  %7136 = vmatpush1.bf16.msra.mxu1 %v8737_v39 }
0x1cf6   :  { %9213 = vmatprep.subr.bf16.mxu0 %v9675_v63  ;;  %9235 = vmatprep.subr.bf16.mxu1 %v9676_v4 }
0x1cf8   :  { %8751 = vmatmul.mubr.msk.bf16.vlgmr.msra.gmra.mxu0 %vm172_vm0, %v11472_v56  ;;  %8752 = vmatmul.mubr.msk.bf16.vlgmr.msra.gmra.mxu1 %vm172_vm0, %v11472_v56  ;;  %v9683_v56 = vld [vmem:[%s12198_s8 + $0x768] sm:$0xff]  }
0x1cf9   :  { %9214 = vmatpush3.bf16.msra.mxu0 %v9677_v28  ;;  %9236 = vmatpush3.bf16.msra.mxu1 %v9678_v34 }
0x1cfa   :  { %9215 = vmatprep.subr.bf16.mxu0 %v9679_v37  ;;  %9237 = vmatprep.subr.bf16.mxu1 %v9680_v0  ;;  %v8734_v0 = vld [vmem:[%s12197_s7 + $0x1c] sm:$0xf] }
0x1cfd   :  { %9216 = vmatpush3.bf16.msra.mxu0 %v9681_v27  ;;  %9238 = vmatpush3.bf16.msra.mxu1 %v9682_v9 }
0x1cfe   :  { %9217 = vmatprep.subr.bf16.mxu0 %v9683_v56  ;;  %9239 = vmatprep.subr.bf16.mxu1 %v9684_v54  ;;  %v6985_v56 = vrot.slane %v8734_v0, %v10007_v45  ;;  %v6993_v54 = vrot.slane %v8734_v0, %v10518_v60 }
0x1d01   :  { %9218 = vmatpush3.bf16.msra.mxu0 %v9685_v40  ;;  %9240 = vmatpush3.bf16.msra.mxu1 %v9686_v17  ;;  %v6981_v40 = vrot.slane %v8734_v0, %v9988_v36  ;;  %v6989_v17 = vrot.slane %v8734_v0, %v10524_v55 }
0x1d02   :  { %9219 = vmatprep.subr.bf16.mxu0 %v9687_v61  ;;  %9241 = vmatprep.subr.bf16.mxu1 %v9688_v29 }
0x1d05   :  { %9220 = vmatpush3.bf16.msra.mxu0 %v9689_v5  ;;  %9242 = vmatpush3.bf16.msra.mxu1 %v9690_v24 }
0x1d06   :  { %9221 = vmatprep.subr.bf16.mxu0 %v9691_v30  ;;  %9243 = vmatprep.subr.bf16.mxu1 %v9692_v51 }
0x1d09   :  { %9222 = vmatpush3.bf16.msra.mxu0 %v9693_v52  ;;  %9244 = vmatpush3.bf16.msra.mxu1 %v9694_v10 }
0x1d0a   :  { %9223 = vmatprep.subr.bf16.mxu0 %v9695_v25  ;;  %9245 = vmatprep.subr.bf16.mxu1 %v9696_v12 }
0x1d0d   :  { %9224 = vmatpush3.bf16.msra.mxu0 %v9697_v15  ;;  %9246 = vmatpush3.bf16.msra.mxu1 %v9698_v18 }
0x1d0e   :  { %9225 = vmatprep.subr.bf16.mxu0 %v9699_v62  ;;  %9247 = vmatprep.subr.bf16.mxu1 %v9700_v44 }
0x1d11   :  { %9226 = vmatpush3.bf16.msra.mxu0 %v9701_v1  ;;  %9248 = vmatpush3.bf16.msra.mxu1 %v9702_v11 }
0x1d12   :  { %9227 = vmatprep.subr.bf16.mxu0 %v9703_v49  ;;  %9249 = vmatprep.subr.bf16.mxu1 %v9704_v50 }
0x1d15   :  { %9228 = vmatpush3.bf16.msra.mxu0 %v9705_v23  ;;  %9250 = vmatpush3.bf16.msra.mxu1 %v9706_v57 }
0x1da8   :  { %v9185_v48 = vpop.f32.mrf.mxu0  ;;  %v9207_v3 = vpop.f32.mrf.mxu1 }
0x1daa   :  { %v9186_v59 = vpop.f32.mrf.mxu0  ;;  %v9208_v38 = vpop.f32.mrf.mxu1 }
0x1dab   :  { %v9187_v47 = vadd.f32 %v9186_v59, %v9185_v48  ;;  %v9209_v53 = vadd.f32 %v9208_v38, %v9207_v3 }
0x1dac   :  { %v9188_v21 = vpop.f32.mrf.mxu0  ;;  %v9210_v58 = vpop.f32.mrf.mxu1 }
0x1dad   :  { %v6952_v20 = vadd.f32 %v9209_v53, %v9187_v47 }
0x1dae   :  { %v9189_v35 = vpop.f32.mrf.mxu0  ;;  %v9211_v39 = vpop.f32.mrf.mxu1 }
0x1daf   :  { %v6958_v63 = vadd.f32 %v6952_v20, %v11916_v16  ;;  %v9190_v4 = vadd.f32 %v9189_v35, %v9188_v21  ;;  %v9212_v28 = vadd.f32 %v9211_v39, %v9210_v58  ;;  %v8850_v35 = vld [vmem:[%s12199_s9 + $0x1] ss:$0 sm:$0xff] }
0x1db1   :  { %v6955_v34 = vadd.f32 %v9212_v28, %v9190_v4 }
0x1db3   :  { %v6959_v37 = vadd.f32 %v6955_v34, %v11918_v6 }
0x1db8   :  { %v7112_v27 = vpop.f32.mrf.mxu0  ;;  %v7155_v9 = vpop.f32.mrf.mxu1 }
0x1db9   :  { %v7113_v52 = vadd.f32 %v7112_v27, %v6981_v40  ;;  %v7156_v10 = vadd.f32 %v7155_v9, %v6989_v17 }
0x1dba   :  { %v7114_v16 = vpop.f32.mrf.mxu0  ;;  %v7157_v61 = vpop.f32.mrf.mxu1 }
0x1dbb   :  { %v7115_v24 = vadd.f32 %v7114_v16, %v6985_v56  ;;  %v7158_v6 = vadd.f32 %v7157_v61, %v6993_v54  ;;  %v7164_v1 = vmax.f32 %v7113_v52, 0.0  ;;  %v7166_v11 = vmax.f32 %v7156_v10, 0.0 }
0x1dbc   :  { %v7116_v29 = vpop.f32.mrf.mxu0  ;;  %v7159_v5 = vpop.f32.mrf.mxu1 }
0x1dbd   :  { %v7117_v30 = vadd.f32 %v7116_v29, %v6981_v40  ;;  %v7160_v51 = vadd.f32 %v7159_v5, %v6989_v17  ;;  %v7165_v62 = vmax.f32 %v7115_v24, 0.0  ;;  %v7167_v36 = vmax.f32 %v7158_v6, 0.0 }
0x1dbe   :  { %v7118_v25 = vpop.f32.mrf.mxu0  ;;  %v7161_v12 = vpop.f32.mrf.mxu1 }
0x1dbf   :  { %v7119_v15 = vadd.f32 %v7118_v25, %v6985_v56  ;;  %v7162_v45 = vadd.f32 %v7161_v12, %v6993_v54  ;;  %v7168_v18 = vmax.f32 %v7117_v30, 0.0  ;;  %v7170_v60 = vmax.f32 %v7160_v51, 0.0 }
0x1dc1   :  { %v7169_v44 = vmax.f32 %v7119_v15, 0.0  ;;  %v7171_v55 = vmax.f32 %v7162_v45, 0.0  ;;  %v7172_v23 = vpack.c.bf16 %v7168_v18, %v7164_v1  ;;  %v7174_v57 = vpack.c.bf16 %v7170_v60, %v7166_v11 }
0x1dc3   :  { %v7173_v49 = vpack.c.bf16 %v7169_v44, %v7165_v62  ;;  %v7175_v50 = vpack.c.bf16 %v7171_v55, %v7167_v36 }
0x1dc5   :  { %7464 = vmatprep.mubr.bf16.mxu0 %v7173_v49  ;;  %7505 = vmatprep.mubr.bf16.mxu1 %v7175_v50 }
0x1dc6   :  { %7465 = vmatmul.mubr.bf16.vlgmr.msra.gmra.mxu0 %v7172_v23  ;;  %7506 = vmatmul.mubr.bf16.vlgmr.msra.gmra.mxu1 %v7174_v57 }
0x1e86   :  { %v9229_v48 = vpop.f32.mrf.mxu0  ;;  %v9251_v3 = vpop.f32.mrf.mxu1 }
0x1e88   :  { %v9230_v59 = vpop.f32.mrf.mxu0  ;;  %v9252_v38 = vpop.f32.mrf.mxu1 }
0x1e89   :  { %v9231_v47 = vadd.f32 %v9230_v59, %v9229_v48  ;;  %v9253_v53 = vadd.f32 %v9252_v38, %v9251_v3 }
0x1e8a   :  { %v9232_v21 = vpop.f32.mrf.mxu0  ;;  %v9254_v58 = vpop.f32.mrf.mxu1 }
0x1e8b   :  { %v7508_v20 = vadd.f32 %v9253_v53, %v9231_v47 }
0x1e8c   :  { %v9233_v39 = vpop.f32.mrf.mxu0  ;;  %v9255_v4 = vpop.f32.mrf.mxu1 }
0x1e8d   :  { %v7514_v28 = vadd.f32 %v7508_v20, %v6958_v63  ;;  %v9234_v34 = vadd.f32 %v9233_v39, %v9232_v21  ;;  %v9256_v0 = vadd.f32 %v9255_v4, %v9254_v58 }
0x1e8f   :  { %v7524_v27 = vadd.f32 %v8850_v35, %v7514_v28  ;;  %v7511_v9 = vadd.f32 %v9256_v0, %v9234_v34 }
0x1e91   :  { %v7528_v56 = vcombine.high %v7524_v27, %v7524_v27  ;;  %v7535_v54 = vrot.slane %v7524_v27, %v9963_v19  ;;  %v7515_v40 = vadd.f32 %v7511_v9, %v6959_v37 }
0x1e93   :  { %v7525_v17 = vadd.f32 %v8850_v35, %v7515_v40  ;;  %v7542_v16 = vrot.slane %v7528_v56, %v9963_v19  ;;  %v7543_v61 = vcombine.high %v7535_v54, %v7535_v54  ;;  %v7570_v29 = vadd.f32 %v7535_v54, %v11432_v7 }
0x1e95   :  { %v7545_v5 = vcombine.high %v7525_v17, %v7525_v17  ;;  %v7552_v24 = vrot.slane %v7525_v17, %v9963_v19  ;;  %v7544_v6 = vcombine.high %v7542_v16, %v7542_v16  ;;  %v7571_v63 = vadd.f32 %v7543_v61, %v11434_v13 }
0x1e96   :  { %v7572_v30 = vadd.f32 %v7542_v16, %v11436_v26 }
0x1e97   :  { %v7573_v51 = vadd.f32 %v7544_v6, %v11438_v32  ;;  %v7590_v52 = vcombine.low %v7570_v29, %v7571_v63  ;;  %v7559_v10 = vrot.slane %v7545_v5, %v9963_v19  ;;  %v7560_v37 = vcombine.high %v7552_v24, %v7552_v24 }
0x1e98   :  { %v7574_v15 = vadd.f32 %v7552_v24, %v11444_v14 }
0x1e99   :  { %v7591_v25 = vcombine.low %v7572_v30, %v7573_v51  ;;  %v7561_v12 = vcombine.high %v7559_v10, %v7559_v10  ;;  %v7575_v7 = vadd.f32 %v7560_v37, %v11446_v33  ;;  %v7598_v45 = vrot.slane %v7590_v52, %v9963_v19 }
0x1e9a   :  { %v7576_v13 = vadd.f32 %v7559_v10, %v11448_v22 }
0x1e9b   :  { %v7605_v18 = vrot.slane %v7591_v25, %v9963_v19  ;;  %v7577_v26 = vadd.f32 %v7561_v12, %v11450_v31  ;;  %v7607_v60 = vcombine.low %v7574_v15, %v7575_v7 }
0x1e9d   :  { %v7606_v32 = vcombine.low %v7598_v45, %v7605_v18  ;;  %v7608_v62 = vcombine.low %v7576_v13, %v7577_v26  ;;  %v7615_v44 = vrot.slane %v7607_v60, %v9963_v19  ;;  %v8853_v18 = vld [vmem:[%s12202_s12 + $0x1] ss:$0 sm:$0xff]  ;;  %s9834_s12 = smov [#allocation3]  }
0x1e9e   :  { %v7851_v60 = vcombine.high %v8853_v18, %v8853_v18 }
0x1e9f   :  { %v7626_v36 = vsel %vm172_vm0, %v7606_v32, 0.0  ;;  %v7622_v55 = vrot.slane %v7608_v62, %v9963_v19 }
0x1ea0   :  { %7627 = vadd.xlane.f32.xlu1 %v7626_v36  ;;  %v7858_v36 = vrot.slane %v8853_v18, %v9963_v19 }
0x1ea1   :  { %v7623_v14 = vcombine.low %v7615_v44, %v7622_v55  ;;  %v7865_v44 = vrot.slane %v7851_v60, %v9963_v19 }
0x1ea3   :  { %v7629_v33 = vsel %vm172_vm0, %v7623_v14, 0.0 }
0x1ea4   :  { %7630 = vadd.xlane.f32.xlu1 %v7629_v33 }
0x1f29   :  { %v7628_v1 = vpop.xlane.xlu1 %7627 }
0x1f2a   :  { %v7632_v11 = vmul.f32 0.015625, %v7628_v1 }
0x1f2c   :  { %v7642_v22 = vrot.slane %v7632_v11, %v10166_v41  ;;  %v7649_v31 = vrot.slane %v7632_v11, %v10169_v42  ;;  %v7656_v49 = vrot.slane %v7632_v11, %v10172_v43  ;;  %v7663_v50 = vrot.slane %v7632_v11, %v10175_v46 }
0x1f2d   :  { %v7631_v23 = vpop.xlane.xlu1 %7630 }
0x1f2e   :  { %v7633_v57 = vmul.f32 0.015625, %v7631_v23  ;;  %v12105_v48 = vsub.f32 %v7570_v29, %v7642_v22  ;;  %v12107_v3 = vsub.f32 %v7571_v63, %v7649_v31  ;;  %v12109_v59 = vsub.f32 %v7572_v30, %v7656_v49 }
0x1f2f   :  { %v12111_v38 = vsub.f32 %v7573_v51, %v7663_v50  ;;  %v7866_v22 = vcombine.high %v7858_v36, %v7858_v36  ;;  %v7867_v31 = vcombine.high %v7865_v44, %v7865_v44 }
0x1f30   :  { %v7670_v47 = vrot.slane %v7633_v57, %v10166_v41  ;;  %v7677_v53 = vrot.slane %v7633_v57, %v10169_v42  ;;  %v7684_v21 = vrot.slane %v7633_v57, %v10172_v43  ;;  %v7691_v58 = vrot.slane %v7633_v57, %v10175_v46 }
0x1f31   :  { %v7708_v20 = vmul.f32 %v12105_v48, %v12105_v48  ;;  %v7709_v35 = vmul.f32 %v12107_v3, %v12107_v3  ;;  %v7710_v39 = vmul.f32 %v12109_v59, %v12109_v59  ;;  %v7711_v4 = vmul.f32 %v12111_v38, %v12111_v38 }
0x1f32   :  { %v12125_v28 = vsub.f32 %v7574_v15, %v7670_v47  ;;  %v12127_v34 = vsub.f32 %v7575_v7, %v7677_v53  ;;  %v12129_v0 = vsub.f32 %v7576_v13, %v7684_v21  ;;  %v12131_v27 = vsub.f32 %v7577_v26, %v7691_v58  ;;  %v8854_v13 = vld [vmem:[%s12203_s13 + $0x1] ss:$0 sm:$0xff]  ;;  %v8855_v26 = vld [vmem:[%s12204_s14] ss:$0 sm:$0xff]  ;;  %s8038_s13 = sshll.u32 %s9834_s12, 4  ;;  %s8039_s13 = int_to_ptr.vmem [resolvable:$true] %s8038_s13 }
0x1f33   :  { %v7724_v9 = vcombine.low %v7708_v20, %v7709_v35  ;;  %v7725_v56 = vcombine.low %v7710_v39, %v7711_v4  ;;  %v7885_v32 = vcombine.high %v8854_v13, %v8854_v13  ;;  %v7920_v62 = vcombine.high %v8855_v26, %v8855_v26  ;;  %s9797_s14 = scalar_lea.vmem %s8039_s13, 16  ;;  %s9801_s27 = scalar_lea.vmem %s8039_s13, 32 }
0x1f34   :  { %v7712_v54 = vmul.f32 %v12125_v28, %v12125_v28  ;;  %v7713_v40 = vmul.f32 %v12127_v34, %v12127_v34  ;;  %v7714_v17 = vmul.f32 %v12129_v0, %v12129_v0  ;;  %v7715_v16 = vmul.f32 %v12131_v27, %v12131_v27  ;;  %p9798_p0 = scmp.ne.s32.totalorder %s8039_s13, %s9797_s14  ;;  %p9802_p1 = scmp.lt.s32.totalorder %s8039_s13, %s8039_s13 }
0x1f35   :  { %v7732_v61 = vrot.slane %v7724_v9, %v9963_v19  ;;  %v7739_v29 = vrot.slane %v7725_v56, %v9963_v19  ;;  %v7892_v55 = vrot.slane %v8854_v13, %v9963_v19  ;;  %v7899_v14 = vrot.slane %v7885_v32, %v9963_v19  ;;  %p9803_p2 = scmp.lt.s32.totalorder %s9801_s27, %s9797_s14 }
0x1f36   :  { %v7741_v5 = vcombine.low %v7712_v54, %v7713_v40  ;;  %v7742_v24 = vcombine.low %v7714_v17, %v7715_v16  ;;  %v7927_v33 = vrot.slane %v8855_v26, %v9963_v19  ;;  %v7934_v1 = vrot.slane %v7920_v62, %v9963_v19 }
0x1f37   :  { %v7740_v6 = vcombine.low %v7732_v61, %v7739_v29  ;;  %v7900_v47 = vcombine.high %v7892_v55, %v7892_v55  ;;  %v7901_v53 = vcombine.high %v7899_v14, %v7899_v14  ;;  %p9804_p3 = por %p9803_p2, %p9802_p1 }
0x1f38   :  { %v7749_v63 = vrot.slane %v7741_v5, %v9963_v19  ;;  %v7756_v30 = vrot.slane %v7742_v24, %v9963_v19  ;;  %v7935_v21 = vcombine.high %v7927_v33, %v7927_v33  ;;  %v7936_v58 = vcombine.high %v7934_v1, %v7934_v1 }
0x1f39   :  { %v7760_v51 = vsel %vm172_vm0, %v7740_v6, 0.0  ;;  %p9805_p4 = pnand %p9804_p3, %p9798_p0 }
0x1f3a   :  { %7761 = vadd.xlane.f32.xlu0 %v7760_v51  ;;  %v7757_v52 = vcombine.low %v7749_v63, %v7756_v30 }
0x1f3c   :  { %v7763_v10 = vsel %vm172_vm0, %v7757_v52, 0.0 }
0x1f3d   :  { %7764 = vadd.xlane.f32.xlu1 %v7763_v10 }
0x1fc3   :  { %v7762_v37 = vpop.xlane.xlu0 %7761 }
0x1fc4   :  { %v7766_v25 = vmul.f32 0.015625, %v7762_v37 }
0x1fc6   :  { %v7768_v12 = vadd.f32 1e-05, %v7766_v25  ;;  %v7765_v15 = vpop.xlane.xlu1 %7764 }
0x1fc7   :  { %v7767_v7 = vmul.f32 0.015625, %v7765_v15 }
0x1fc8   :  { %9783 = vrsqrt.f32 %v7768_v12 }
0x1fc9   :  { %v7769_v45 = vadd.f32 1e-05, %v7767_v7 }
0x1fcb   :  { %9785 = vrsqrt.f32 %v7769_v45 }
0x1fd5   :  { %v9784_v11 = vpop.eup %9783 }
0x1fd6   :  { %v7780_v49 = vrot.slane %v9784_v11, %v10166_v41  ;;  %v7787_v50 = vrot.slane %v9784_v11, %v10169_v42  ;;  %v7794_v23 = vrot.slane %v9784_v11, %v10172_v43  ;;  %v7801_v57 = vrot.slane %v9784_v11, %v10175_v46 }
0x1fd8   :  { %v9786_v20 = vpop.eup %9785  ;;  %v7838_v35 = vmul.f32 %v7780_v49, %v12105_v48  ;;  %v7839_v39 = vmul.f32 %v7787_v50, %v12107_v3  ;;  %v7840_v4 = vmul.f32 %v7794_v23, %v12109_v59  ;;  %v7841_v9 = vmul.f32 %v7801_v57, %v12111_v38 }
0x1fd9   :  { %v7808_v56 = vrot.slane %v9786_v20, %v10166_v41  ;;  %v7815_v54 = vrot.slane %v9786_v20, %v10169_v42  ;;  %v7822_v40 = vrot.slane %v9786_v20, %v10172_v43  ;;  %v7829_v17 = vrot.slane %v9786_v20, %v10175_v46 }
0x1fda   :  { %v7872_v16 = vmul.f32 %v7858_v36, %v7838_v35  ;;  %v7873_v61 = vmul.f32 %v7866_v22, %v7839_v39  ;;  %v7874_v29 = vmul.f32 %v7865_v44, %v7840_v4  ;;  %v7875_v5 = vmul.f32 %v7867_v31, %v7841_v9 }
0x1fdb   :  { %v7842_v48 = vmul.f32 %v7808_v56, %v12125_v28  ;;  %v7843_v3 = vmul.f32 %v7815_v54, %v12127_v34  ;;  %v7844_v59 = vmul.f32 %v7822_v40, %v12129_v0  ;;  %v7845_v38 = vmul.f32 %v7829_v17, %v12131_v27 }
0x1fdc   :  { %v7906_v24 = vadd.f32 %v7892_v55, %v7872_v16  ;;  %v7907_v41 = vadd.f32 %v7900_v47, %v7873_v61  ;;  %v7908_v6 = vadd.f32 %v7899_v14, %v7874_v29  ;;  %v7909_v42 = vadd.f32 %v7901_v53, %v7875_v5 }
0x1fdd   :  { %v7876_v63 = vmul.f32 %v7858_v36, %v7842_v48  ;;  %v7877_v43 = vmul.f32 %v7866_v22, %v7843_v3  ;;  %v7878_v30 = vmul.f32 %v7865_v44, %v7844_v59  ;;  %v7879_v46 = vmul.f32 %v7867_v31, %v7845_v38 }
0x1fde   :  { %v7941_v51 = vmul.f32 %v7927_v33, %v7906_v24  ;;  %v7942_v52 = vmul.f32 %v7935_v21, %v7907_v41  ;;  %v7943_v10 = vmul.f32 %v7934_v1, %v7908_v6  ;;  %v7944_v37 = vmul.f32 %v7936_v58, %v7909_v42 }
0x1fdf   :  { %v7910_v25 = vadd.f32 %v7892_v55, %v7876_v63  ;;  %v7911_v28 = vadd.f32 %v7900_v47, %v7877_v43  ;;  %v7912_v12 = vadd.f32 %v7899_v14, %v7878_v30  ;;  %v7913_v34 = vadd.f32 %v7901_v53, %v7879_v46 }
0x1fe0   :  { %v7957_v15 = vcombine.low %v7941_v51, %v7942_v52  ;;  %v7958_v0 = vcombine.low %v7943_v10, %v7944_v37  ;;  %v8017_v50 = vand.u32 127, %v80_v2 }
0x1fe1   :  { %v7945_v7 = vmul.f32 %v7927_v33, %v7910_v25  ;;  %v7946_v27 = vmul.f32 %v7935_v21, %v7911_v28  ;;  %v7947_v45 = vmul.f32 %v7934_v1, %v7912_v12  ;;  %v7948_v18 = vmul.f32 %v7936_v58, %v7913_v34  ;;  %v8856_v1 = vld [vmem:[#allocation2] ss:$0 sm:$0xff] }
0x1fe2   :  { %v7965_v13 = vrot.slane %v7957_v15, %v9963_v19  ;;  %v7972_v26 = vrot.slane %v7958_v0, %v9963_v19  ;;  %v8022_v23 = vadd.s32 4294967288, %v8017_v50  ;;  %v8020_v57 = vsub.s32 %v8017_v50, %v9935_v8 }
0x1fe3   :  { %v7974_v60 = vcombine.low %v7945_v7, %v7946_v27  ;;  %v7975_v32 = vcombine.low %v7947_v45, %v7948_v18 }
0x1fe4   :  { %v7973_v62 = vcombine.low %v7965_v13, %v7972_v26 }
0x1fe5   :  { %v7982_v36 = vrot.slane %v7974_v60, %v9963_v19  ;;  %v7989_v44 = vrot.slane %v7975_v32, %v9963_v19  ;;  %v8025_v19 = vsub.s32 %v8022_v23, %v9935_v8 }
0x1fe6   :  { %v7993_v55 = vsel %vm172_vm0, %v7973_v62, 0.0 }
0x1fe7   :  { %7994 = vadd.xlane.f32.xlu1 %v7993_v55  ;;  %v7990_v14 = vcombine.low %v7982_v36, %v7989_v44 }
0x1fe9   :  { %v7996_v33 = vsel %vm172_vm0, %v7990_v14, 0.0 }
0x1feb   :  { %7997 = vadd.xlane.f32.xlu1 %v7996_v33 }
0x2070   :  { %v7995_v11 = vpop.xlane.xlu1 %7994 }
0x2071   :  { %v8006_v22 = vadd.f32 %v8856_v1, %v7995_v11 }
0x2073   :  { %8011 = vperm.xlu1 %9417, %v8006_v22  }
0x2074   :  { %v7998_v31 = vpop.xlane.xlu1 %7997 }
0x2075   :  { %v8007_v49 = vadd.f32 %v8856_v1, %v7998_v31 }
0x2077   :  { %8014 = vperm.xlu0 %9418, %v8007_v49  }
0x20ee   :  { %v8012_v47 = vpop.permute.xlu1 %8011 }
0x20ef   :  { %v8021_v21 = vrot.slane %v8012_v47, %v8020_v57 }
0x20f2   :  { %v8015_v53 = vpop.permute.xlu0 %8014 }
0x20f3   :  { %v8026_v58 = vrot.slane %v8015_v53, %v8025_v19 }
0x20f5   :  { %v8028_v20 = vsel %vm8027_vm3, %v8026_v58, %v8021_v21 }
0x20f6   :  { %8031 = vst.msk [vmem:[#allocation3] sm:$0x1] %vm8030_vm4, %v8028_v20 }
0x20f7   :  { %9808 = shalt.err (!%p9805_p4)
}
0x20f8   :  { %8041 = dma.vmem_to_hbm [thread:$0]  %s8039_s13, 16, %s12206_s16, [#allocation4]  }
0x20f9   :  { %9817 = dma.done.wait [#allocation4], 16  }
0x20fa   :  { %9818 = vsyncadd [#allocation4], 4294967280 }
0x20fb   :  { %8045 = vsyncpa [#allocation4], 1 }

</bundles_post_ra>
